<compile_context>
chip_gen: v5e
topology: v5e:2x2
jax: 0.10.0
libtpu: 0.0.40
codegen_flags: <defaults>
</compile_context>

<pallas_src>
import math
import functools

import jax
import jax.numpy as jnp
from jax.experimental import pallas as pl
from jax.experimental.pallas import tpu as pltpu


def _mha_kernel(xq_ref, xkv_ref, mask_ref,
                wq_ref, bq_ref, wk_ref, bk_ref, wv_ref, bv_ref,
                o_ref, k_sc, v_sc, *, head, q_k_size, v_size, scale):
    """One (batch, q-tile) grid step.

    Block shapes:
      xq_ref  : (1, tq, E)        bf16
      xkv_ref : (1, Skv, E)       bf16
      mask_ref: (1, tq|1, Skv)    int8  (nonzero == masked / padded key)
      w*_ref  : (E, head*d)       bf16  (fused heads, single-buffered)
      b*_ref  : (1, head*d)       f32
      o_ref   : (1, tq, head*vs)  bf16  (lane-dense: head folded into lanes)
      k_sc    : (head, Skv, qk)   bf16  VMEM scratch, persists across q tiles
      v_sc    : (head, Skv, vs)   bf16  VMEM scratch
    """
    # ---- K / V projected ONCE per batch (qi == 0) into persistent scratch --
    @pl.when(pl.program_id(1) == 0)
    def _project_kv():
        xkv = xkv_ref[0]                                            # (Skv, E)
        skv = xkv.shape[0]
        k = jnp.dot(xkv, wk_ref[...], preferred_element_type=jnp.float32) + bk_ref[...]
        v = jnp.dot(xkv, wv_ref[...], preferred_element_type=jnp.float32) + bv_ref[...]
        # Head-major layout once per batch (f32 relayout, then bf16 store).
        k = jnp.transpose(k.reshape(skv, head, q_k_size), (1, 0, 2))
        v = jnp.transpose(v.reshape(skv, head, v_size), (1, 0, 2))
        k_sc[...] = k.astype(jnp.bfloat16)                          # (head, Skv, qk)
        v_sc[...] = v.astype(jnp.bfloat16)                          # (head, Skv, vs)

    # ---- Q projection for this tile (1/sqrt(dk) folded in before bf16) ----
    xq = xq_ref[0]                                                  # (tq, E)
    tq = xq.shape[0]
    q = jnp.dot(xq, wq_ref[...], preferred_element_type=jnp.float32) + bq_ref[...]
    q = jnp.transpose((q * scale).reshape(tq, head, q_k_size), (1, 0, 2))
    q = q.astype(jnp.bfloat16)                                      # (head, tq, qk)

    # ---- Batched-over-head attention: no per-head lane slicing -------------
    s = jnp.einsum('hqd,hkd->hqk', q, k_sc[...],
                   preferred_element_type=jnp.float32)              # (head, tq, Skv)

    masked = mask_ref[0] != 0                                       # (tq|1, Skv)
    s = jnp.where(masked[None, :, :], jnp.float32(-1.0e9), s)

    # f32 softmax; the reciprocal goes to the EUP slot.
    s = s - jnp.max(s, axis=-1, keepdims=True)
    p = jnp.exp(s)
    p = p * pl.reciprocal(jnp.sum(p, axis=-1, keepdims=True), approx=True)

    z = jnp.einsum('hqk,hkd->hqd', p.astype(jnp.bfloat16), v_sc[...],
                   preferred_element_type=jnp.float32)              # (head, tq, vs)

    # Lane-dense full-width store, matching torch's transpose(1,2).reshape().
    o_ref[0] = (jnp.transpose(z, (1, 0, 2))
                .reshape(tq, head * v_size).astype(o_ref.dtype))


def _round_up(x, m):
    return ((x + m - 1) // m) * m


def _choose_q_tile(sq, skv):
    """Return (padded Sq, q tile) honoring the (8,128) tiling rules."""
    if sq < 128:
        sq_pad = _round_up(sq, 8)
        return sq_pad, sq_pad
    sq_pad = _round_up(sq, 128)
    # Prefer a smaller (tq, Skv) score working set when the context is long.
    tq = 256 if (sq_pad % 256 == 0 and skv <= 1024) else 128
    return sq_pad, tq


def _vmem_capacity_bytes():
    try:
        return int(pltpu.get_tpu_info().vmem_capacity_bytes)
    except Exception:             # info unavailable: assume smallest (v7x/TC)
        return 64 * 1024 * 1024


def _vmem_estimate(tq, skv, e, h_dk, h_dv, head, per_query_mask):
    bf, f32 = 2, 4
    blocks = (2 * tq * e * bf                          # x_q tile (2 buffers)
              + 2 * skv * e * bf                       # x_k_v   (2 buffers)
              + 2 * (tq if per_query_mask else 1) * skv  # int8 mask
              + e * (2 * h_dk + h_dv) * bf             # weights (1 buffer)
              + (2 * h_dk + h_dv) * f32                # biases  (1 buffer)
              + 2 * tq * h_dv * bf)                    # bf16 output tile
    scratch = skv * (h_dk + h_dv) * bf                 # persistent K/V scratch
    work = (2 * head * tq * skv * f32                  # scores + exp
            + tq * h_dk * f32                          # q (f32)
            + skv * (h_dk + h_dv) * f32                # K/V f32 temporaries
            + tq * h_dv * f32)                         # z (f32)
    return blocks + scratch + work


def multi_head_attention(x_q, x_k_v, mask_pad, params, head, q_k_size, v_size,
                         *, q_tile=None, out_dtype=jnp.bfloat16):
    """Pallas MultiHeadAttention.forward (default / no kv-cache path).

    mask_pad: bool/int of shape (B, Sq, Skv) or key-only (B, 1, Skv);
    nonzero == masked.  Returns (B, Sq, head*v_size) in `out_dtype`
    (bf16 by default; softmax / accumulation stay f32 in-kernel).
    """
    B, Sq, E = x_q.shape
    Skv = x_k_v.shape[1]
    H_dk = head * q_k_size
    H_dv = head * v_size

    # --- q-tile selection / Sq padding --------------------------------------
    if q_tile is not None:
        tq = int(q_tile)
        Sq_pad = _round_up(Sq, tq)
        assert tq % 8 == 0 or tq == Sq_pad, "q_tile must be a multiple of 8"
    else:
        Sq_pad, tq = _choose_q_tile(Sq, Skv)

    per_query_mask = mask_pad.shape[1] != 1
    if per_query_mask and mask_pad.shape[1] != Sq:
        raise ValueError("mask_pad q-dim must be 1 or Sq")

    # --- VMEM budget: never request more than physical capacity -------------
    vmem_cap = int(_vmem_capacity_bytes() * 0.85)
    vmem_est = _vmem_estimate(tq, Skv, E, H_dk, H_dv, head, per_query_mask)
    if vmem_est > vmem_cap and tq > 128 and Sq_pad % 128 == 0:
        tq = 128                               # shrink tile instead of OOM
        vmem_est = _vmem_estimate(tq, Skv, E, H_dk, H_dv, head, per_query_mask)
    vmem_limit = None
    if vmem_est > 32 * 1024 * 1024:
        vmem_limit = min(int(vmem_est * 5 // 4), vmem_cap)

    n_q = Sq_pad // tq

    # --- operand preparation -------------------------------------------------
    # PyTorch nn.Linear: y = x @ W.T + b, W has shape (out, in) = (head*d, E).
    wq = params["wq"].T.astype(jnp.bfloat16)           # (E, H_dk)
    wk = params["wk"].T.astype(jnp.bfloat16)           # (E, H_dk)
    wv = params["wv"].T.astype(jnp.bfloat16)           # (E, H_dv)
    bq = params["bq"].reshape(1, H_dk).astype(jnp.float32)
    bk = params["bk"].reshape(1, H_dk).astype(jnp.float32)
    bv = params["bv"].reshape(1, H_dv).astype(jnp.float32)

    xq = x_q.astype(jnp.bfloat16)
    xkv = x_k_v.astype(jnp.bfloat16)
    mask_i8 = mask_pad.astype(jnp.int8)
    if Sq_pad != Sq:
        xq = jnp.pad(xq, ((0, 0), (0, Sq_pad - Sq), (0, 0)))
        if per_query_mask:
            mask_i8 = jnp.pad(mask_i8, ((0, 0), (0, Sq_pad - Sq), (0, 0)))

    kernel = functools.partial(_mha_kernel, head=head, q_k_size=q_k_size,
                               v_size=v_size, scale=1.0 / math.sqrt(q_k_size))

    # Advisory cost estimate (K/V projection counted once per batch now).
    flops = (2 * B * Sq_pad * E * H_dk
             + 2 * B * Skv * E * (H_dk + H_dv)
             + 2 * B * head * Sq_pad * Skv * (q_k_size + v_size))
    bytes_accessed = (xq.size * 2 + xkv.size * 2 + mask_i8.size
                      + (wq.size + wk.size + wv.size) * 2
                      + (bq.size + bk.size + bv.size) * 4
                      + B * Sq_pad * H_dv * jnp.dtype(out_dtype).itemsize)
    cost = pl.CostEstimate(flops=int(flops),
                           transcendentals=int(B * head * Sq_pad * Skv),
                           bytes_accessed=int(bytes_accessed))

    def _run(single_buffer_consts):
        def const_spec(shape):
            if single_buffer_consts:
                return pl.BlockSpec(shape, lambda b, qi: (0, 0),
                                    pipeline_mode=pl.Buffered(1))
            return pl.BlockSpec(shape, lambda b, qi: (0, 0))

        if per_query_mask:
            m_spec = pl.BlockSpec((1, tq, Skv), lambda b, qi: (b, qi, 0))
        else:
            m_spec = pl.BlockSpec((1, 1, Skv), lambda b, qi: (b, 0, 0))

        grid_spec = pltpu.PrefetchScalarGridSpec(
            num_scalar_prefetch=0,
            grid=(B, n_q),
            in_specs=[
                pl.BlockSpec((1, tq, E), lambda b, qi: (b, qi, 0)),    # x_q tile
                pl.BlockSpec((1, Skv, E), lambda b, qi: (b, 0, 0)),    # x_k_v
                m_spec,                                                # pad mask
                const_spec((E, H_dk)), const_spec((1, H_dk)),          # Wq, bq
                const_spec((E, H_dk)), const_spec((1, H_dk)),          # Wk, bk
                const_spec((E, H_dv)), const_spec((1, H_dv)),          # Wv, bv
            ],
            out_specs=pl.BlockSpec((1, tq, H_dv), lambda b, qi: (b, qi, 0)),
            scratch_shapes=[
                pltpu.VMEM((head, Skv, q_k_size), jnp.bfloat16),       # K scratch
                pltpu.VMEM((head, Skv, v_size), jnp.bfloat16),         # V scratch
            ],
        )
        return pl.pallas_call(
            kernel,
            out_shape=jax.ShapeDtypeStruct((B, Sq_pad, H_dv), out_dtype),
            grid_spec=grid_spec,
            compiler_params=pltpu.CompilerParams(
                # Batch axis feeds both v7x TensorCores; q-tile axis must be
                # sequential ('arbitrary') so per-batch K/V scratch persists.
                dimension_semantics=("parallel", "arbitrary"),
                vmem_limit_bytes=vmem_limit),
            cost_estimate=cost,
        )(xq, xkv, mask_i8, wq, bq, wk, bk, wv, bv)

    try:
        out = _run(single_buffer_consts=True)
    except Exception:
        # pipeline_mode=pl.Buffered(1) unsupported on this jax/libtpu build:
        # fall back to default double-buffering (same results, more VMEM).
        out = _run(single_buffer_consts=False)

    if Sq_pad != Sq:
        out = out[:, :Sq]
    return out


def reference_forward(x_q, x_k_v, mask_pad, params, head):
    """Pure-JAX f32 mirror of the PyTorch forward (default, no kv-cache)."""
    q = x_q @ params["wq"].T + params["bq"]
    k = x_k_v @ params["wk"].T + params["bk"]
    v = x_k_v @ params["wv"].T + params["bv"]
    B, Sq, _ = q.shape
    Skv = k.shape[1]
    q = q.reshape(B, Sq, head, -1).transpose(0, 2, 1, 3)
    k = k.reshape(B, Skv, head, -1).transpose(0, 2, 1, 3)
    v = v.reshape(B, Skv, head, -1).transpose(0, 2, 1, 3)
    atten = jnp.einsum("bhqd,bhkd->bhqk", q, k) / math.sqrt(q.shape[-1])
    atten = jnp.where(mask_pad[:, None, :, :] != 0, -1.0e9, atten)
    atten = jax.nn.softmax(atten, axis=-1)
    z = jnp.einsum("bhqk,bhkd->bhqd", atten, v)
    return z.transpose(0, 2, 1, 3).reshape(B, Sq, -1)


if __name__ == "__main__":
    # Small shapes consistent with the module (Sq not a multiple of 8 to
    # exercise the padding path as well).
    B, Sq, Skv, E = 2, 12, 16, 32
    head, q_k_size, v_size = 4, 8, 8

    key = jax.random.PRNGKey(0)
    keys = jax.random.split(key, 8)

    x_q = jax.random.normal(keys[0], (B, Sq, E), dtype=jnp.float32)
    x_k_v = jax.random.normal(keys[1], (B, Skv, E), dtype=jnp.float32)

    # Key-only pad mask (B, 1, Skv): last 3 keys of batch 1 are padding.
    mask_key = jnp.zeros((B, 1, Skv), dtype=bool).at[1, :, Skv - 3:].set(True)
    # Full per-query mask (B, Sq, Skv) with an extra query-specific entry.
    mask_full = jnp.broadcast_to(mask_key, (B, Sq, Skv))
    mask_full = mask_full.at[0, 3, :2].set(True)

    # Deterministic parameter init (PyTorch Linear weight shape = (out, in)).
    def uinit(k, shape, fan_in):
        bound = 1.0 / math.sqrt(fan_in)
        return jax.random.uniform(k, shape, jnp.float32, -bound, bound)

    params = {
        "wq": uinit(keys[2], (head * q_k_size, E), E),
        "bq": uinit(keys[3], (head * q_k_size,), E),
        "wk": uinit(keys[4], (head * q_k_size, E), E),
        "bk": uinit(keys[5], (head * q_k_size,), E),
        "wv": uinit(keys[6], (head * v_size, E), E),
        "bv": uinit(keys[7], (head * v_size,), E),
    }

    # Path 1: key-only mask + forced small q-tile (exercises Sq padding and
    # the once-per-batch K/V scratch persisting across multiple q tiles).
    out1 = multi_head_attention(x_q, x_k_v, mask_key, params,
                                head, q_k_size, v_size, q_tile=8)
    # Path 2: full per-query mask, default tiling.
    out2 = multi_head_attention(x_q, x_k_v, mask_full, params,
                                head, q_k_size, v_size)
    out1, out2 = jax.block_until_ready((out1, out2))

    ref1 = reference_forward(x_q, x_k_v, mask_key, params, head)
    ref2 = reference_forward(x_q, x_k_v, mask_full, params, head)

    assert out1.shape == (B, Sq, head * v_size) and out1.dtype == jnp.bfloat16
    assert out2.shape == (B, Sq, head * v_size)
    # bf16 matmul operands / bf16 output + approx reciprocal => loose tolerance.
    assert jnp.allclose(out1.astype(jnp.float32), ref1, atol=4e-2, rtol=4e-2)
    assert jnp.allclose(out2.astype(jnp.float32), ref2, atol=4e-2, rtol=4e-2)

    print("KERNEL_OK")
</pallas_src>

<mosaic_0001>
module attributes {stable_mosaic.version = 11 : i64} {
  func.func @_mha_kernel(%arg0: i32, %arg1: i32, %arg2: memref<1x8x32xbf16, #tpu.memory_space<vmem>>, %arg3: memref<1x16x32xbf16, #tpu.memory_space<vmem>>, %arg4: memref<1x1x16xi8, #tpu.memory_space<vmem>>, %arg5: memref<32x32xbf16, #tpu.memory_space<vmem>>, %arg6: memref<1x32xf32, #tpu.memory_space<vmem>>, %arg7: memref<32x32xbf16, #tpu.memory_space<vmem>>, %arg8: memref<1x32xf32, #tpu.memory_space<vmem>>, %arg9: memref<32x32xbf16, #tpu.memory_space<vmem>>, %arg10: memref<1x32xf32, #tpu.memory_space<vmem>>, %arg11: memref<1x8x32xbf16, #tpu.memory_space<vmem>>, %arg12: memref<4x16x8xbf16, #tpu.memory_space<vmem>>, %arg13: memref<4x16x8xbf16, #tpu.memory_space<vmem>>) attributes {dimension_semantics = [#tpu.dimension_semantics<parallel>, #tpu.dimension_semantics<arbitrary>], iteration_bounds = array<i64: 2, 2>, scalar_prefetch = 0 : i64, scratch_operands = 2 : i64, tpu.core_type = #tpu.core_type<tc>, window_params = [{transform_indices = @transform_0, window_bounds = array<i64: 1, 8, 32>}, {transform_indices = @transform_1, window_bounds = array<i64: 1, 16, 32>}, {transform_indices = @transform_2, window_bounds = array<i64: 1, 1, 16>}, {pipeline_mode = #tpu.pipeline_mode<synchronous>, transform_indices = @transform_3, window_bounds = array<i64: 32, 32>}, {pipeline_mode = #tpu.pipeline_mode<synchronous>, transform_indices = @transform_4, window_bounds = array<i64: 1, 32>}, {pipeline_mode = #tpu.pipeline_mode<synchronous>, transform_indices = @transform_5, window_bounds = array<i64: 32, 32>}, {pipeline_mode = #tpu.pipeline_mode<synchronous>, transform_indices = @transform_6, window_bounds = array<i64: 1, 32>}, {pipeline_mode = #tpu.pipeline_mode<synchronous>, transform_indices = @transform_7, window_bounds = array<i64: 32, 32>}, {pipeline_mode = #tpu.pipeline_mode<synchronous>, transform_indices = @transform_8, window_bounds = array<i64: 1, 32>}, {transform_indices = @transform_9, window_bounds = array<i64: 1, 8, 32>}]} {
    %c0_i32 = arith.constant 0 : i32
    %0 = arith.cmpi eq, %arg1, %c0_i32 : i32
    %1 = arith.extui %0 : i1 to i32
    %c0_i32_0 = arith.constant 0 : i32
    %2 = arith.cmpi ne, %1, %c0_i32_0 : i32
    scf.if %2 {
      %c0_25 = arith.constant 0 : index
      %c0_26 = arith.constant 0 : index
      %c0_27 = arith.constant 0 : index
      %45 = vector.load %arg3[%c0_25, %c0_26, %c0_27] : memref<1x16x32xbf16, #tpu.memory_space<vmem>>, vector<1x16x32xbf16>
      %46 = vector.shape_cast %45 : vector<1x16x32xbf16> to vector<16x32xbf16>
      %c0_28 = arith.constant 0 : index
      %c0_29 = arith.constant 0 : index
      %47 = vector.load %arg7[%c0_28, %c0_29] : memref<32x32xbf16, #tpu.memory_space<vmem>>, vector<32x32xbf16>
      %cst_30 = arith.constant dense<0.000000e+00> : vector<16x32xf32>
      %48 = tpu.matmul %46, %47, %cst_30 {dimension_numbers = #tpu.dot_dimension_numbers<[1], [0], [0], [1], [0, 0, 1, 1], [], []>} : vector<16x32xbf16>, vector<32x32xbf16>, vector<16x32xf32> -> vector<16x32xf32>
      %c0_31 = arith.constant 0 : index
      %c0_32 = arith.constant 0 : index
      %49 = vector.load %arg8[%c0_31, %c0_32] : memref<1x32xf32, #tpu.memory_space<vmem>>, vector<1x32xf32>
      %50 = vector.broadcast %49 : vector<1x32xf32> to vector<16x32xf32>
      %51 = arith.addf %48, %50 : vector<16x32xf32>
      %c0_33 = arith.constant 0 : index
      %c0_34 = arith.constant 0 : index
      %52 = vector.load %arg9[%c0_33, %c0_34] : memref<32x32xbf16, #tpu.memory_space<vmem>>, vector<32x32xbf16>
      %cst_35 = arith.constant dense<0.000000e+00> : vector<16x32xf32>
      %53 = tpu.matmul %46, %52, %cst_35 {dimension_numbers = #tpu.dot_dimension_numbers<[1], [0], [0], [1], [0, 0, 1, 1], [], []>} : vector<16x32xbf16>, vector<32x32xbf16>, vector<16x32xf32> -> vector<16x32xf32>
      %c0_36 = arith.constant 0 : index
      %c0_37 = arith.constant 0 : index
      %54 = vector.load %arg10[%c0_36, %c0_37] : memref<1x32xf32, #tpu.memory_space<vmem>>, vector<1x32xf32>
      %55 = vector.broadcast %54 : vector<1x32xf32> to vector<16x32xf32>
      %56 = arith.addf %53, %55 : vector<16x32xf32>
      %57 = vector.shape_cast %51 : vector<16x32xf32> to vector<16x4x8xf32>
      %58 = tpu.transpose %57, [1, 0, 2] : vector<16x4x8xf32> -> vector<4x16x8xf32>
      %59 = vector.shape_cast %56 : vector<16x32xf32> to vector<16x4x8xf32>
      %60 = tpu.transpose %59, [1, 0, 2] : vector<16x4x8xf32> -> vector<4x16x8xf32>
      %61 = arith.truncf %58 : vector<4x16x8xf32> to vector<4x16x8xbf16>
      %c0_38 = arith.constant 0 : index
      %c0_39 = arith.constant 0 : index
      %c0_40 = arith.constant 0 : index
      %62 = vector.load %arg12[%c0_38, %c0_39, %c0_40] : memref<4x16x8xbf16, #tpu.memory_space<vmem>>, vector<4x16x8xbf16>
      tpu.vector_store %arg12[%c0_38, %c0_39, %c0_40], %61 {strides = array<i32>} : memref<4x16x8xbf16, #tpu.memory_space<vmem>>, vector<4x16x8xbf16>,
      %63 = arith.truncf %60 : vector<4x16x8xf32> to vector<4x16x8xbf16>
      %c0_41 = arith.constant 0 : index
      %c0_42 = arith.constant 0 : index
      %c0_43 = arith.constant 0 : index
      %64 = vector.load %arg13[%c0_41, %c0_42, %c0_43] : memref<4x16x8xbf16, #tpu.memory_space<vmem>>, vector<4x16x8xbf16>
      tpu.vector_store %arg13[%c0_41, %c0_42, %c0_43], %63 {strides = array<i32>} : memref<4x16x8xbf16, #tpu.memory_space<vmem>>, vector<4x16x8xbf16>,
    } else {
    }
    %c0 = arith.constant 0 : index
    %c0_1 = arith.constant 0 : index
    %c0_2 = arith.constant 0 : index
    %3 = vector.load %arg2[%c0, %c0_1, %c0_2] : memref<1x8x32xbf16, #tpu.memory_space<vmem>>, vector<1x8x32xbf16>
    %4 = vector.shape_cast %3 : vector<1x8x32xbf16> to vector<8x32xbf16>
    %c0_3 = arith.constant 0 : index
    %c0_4 = arith.constant 0 : index
    %5 = vector.load %arg5[%c0_3, %c0_4] : memref<32x32xbf16, #tpu.memory_space<vmem>>, vector<32x32xbf16>
    %cst = arith.constant dense<0.000000e+00> : vector<8x32xf32>
    %6 = tpu.matmul %4, %5, %cst {dimension_numbers = #tpu.dot_dimension_numbers<[1], [0], [0], [1], [0, 0, 1, 1], [], []>} : vector<8x32xbf16>, vector<32x32xbf16>, vector<8x32xf32> -> vector<8x32xf32>
    %c0_5 = arith.constant 0 : index
    %c0_6 = arith.constant 0 : index
    %7 = vector.load %arg6[%c0_5, %c0_6] : memref<1x32xf32, #tpu.memory_space<vmem>>, vector<1x32xf32>
    %8 = vector.broadcast %7 : vector<1x32xf32> to vector<8x32xf32>
    %9 = arith.addf %6, %8 : vector<8x32xf32>
    %cst_7 = arith.constant 0.353553385 : f32
    %10 = vector.broadcast %cst_7 : f32 to vector<8x32xf32>
    %11 = arith.mulf %9, %10 : vector<8x32xf32>
    %12 = vector.shape_cast %11 : vector<8x32xf32> to vector<8x4x8xf32>
    %13 = tpu.transpose %12, [1, 0, 2] : vector<8x4x8xf32> -> vector<4x8x8xf32>
    %14 = arith.truncf %13 : vector<4x8x8xf32> to vector<4x8x8xbf16>
    %c0_8 = arith.constant 0 : index
    %c0_9 = arith.constant 0 : index
    %c0_10 = arith.constant 0 : index
    %15 = vector.load %arg12[%c0_8, %c0_9, %c0_10] : memref<4x16x8xbf16, #tpu.memory_space<vmem>>, vector<4x16x8xbf16>
    "tpu.trace_start"() <{level = 10 : i32, message = "hqd,hkd->hqk"}> : () -> ()
    %cst_11 = arith.constant dense<0.000000e+00> : vector<4x8x16xf32>
    %16 = tpu.matmul %14, %15, %cst_11 {dimension_numbers = #tpu.dot_dimension_numbers<[2], [2], [1], [1], [0, 0, 0, 1, 1, 1], [0], [0]>} : vector<4x8x8xbf16>, vector<4x16x8xbf16>, vector<4x8x16xf32> -> vector<4x8x16xf32>
    "tpu.trace_stop"() : () -> ()
    %c0_12 = arith.constant 0 : index
    %c0_13 = arith.constant 0 : index
    %c0_14 = arith.constant 0 : index
    %17 = vector.load %arg4[%c0_12, %c0_13, %c0_14] : memref<1x1x16xi8, #tpu.memory_space<vmem>>, vector<1x1x16xi8>
    %18 = vector.shape_cast %17 : vector<1x1x16xi8> to vector<1x16xi8>
    %c0_i8 = arith.constant 0 : i8
    %19 = vector.broadcast %c0_i8 : i8 to vector<1x16xi8>
    %20 = arith.cmpi ne, %18, %19 : vector<1x16xi8>
    %21 = vector.shape_cast %20 : vector<1x16xi1> to vector<1x1x16xi1>
    %cst_15 = arith.constant -1.000000e+09 : f32
    %22 = vector.shape_cast %21 : vector<1x1x16xi1> to vector<1x1x16xi1>
    %23 = vector.broadcast %22 : vector<1x1x16xi1> to vector<4x8x16xi1>
    %24 = vector.broadcast %cst_15 : f32 to vector<4x8x16xf32>
    %25 = arith.select %23, %24, %16 : vector<4x8x16xi1>, vector<4x8x16xf32>
    %cst_16 = arith.constant dense<0xFF800000> : vector<4x8xf32>
    %26 = vector.multi_reduction <maximumf>, %25, %cst_16 [2] : vector<4x8x16xf32> to vector<4x8xf32>
    %27 = vector.shape_cast %26 : vector<4x8xf32> to vector<4x8x1xf32>
    %28 = vector.broadcast %27 : vector<4x8x1xf32> to vector<4x8x16xf32>
    %29 = arith.subf %25, %28 : vector<4x8x16xf32>
    %30 = math.exp %29 : vector<4x8x16xf32>
    %cst_17 = arith.constant dense<0.000000e+00> : vector<4x8xf32>
    %31 = vector.multi_reduction <add>, %30, %cst_17 [2] : vector<4x8x16xf32> to vector<4x8xf32>
    %32 = vector.shape_cast %31 : vector<4x8xf32> to vector<4x8x1xf32>
    %33 = tpu.reciprocal %32 {approx = true} : vector<4x8x1xf32> -> vector<4x8x1xf32>
    %34 = vector.broadcast %33 : vector<4x8x1xf32> to vector<4x8x16xf32>
    %35 = arith.mulf %30, %34 : vector<4x8x16xf32>
    %36 = arith.truncf %35 : vector<4x8x16xf32> to vector<4x8x16xbf16>
    %c0_18 = arith.constant 0 : index
    %c0_19 = arith.constant 0 : index
    %c0_20 = arith.constant 0 : index
    %37 = vector.load %arg13[%c0_18, %c0_19, %c0_20] : memref<4x16x8xbf16, #tpu.memory_space<vmem>>, vector<4x16x8xbf16>
    "tpu.trace_start"() <{level = 10 : i32, message = "hqk,hkd->hqd"}> : () -> ()
    %cst_21 = arith.constant dense<0.000000e+00> : vector<4x8x8xf32>
    %38 = tpu.matmul %36, %37, %cst_21 {dimension_numbers = #tpu.dot_dimension_numbers<[2], [1], [1], [2], [0, 0, 0, 1, 1, 2], [0], [0]>} : vector<4x8x16xbf16>, vector<4x16x8xbf16>, vector<4x8x8xf32> -> vector<4x8x8xf32>
    "tpu.trace_stop"() : () -> ()
    %39 = tpu.transpose %38, [1, 0, 2] : vector<4x8x8xf32> -> vector<8x4x8xf32>
    %40 = vector.shape_cast %39 : vector<8x4x8xf32> to vector<8x32xf32>
    %41 = arith.truncf %40 : vector<8x32xf32> to vector<8x32xbf16>
    %c0_22 = arith.constant 0 : index
    %c0_23 = arith.constant 0 : index
    %c0_24 = arith.constant 0 : index
    %42 = vector.load %arg11[%c0_22, %c0_23, %c0_24] : memref<1x8x32xbf16, #tpu.memory_space<vmem>>, vector<1x8x32xbf16>
    %43 = vector.shape_cast %42 : vector<1x8x32xbf16> to vector<8x32xbf16>
    %44 = vector.shape_cast %41 : vector<8x32xbf16> to vector<1x8x32xbf16>
    tpu.vector_store %arg11[%c0_22, %c0_23, %c0_24], %44 {strides = array<i32>} : memref<1x8x32xbf16, #tpu.memory_space<vmem>>, vector<1x8x32xbf16>,
    return
  }
  func.func @transform_0(%arg0: i32, %arg1: i32) -> (i32, i32, i32) {
    %c0_i32 = arith.constant 0 : i32
    %c0_i32_0 = arith.constant 0 : i32
    return %arg0, %arg1, %c0_i32 : i32, i32, i32
  }
  func.func @transform_1(%arg0: i32, %arg1: i32) -> (i32, i32, i32) {
    %c0_i32 = arith.constant 0 : i32
    %c0_i32_0 = arith.constant 0 : i32
    %c0_i32_1 = arith.constant 0 : i32
    return %arg0, %c0_i32, %c0_i32_0 : i32, i32, i32
  }
  func.func @transform_2(%arg0: i32, %arg1: i32) -> (i32, i32, i32) {
    %c0_i32 = arith.constant 0 : i32
    %c0_i32_0 = arith.constant 0 : i32
    %c0_i32_1 = arith.constant 0 : i32
    return %arg0, %c0_i32, %c0_i32_0 : i32, i32, i32
  }
  func.func @transform_3(%arg0: i32, %arg1: i32) -> (i32, i32) {
    %c0_i32 = arith.constant 0 : i32
    %c0_i32_0 = arith.constant 0 : i32
    %c0_i32_1 = arith.constant 0 : i32
    return %c0_i32, %c0_i32_0 : i32, i32
  }
  func.func @transform_4(%arg0: i32, %arg1: i32) -> (i32, i32) {
    %c0_i32 = arith.constant 0 : i32
    %c0_i32_0 = arith.constant 0 : i32
    %c0_i32_1 = arith.constant 0 : i32
    return %c0_i32, %c0_i32_0 : i32, i32
  }
  func.func @transform_5(%arg0: i32, %arg1: i32) -> (i32, i32) {
    %c0_i32 = arith.constant 0 : i32
    %c0_i32_0 = arith.constant 0 : i32
    %c0_i32_1 = arith.constant 0 : i32
    return %c0_i32, %c0_i32_0 : i32, i32
  }
  func.func @transform_6(%arg0: i32, %arg1: i32) -> (i32, i32) {
    %c0_i32 = arith.constant 0 : i32
    %c0_i32_0 = arith.constant 0 : i32
    %c0_i32_1 = arith.constant 0 : i32
    return %c0_i32, %c0_i32_0 : i32, i32
  }
  func.func @transform_7(%arg0: i32, %arg1: i32) -> (i32, i32) {
    %c0_i32 = arith.constant 0 : i32
    %c0_i32_0 = arith.constant 0 : i32
    %c0_i32_1 = arith.constant 0 : i32
    return %c0_i32, %c0_i32_0 : i32, i32
  }
  func.func @transform_8(%arg0: i32, %arg1: i32) -> (i32, i32) {
    %c0_i32 = arith.constant 0 : i32
    %c0_i32_0 = arith.constant 0 : i32
    %c0_i32_1 = arith.constant 0 : i32
    return %c0_i32, %c0_i32_0 : i32, i32
  }
  func.func @transform_9(%arg0: i32, %arg1: i32) -> (i32, i32, i32) {
    %c0_i32 = arith.constant 0 : i32
    %c0_i32_0 = arith.constant 0 : i32
    return %arg0, %arg1, %c0_i32 : i32, i32, i32
  }
}

module attributes {stable_mosaic.version = 11 : i64} {
  func.func @_mha_kernel(%arg0: i32, %arg1: i32, %arg2: memref<1x8x32xbf16, #tpu.memory_space<vmem>>, %arg3: memref<1x16x32xbf16, #tpu.memory_space<vmem>>, %arg4: memref<1x1x16xi8, #tpu.memory_space<vmem>>, %arg5: memref<32x32xbf16, #tpu.memory_space<vmem>>, %arg6: memref<1x32xf32, #tpu.memory_space<vmem>>, %arg7: memref<32x32xbf16, #tpu.memory_space<vmem>>, %arg8: memref<1x32xf32, #tpu.memory_space<vmem>>, %arg9: memref<32x32xbf16, #tpu.memory_space<vmem>>, %arg10: memref<1x32xf32, #tpu.memory_space<vmem>>, %arg11: memref<1x8x32xbf16, #tpu.memory_space<vmem>>, %arg12: memref<4x16x8xbf16, #tpu.memory_space<vmem>>, %arg13: memref<4x16x8xbf16, #tpu.memory_space<vmem>>) attributes {dimension_semantics = [#tpu.dimension_semantics<parallel>, #tpu.dimension_semantics<arbitrary>], iteration_bounds = array<i64: 2, 2>, scalar_prefetch = 0 : i64, scratch_operands = 2 : i64, tpu.core_type = #tpu.core_type<tc>, window_params = [{transform_indices = @transform_0, window_bounds = array<i64: 1, 8, 32>}, {transform_indices = @transform_1, window_bounds = array<i64: 1, 16, 32>}, {transform_indices = @transform_2, window_bounds = array<i64: 1, 1, 16>}, {pipeline_mode = #tpu.pipeline_mode<synchronous>, transform_indices = @transform_3, window_bounds = array<i64: 32, 32>}, {pipeline_mode = #tpu.pipeline_mode<synchronous>, transform_indices = @transform_4, window_bounds = array<i64: 1, 32>}, {pipeline_mode = #tpu.pipeline_mode<synchronous>, transform_indices = @transform_5, window_bounds = array<i64: 32, 32>}, {pipeline_mode = #tpu.pipeline_mode<synchronous>, transform_indices = @transform_6, window_bounds = array<i64: 1, 32>}, {pipeline_mode = #tpu.pipeline_mode<synchronous>, transform_indices = @transform_7, window_bounds = array<i64: 32, 32>}, {pipeline_mode = #tpu.pipeline_mode<synchronous>, transform_indices = @transform_8, window_bounds = array<i64: 1, 32>}, {transform_indices = @transform_9, window_bounds = array<i64: 1, 8, 32>}]} {
    %c0_i32 = arith.constant 0 : i32
    %0 = arith.cmpi eq, %arg1, %c0_i32 : i32
    %1 = arith.extui %0 : i1 to i32
    %c0_i32_0 = arith.constant 0 : i32
    %2 = arith.cmpi ne, %1, %c0_i32_0 : i32
    scf.if %2 {
      %c0_25 = arith.constant 0 : index
      %c0_26 = arith.constant 0 : index
      %c0_27 = arith.constant 0 : index
      %45 = vector.load %arg3[%c0_25, %c0_26, %c0_27] : memref<1x16x32xbf16, #tpu.memory_space<vmem>>, vector<1x16x32xbf16>
      %46 = vector.shape_cast %45 : vector<1x16x32xbf16> to vector<16x32xbf16>
      %c0_28 = arith.constant 0 : index
      %c0_29 = arith.constant 0 : index
      %47 = vector.load %arg7[%c0_28, %c0_29] : memref<32x32xbf16, #tpu.memory_space<vmem>>, vector<32x32xbf16>
      %cst_30 = arith.constant dense<0.000000e+00> : vector<16x32xf32>
      %48 = tpu.matmul %46, %47, %cst_30 {dimension_numbers = #tpu.dot_dimension_numbers<[1], [0], [0], [1], [0, 0, 1, 1], [], []>} : vector<16x32xbf16>, vector<32x32xbf16>, vector<16x32xf32> -> vector<16x32xf32>
      %c0_31 = arith.constant 0 : index
      %c0_32 = arith.constant 0 : index
      %49 = vector.load %arg8[%c0_31, %c0_32] : memref<1x32xf32, #tpu.memory_space<vmem>>, vector<1x32xf32>
      %50 = vector.broadcast %49 : vector<1x32xf32> to vector<16x32xf32>
      %51 = arith.addf %48, %50 : vector<16x32xf32>
      %c0_33 = arith.constant 0 : index
      %c0_34 = arith.constant 0 : index
      %52 = vector.load %arg9[%c0_33, %c0_34] : memref<32x32xbf16, #tpu.memory_space<vmem>>, vector<32x32xbf16>
      %cst_35 = arith.constant dense<0.000000e+00> : vector<16x32xf32>
      %53 = tpu.matmul %46, %52, %cst_35 {dimension_numbers = #tpu.dot_dimension_numbers<[1], [0], [0], [1], [0, 0, 1, 1], [], []>} : vector<16x32xbf16>, vector<32x32xbf16>, vector<16x32xf32> -> vector<16x32xf32>
      %c0_36 = arith.constant 0 : index
      %c0_37 = arith.constant 0 : index
      %54 = vector.load %arg10[%c0_36, %c0_37] : memref<1x32xf32, #tpu.memory_space<vmem>>, vector<1x32xf32>
      %55 = vector.broadcast %54 : vector<1x32xf32> to vector<16x32xf32>
      %56 = arith.addf %53, %55 : vector<16x32xf32>
      %57 = vector.shape_cast %51 : vector<16x32xf32> to vector<16x4x8xf32>
      %58 = tpu.transpose %57, [1, 0, 2] : vector<16x4x8xf32> -> vector<4x16x8xf32>
      %59 = vector.shape_cast %56 : vector<16x32xf32> to vector<16x4x8xf32>
      %60 = tpu.transpose %59, [1, 0, 2] : vector<16x4x8xf32> -> vector<4x16x8xf32>
      %61 = arith.truncf %58 : vector<4x16x8xf32> to vector<4x16x8xbf16>
      %c0_38 = arith.constant 0 : index
      %c0_39 = arith.constant 0 : index
      %c0_40 = arith.constant 0 : index
      %62 = vector.load %arg12[%c0_38, %c0_39, %c0_40] : memref<4x16x8xbf16, #tpu.memory_space<vmem>>, vector<4x16x8xbf16>
      tpu.vector_store %arg12[%c0_38, %c0_39, %c0_40], %61 {strides = array<i32>} : memref<4x16x8xbf16, #tpu.memory_space<vmem>>, vector<4x16x8xbf16>,
      %63 = arith.truncf %60 : vector<4x16x8xf32> to vector<4x16x8xbf16>
      %c0_41 = arith.constant 0 : index
      %c0_42 = arith.constant 0 : index
      %c0_43 = arith.constant 0 : index
      %64 = vector.load %arg13[%c0_41, %c0_42, %c0_43] : memref<4x16x8xbf16, #tpu.memory_space<vmem>>, vector<4x16x8xbf16>
      tpu.vector_store %arg13[%c0_41, %c0_42, %c0_43], %63 {strides = array<i32>} : memref<4x16x8xbf16, #tpu.memory_space<vmem>>, vector<4x16x8xbf16>,
    } else {
    }
    %c0 = arith.constant 0 : index
    %c0_1 = arith.constant 0 : index
    %c0_2 = arith.constant 0 : index
    %3 = vector.load %arg2[%c0, %c0_1, %c0_2] : memref<1x8x32xbf16, #tpu.memory_space<vmem>>, vector<1x8x32xbf16>
    %4 = vector.shape_cast %3 : vector<1x8x32xbf16> to vector<8x32xbf16>
    %c0_3 = arith.constant 0 : index
    %c0_4 = arith.constant 0 : index
    %5 = vector.load %arg5[%c0_3, %c0_4] : memref<32x32xbf16, #tpu.memory_space<vmem>>, vector<32x32xbf16>
    %cst = arith.constant dense<0.000000e+00> : vector<8x32xf32>
    %6 = tpu.matmul %4, %5, %cst {dimension_numbers = #tpu.dot_dimension_numbers<[1], [0], [0], [1], [0, 0, 1, 1], [], []>} : vector<8x32xbf16>, vector<32x32xbf16>, vector<8x32xf32> -> vector<8x32xf32>
    %c0_5 = arith.constant 0 : index
    %c0_6 = arith.constant 0 : index
    %7 = vector.load %arg6[%c0_5, %c0_6] : memref<1x32xf32, #tpu.memory_space<vmem>>, vector<1x32xf32>
    %8 = vector.broadcast %7 : vector<1x32xf32> to vector<8x32xf32>
    %9 = arith.addf %6, %8 : vector<8x32xf32>
    %cst_7 = arith.constant 0.353553385 : f32
    %10 = vector.broadcast %cst_7 : f32 to vector<8x32xf32>
    %11 = arith.mulf %9, %10 : vector<8x32xf32>
    %12 = vector.shape_cast %11 : vector<8x32xf32> to vector<8x4x8xf32>
    %13 = tpu.transpose %12, [1, 0, 2] : vector<8x4x8xf32> -> vector<4x8x8xf32>
    %14 = arith.truncf %13 : vector<4x8x8xf32> to vector<4x8x8xbf16>
    %c0_8 = arith.constant 0 : index
    %c0_9 = arith.constant 0 : index
    %c0_10 = arith.constant 0 : index
    %15 = vector.load %arg12[%c0_8, %c0_9, %c0_10] : memref<4x16x8xbf16, #tpu.memory_space<vmem>>, vector<4x16x8xbf16>
    "tpu.trace_start"() <{level = 10 : i32, message = "hqd,hkd->hqk"}> : () -> ()
    %cst_11 = arith.constant dense<0.000000e+00> : vector<4x8x16xf32>
    %16 = tpu.matmul %14, %15, %cst_11 {dimension_numbers = #tpu.dot_dimension_numbers<[2], [2], [1], [1], [0, 0, 0, 1, 1, 1], [0], [0]>} : vector<4x8x8xbf16>, vector<4x16x8xbf16>, vector<4x8x16xf32> -> vector<4x8x16xf32>
    "tpu.trace_stop"() : () -> ()
    %c0_12 = arith.constant 0 : index
    %c0_13 = arith.constant 0 : index
    %c0_14 = arith.constant 0 : index
    %17 = vector.load %arg4[%c0_12, %c0_13, %c0_14] : memref<1x1x16xi8, #tpu.memory_space<vmem>>, vector<1x1x16xi8>
    %18 = vector.shape_cast %17 : vector<1x1x16xi8> to vector<1x16xi8>
    %c0_i8 = arith.constant 0 : i8
    %19 = vector.broadcast %c0_i8 : i8 to vector<1x16xi8>
    %20 = arith.cmpi ne, %18, %19 : vector<1x16xi8>
    %21 = vector.shape_cast %20 : vector<1x16xi1> to vector<1x1x16xi1>
    %cst_15 = arith.constant -1.000000e+09 : f32
    %22 = vector.shape_cast %21 : vector<1x1x16xi1> to vector<1x1x16xi1>
    %23 = vector.broadcast %22 : vector<1x1x16xi1> to vector<4x8x16xi1>
    %24 = vector.broadcast %cst_15 : f32 to vector<4x8x16xf32>
    %25 = arith.select %23, %24, %16 : vector<4x8x16xi1>, vector<4x8x16xf32>
    %cst_16 = arith.constant dense<0xFF800000> : vector<4x8xf32>
    %26 = vector.multi_reduction <maximumf>, %25, %cst_16 [2] : vector<4x8x16xf32> to vector<4x8xf32>
    %27 = vector.shape_cast %26 : vector<4x8xf32> to vector<4x8x1xf32>
    %28 = vector.broadcast %27 : vector<4x8x1xf32> to vector<4x8x16xf32>
    %29 = arith.subf %25, %28 : vector<4x8x16xf32>
    %30 = math.exp %29 : vector<4x8x16xf32>
    %cst_17 = arith.constant dense<0.000000e+00> : vector<4x8xf32>
    %31 = vector.multi_reduction <add>, %30, %cst_17 [2] : vector<4x8x16xf32> to vector<4x8xf32>
    %32 = vector.shape_cast %31 : vector<4x8xf32> to vector<4x8x1xf32>
    %33 = tpu.reciprocal %32 {approx = true} : vector<4x8x1xf32> -> vector<4x8x1xf32>
    %34 = vector.broadcast %33 : vector<4x8x1xf32> to vector<4x8x16xf32>
    %35 = arith.mulf %30, %34 : vector<4x8x16xf32>
    %36 = arith.truncf %35 : vector<4x8x16xf32> to vector<4x8x16xbf16>
    %c0_18 = arith.constant 0 : index
    %c0_19 = arith.constant 0 : index
    %c0_20 = arith.constant 0 : index
    %37 = vector.load %arg13[%c0_18, %c0_19, %c0_20] : memref<4x16x8xbf16, #tpu.memory_space<vmem>>, vector<4x16x8xbf16>
    "tpu.trace_start"() <{level = 10 : i32, message = "hqk,hkd->hqd"}> : () -> ()
    %cst_21 = arith.constant dense<0.000000e+00> : vector<4x8x8xf32>
    %38 = tpu.matmul %36, %37, %cst_21 {dimension_numbers = #tpu.dot_dimension_numbers<[2], [1], [1], [2], [0, 0, 0, 1, 1, 2], [0], [0]>} : vector<4x8x16xbf16>, vector<4x16x8xbf16>, vector<4x8x8xf32> -> vector<4x8x8xf32>
    "tpu.trace_stop"() : () -> ()
    %39 = tpu.transpose %38, [1, 0, 2] : vector<4x8x8xf32> -> vector<8x4x8xf32>
    %40 = vector.shape_cast %39 : vector<8x4x8xf32> to vector<8x32xf32>
    %41 = arith.truncf %40 : vector<8x32xf32> to vector<8x32xbf16>
    %c0_22 = arith.constant 0 : index
    %c0_23 = arith.constant 0 : index
    %c0_24 = arith.constant 0 : index
    %42 = vector.load %arg11[%c0_22, %c0_23, %c0_24] : memref<1x8x32xbf16, #tpu.memory_space<vmem>>, vector<1x8x32xbf16>
    %43 = vector.shape_cast %42 : vector<1x8x32xbf16> to vector<8x32xbf16>
    %44 = vector.shape_cast %41 : vector<8x32xbf16> to vector<1x8x32xbf16>
    tpu.vector_store %arg11[%c0_22, %c0_23, %c0_24], %44 {strides = array<i32>} : memref<1x8x32xbf16, #tpu.memory_space<vmem>>, vector<1x8x32xbf16>,
    return
  }
  func.func @transform_0(%arg0: i32, %arg1: i32) -> (i32, i32, i32) {
    %c0_i32 = arith.constant 0 : i32
    %c0_i32_0 = arith.constant 0 : i32
    return %arg0, %arg1, %c0_i32 : i32, i32, i32
  }
  func.func @transform_1(%arg0: i32, %arg1: i32) -> (i32, i32, i32) {
    %c0_i32 = arith.constant 0 : i32
    %c0_i32_0 = arith.constant 0 : i32
    %c0_i32_1 = arith.constant 0 : i32
    return %arg0, %c0_i32, %c0_i32_0 : i32, i32, i32
  }
  func.func @transform_2(%arg0: i32, %arg1: i32) -> (i32, i32, i32) {
    %c0_i32 = arith.constant 0 : i32
    %c0_i32_0 = arith.constant 0 : i32
    %c0_i32_1 = arith.constant 0 : i32
    return %arg0, %c0_i32, %c0_i32_0 : i32, i32, i32
  }
  func.func @transform_3(%arg0: i32, %arg1: i32) -> (i32, i32) {
    %c0_i32 = arith.constant 0 : i32
    %c0_i32_0 = arith.constant 0 : i32
    %c0_i32_1 = arith.constant 0 : i32
    return %c0_i32, %c0_i32_0 : i32, i32
  }
  func.func @transform_4(%arg0: i32, %arg1: i32) -> (i32, i32) {
    %c0_i32 = arith.constant 0 : i32
    %c0_i32_0 = arith.constant 0 : i32
    %c0_i32_1 = arith.constant 0 : i32
    return %c0_i32, %c0_i32_0 : i32, i32
  }
  func.func @transform_5(%arg0: i32, %arg1: i32) -> (i32, i32) {
    %c0_i32 = arith.constant 0 : i32
    %c0_i32_0 = arith.constant 0 : i32
    %c0_i32_1 = arith.constant 0 : i32
    return %c0_i32, %c0_i32_0 : i32, i32
  }
  func.func @transform_6(%arg0: i32, %arg1: i32) -> (i32, i32) {
    %c0_i32 = arith.constant 0 : i32
    %c0_i32_0 = arith.constant 0 : i32
    %c0_i32_1 = arith.constant 0 : i32
    return %c0_i32, %c0_i32_0 : i32, i32
  }
  func.func @transform_7(%arg0: i32, %arg1: i32) -> (i32, i32) {
    %c0_i32 = arith.constant 0 : i32
    %c0_i32_0 = arith.constant 0 : i32
    %c0_i32_1 = arith.constant 0 : i32
    return %c0_i32, %c0_i32_0 : i32, i32
  }
  func.func @transform_8(%arg0: i32, %arg1: i32) -> (i32, i32) {
    %c0_i32 = arith.constant 0 : i32
    %c0_i32_0 = arith.constant 0 : i32
    %c0_i32_1 = arith.constant 0 : i32
    return %c0_i32, %c0_i32_0 : i32, i32
  }
  func.func @transform_9(%arg0: i32, %arg1: i32) -> (i32, i32, i32) {
    %c0_i32 = arith.constant 0 : i32
    %c0_i32_0 = arith.constant 0 : i32
    return %arg0, %arg1, %c0_i32 : i32, i32, i32
  }
}

</mosaic_0001>

<bundles_post_ra>
// kernel: tpu_custom_call.1
= control target key start
LH: loop header
LB: loop body
LE: loop exit
PB: predicated region body
PF: predicated region fallthrough
CT: control target
= control target key end

     0   :  { %s3116_s0 = inlined_call_operand.hbm [shape: bf16[2,16,32], index: 0, kind: input, shape index: {}]   ;;  %s3117_s1 = inlined_call_operand.hbm [shape: bf16[2,16,32], index: 1, kind: input, shape index: {}]   ;;  %s3118_s2 = inlined_call_operand.vmem [shape: s8[2,1,16], index: 2, kind: input, shape index: {}]   ;;  %s3119_s3 = inlined_call_operand.hbm [shape: bf16[32,32], index: 3, kind: input, shape index: {}]   ;;  %s3120_s4 = inlined_call_operand.vmem [shape: f32[1,32], index: 4, kind: input, shape index: {}]   ;;  %s3121_s5 = inlined_call_operand.hbm [shape: bf16[32,32], index: 5, kind: input, shape index: {}]   ;;  %s3122_s6 = inlined_call_operand.vmem [shape: f32[1,32], index: 6, kind: input, shape index: {}]   ;;  %s3123_s7 = inlined_call_operand.hbm [shape: bf16[32,32], index: 7, kind: input, shape index: {}]   ;;  %s3124_s8 = inlined_call_operand.vmem [shape: f32[1,32], index: 8, kind: input, shape index: {}]   ;;  %s3125_s9 = inlined_call_operand.hbm [shape: bf16[2,16,32], index: 9, kind: output, shape index: {}]  }
   0x1   :  { %3139 = sst [smem:[#allocation28_spill]] %s3116_s0 }
   0x2   :  { %3140 = sst [smem:[#allocation29_spill]] %s3119_s3 }
   0x3   :  { %3141 = sst [smem:[#allocation30_spill]] %s3120_s4 }
   0x4   :  { %3142 = sst [smem:[#allocation31_spill]] %s3121_s5 }
   0x5   :  { %3143 = sst [smem:[#allocation32_spill]] %s3122_s6 }
   0x6   :  { %3144 = sst [smem:[#allocation33_spill]] %s3123_s7 }
   0x7   :  { %3145 = sst [smem:[#allocation34_spill]] %s3124_s8 }
   0x8   :  { %3146 = sst [smem:[#allocation35_spill]] %s3125_s9 }
   0x9   :  { %14 = vsyncpa [#allocation5], 0 }
   0xa   :  { %16 = vsyncpa [#allocation5 + $0x1], 0 }
   0xb   :  { %17 = vsyncpa [#allocation8], 0 }
   0xc   :  { %19 = vsyncpa [#allocation8 + $0x1], 0 }
   0xd   :  { %20 = vsyncpa [#allocation11], 0 }
   0xe   :  { %21 = vsyncpa [#allocation6], 0 }
   0xf   :  { %23 = vsyncpa [#allocation6 + $0x1], 0  ;;  %s2462_s30 = smov 0   ;;  %s2464_s10 = smov 0  }
  0x10   :  { %s2466_s11 = smov 0   ;;  %s2468_s12 = smov 0  }
  0x11   :  { %s2470_s13 = smov 0   ;;  %s2472_s14 = smov 0  }
  0x12   :  { %s2474_s15 = smov 0   ;;  %s2476_s16 = smov 0  }
  0x13   :  { %s2478_s17 = smov 0   ;;  %s2480_s18 = smov 0  }
  0x14   :  { %s2482_s19 = smov 0  }
  0x15 LB: > { %3147 = sst [smem:[#allocation19_spill]] %s2363_s12  ;;  %s2518_s20 = sadd.s32 4294967295, %s2391_s19   ;;  %s2391_s19 = sphi %s2482_s19, %s29_s19   ;;  %s2387_s18 = sphi %s2480_s18, %s3197_s18   ;;  %s2383_s17 = sphi %s2478_s17, %s3189_s17   ;;  %s2379_s16 = sphi %s2476_s16, %s3196_s16   ;;  %s2375_s15 = sphi %s2474_s15, %s3188_s15   ;;  %s2371_s14 = sphi %s2472_s14, %s3187_s14   ;;  %s2367_s13 = sphi %s2470_s13, %s3195_s13   ;;  %s2363_s12 = sphi %s2468_s12, %s3194_s12   ;;  %s2359_s11 = sphi %s2466_s11, %s3193_s11   ;;  %s2355_s10 = sphi %s2464_s10, %s3192_s10   ;;  %s2351_s30 = sphi %s2462_s30, %s3191_s30  }
  0x16   : > { %3148 = sst [smem:[#allocation20_spill]] %s2371_s14  ;;  %p1793_p0 = scmp.ge.s32.totalorder %s2391_s19, 1 }
  0x17   : > { %3149 = sst [smem:[#allocation21_spill]] %s2383_s17  ;;  %p3131_p1 = scmp.eq.s32.totalorder %s2518_s20, 0 }
  0x18   : > { %p280_p2 = scmp.lt.s32.totalorder %s2391_s19, 5  ;;  %s3150_s3 = sld [smem:[#allocation29_spill]] }
  0x19   : > { %s2393_s25 = smov [#allocation9]   ;;  %s3153_s5 = sld [smem:[#allocation31_spill]] }
  0x1a   : > { %p2526_p3 = pnand %p1793_p0, %p280_p2  ;;  %s293_s26 = sshll.u32 %s2393_s25, 4  ;;  %s294_s26 = int_to_ptr.vmem [resolvable:$true] %s293_s26 }
  0x1b   : > { %s3127_s22 = smov 64   ;;  %s2396_s25 = smov [#allocation10]  }
  0x1c   : > { %p1922_p4 = pneg %p2526_p3  ;;  %s310_s28 = sshll.u32 %s2396_s25, 4  ;;  %s311_s28 = int_to_ptr.vmem [resolvable:$true] %s310_s28 }
  0x1d   : > { %s3154_s7 = sld [smem:[#allocation33_spill]]  ;;  %s1792_s9 = sadd.s32 4294967294, %s2391_s19  }
  0x1e   : > { %s291_s23 = sshll.u32 %s3150_s3, 4  ;;  %p2534_p5 = pnand %p1922_p4, %p3131_p1  ;;  %s292_s23 = int_to_ptr.hbm [resolvable:$true] %s291_s23 }
  0x1f   : > { %s308_s21 = sshll.u32 %s3153_s5, 4  ;;  %s3128_s3 = smov 4   ;;  %s309_s21 = int_to_ptr.hbm [resolvable:$true] %s308_s21 }
  0x20   : > { %1925 = dma.hbm_to_vmem [thread:$0]  (!%p2534_p5), %s292_s23, 256, %s294_s26, [#allocation8], %s3127_s22, %s3127_s22, %s3128_s3  }
  0x21   : > { %1928 = dma.hbm_to_vmem [thread:$0]  (!%p2534_p5), %s309_s21, 256, %s311_s28, [#allocation11], %s3127_s22, %s3127_s22, %s3128_s3  }
  0x22   : > { %s2397_s23 = smov [#allocation12]   ;;  %s38_s25 = sadd.s32 1, %s2383_s17 }
  0x23   : > { %s325_s5 = sshll.u32 %s3154_s7, 4  ;;  %s327_s26 = sshll.u32 %s2397_s23, 4  ;;  %s326_s5 = int_to_ptr.hbm [resolvable:$true] %s325_s5  ;;  %s328_s26 = int_to_ptr.vmem [resolvable:$true] %s327_s26 }
  0x24   : > { %1931 = dma.hbm_to_vmem [thread:$0]  (!%p2534_p5), %s326_s5, 256, %s328_s26, [#allocation11], %s3127_s22, %s3127_s22, %s3128_s3  }
  0x25   : > { %s41_s29 = sadd.s32 1, %s2387_s18  ;;  %p39_p6 = scmp.ge.s32.totalorder %s38_s25, 2 }
  0x26   : > { %s50_s21 = sadd.s32 1, %s2371_s14  ;;  %p57_p7 = scmp.ne.s32.totalorder %s2371_s14, %s2367_s13 }
  0x27   : > { %p58_p8 = scmp.eq.s32.totalorder %s2391_s19, 0  ;;  %s3199_s25 = smov (%p39_p6, %s38_s25), 0 }
  0x28   : > { %3155 = sst [smem:[#allocation22_spill]] %s3199_s25  ;;  %s3201_s29 = smov (!%p39_p6, %s41_s29), %s2387_s18 }
  0x29   : > { %s46_s5 = ssub.s32 %s2383_s17, %s3199_s25  ;;  %p2574_p9 = por %p58_p8, %p57_p7 }
  0x2a   : > { %p43_p10 = scmp.ge.s32.totalorder %s3201_s29, 2  ;;  %p3130_p11 = scmp.ne.s32.totalorder %s2367_s13, %s2363_s12 }
  0x2b   : > { %s76_s28 = sadd.s32 1, %s2359_s11  ;;  %p83_p12 = scmp.ne.s32.totalorder %s2359_s11, %s2355_s10 }
  0x2c   : > { %s3203_s29 = smov (%p43_p10, %s3201_s29), 0  ;;  %p2590_p13 = por %p3131_p1, %p3130_p11 }
  0x2d   : > { %3157 = sst [smem:[#allocation23_spill]] %s3203_s29  ;;  %p2594_p0 = por %p83_p12, %p58_p8 }
  0x2e   : > { %s45_s22 = ssub.s32 %s2387_s18, %s3203_s29  ;;  %p89_p2 = scmp.ne.s32.totalorder %s2355_s10, %s2351_s30 }
  0x2f   : > { %s47_s3 = sor.u32 %s46_s5, %s45_s22  ;;  %p74_p4 = scmp.eq.s32.totalorder %s45_s22, 0 }
  0x30   : > { %p48_p5 = scmp.eq.s32.totalorder %s47_s3, 0  ;;  %p2604_p6 = por %p89_p2, %p3131_p1 }
  0x31   : > { %s2609_s25 = scalar_select %p74_p4, %s2359_s11, %s76_s28  }
  0x32   : > { %s2612_s4 = scalar_select %p48_p5, %s2371_s14, %s50_s21  }
  0x33   : > { %3161 = sst [smem:[#allocation24_spill]] %s2609_s25  ;;  %p267_p8 = scmp.eq.s32.totalorder %s2518_s20, 3 }
  0x34   : > { %3162 = sst [smem:[#allocation25_spill]] %s2612_s4  ;;  %p273_p10 = scmp.eq.s32.totalorder %s1792_s9, 3 }
  0x35   : > { %p1946_p12 = scmp.lt.s32.totalorder %s2391_s19, 4  ;;  %s344_s30 = sand.u32 1, %s2371_s14  }
  0x36   : > { %p2620_p11 = por %p267_p8, %p57_p7  ;;  %p3165_p2 = scmp.ne.s32.totalorder %s2367_s13, %s2363_s12 }
  0x37   : > { %s1798_s21 = sshll.u32 %s344_s30, 2  ;;  %s1799_s5 = sshll.u32 %s2387_s18, 1 }
  0x38   : > { %s3163_s3 = scalar_select %p2620_p11, 1, 0 }
  0x39   : > { %p2627_p1 = por %p273_p10, %p3165_p2  ;;  %s352_s28 = sadd.s32 %s2383_s17, %s1799_s5 }
  0x3a   : > { %3164 = sst [smem:[#allocation26_spill]] %s3163_s3  ;;  %s348_s29 = scalar_lea.vmem [#allocation4], %s1798_s21 }
  0x3b   : > { %s3166_s22 = scalar_select %p2627_p1, 1, 0 }
  0x3c   : > { %s358_s9 = sshll.u32 %s348_s29, 4  ;;  %s1800_s4 = sshll.u32 %s352_s28, 2  ;;  %s359_s9 = int_to_ptr.vmem [resolvable:$true] %s358_s9 }
  0x3d   : > { %3167 = sst [smem:[#allocation27_spill]] %s3166_s22  ;;  %p1933_p7 = pnand %p1946_p12, %p2574_p9 }
  0x3e   : > { %s3168_s0 = sld [smem:[#allocation28_spill]]  ;;  %p2644_p4 = pnand %p1946_p12, %p2594_p0 }
  0x3f   : > { %s345_s21 = scalar_lea.sflag [#allocation5], %s344_s30  ;;  %s365_s29 = sand.u32 1, %s2391_s19  }
  0x40   : > { %s367_s5 = sand.u32 1, %s2359_s11   ;;  %s1888_s17 = sshll.u32 %s2387_s18, 3 }
  0x41   : > { %s1801_s28 = sshll.u32 %s367_s5, 3  ;;  %s374_s25 = scalar_lea.hbm %s3117_s1, %s1888_s17 }
  0x42   : > { %s375_s27 = sshll.u32 %s374_s25, 4  ;;  %s3170_s3 = smov 4   ;;  %s376_s27 = int_to_ptr.hbm [resolvable:$true] %s375_s27 }
  0x43   : > { %s3171_s8 = smov 64  }
  0x44   : > { %s354_s6 = scalar_lea.hbm %s3168_s0, %s1800_s4  ;;  %s366_s0 = scalar_lea.sflag [#allocation8], %s365_s29 }
  0x45   : > { %s356_s12 = sshll.u32 %s354_s6, 4  ;;  %s369_s6 = scalar_lea.vmem [#allocation7], %s1801_s28  ;;  %s357_s12 = int_to_ptr.hbm [resolvable:$true] %s356_s12 }
  0x46   : > { %1935 = dma.hbm_to_vmem [thread:$0]  (!%p1933_p7), %s357_s12, 64, %s359_s9, %s345_s21  }
  0x47   : > { %s377_s26 = sshll.u32 %s369_s6, 4  ;;  %395 = sbr.rel (%p2526_p3) target bundleno = 1410 (0x582), region = 56  ;;  %s378_s26 = int_to_ptr.vmem [resolvable:$true] %s377_s26 }
  0x48   : > { %1938 = dma.hbm_to_vmem [thread:$0]  (!%p2644_p4), %s376_s27, 128, %s378_s26, %s366_s0, %s3171_s8, %s3171_s8, %s3170_s3  }
  0x49   : > { %s2662_s12 = sand.u32 (!%p2526_p3), 1, %s2367_s13  }
  0x4a   : > { %s1805_s17 = sshll.u32 (!%p2526_p3), %s2662_s12, 2  ;;  %s398_s30 = scalar_lea.sflag (!%p2526_p3), [#allocation5], %s2662_s12 }
  0x4b   : > { %s2666_s9 = scalar_lea.vmem (!%p2526_p3), [#allocation4], %s1805_s17 }
  0x4c   : > { %2330 = dma.done.wait (%p2590_p13), %s398_s30, 64  }
  0x4d   : > { %2332 = vsyncadd (%p2590_p13), %s398_s30, 4294967232  ;;  %s407_s0 = sand.u32 1, %s2518_s20   ;;  %s409_s8 = sand.u32 1, %s2355_s10  }
  0x4e   : > { %s1806_s24 = sshll.u32 %s409_s8, 3  ;;  %s408_s3 = scalar_lea.sflag [#allocation8], %s407_s0 }
  0x4f   : > { %s411_s22 = scalar_lea.vmem [#allocation7], %s1806_s24 }
  0x50   : > { %2334 = dma.done.wait (%p2604_p6), %s408_s3, 128  }
  0x51   : > { %2336 = vsyncadd (%p2604_p6), %s408_s3, 4294967168  ;;  %p3172_p3 = scmp.eq.s32.totalorder %s2518_s20, 0 }
  0x53   : > { %2338 = dma.done.wait (%p3172_p3), [#allocation8], 256   ;;  %p3173_p9 = pmov %p3172_p3 }
  0x54   : > { %p3174_p13 = pmov %p3172_p3 }
  0x55   : > { %2340 = vsyncadd (%p3173_p9), [#allocation8], 4294967040 }
  0x56   : > { %2342 = dma.done.wait (%p3174_p13), [#allocation11], 512   ;;  %p3175_p0 = pmov %p3172_p3 }
  0x57   : > { %p470_p5 = scmp.lt.s32.totalorder %s2379_s16, 1  ;;  %s2694_s5 = scalar_lea.vmem [#allocation13], %s1805_s17 }
  0x58   : > { %2344 = vsyncadd (%p3175_p0), [#allocation11], 4294966784  ;;  %p1811_p6 = scmp.ne.s32.totalorder %s2375_s15, 0 }
  0x59   : > { %s2688_s23 = scalar_select %p470_p5, %s2379_s16, 1 }
  0x5a   : > { %479 = sbr.rel (%p1811_p6) target bundleno = 431 (0x1af), region = 80  ;;  %s3176_s14 = sld [smem:[#allocation34_spill]] (!%p1811_p6) }
  0x5b   : > { %s472_s29 = scalar_lea.vmem %s3118_s2, %s2688_s23  ;;  %s3177_s27 = sld [smem:[#allocation32_spill]] (!%p1811_p6) }
  0x5c   : > { %s2398_s6 = smov (!%p1811_p6), 120   ;;  %s2399_s26 = smov (!%p1811_p6), 112  }
  0x5d   : > { %s2400_s17 = smov (!%p1811_p6), 104  }
  0x5f   : > { %v1891_v0 = vld [vmem:[#allocation10 + $0x8] sm:$0xff]  ;;  %v1893_v1 = vld [vmem:[#allocation12 + $0x8] sm:$0xff]  ;;  %v1890_v2 = vld [vmem:[#allocation10] sm:$0xff]  ;;  %vm507_vm0 = vcmask 261120   ;;  %v2401_v21 = vmov 1983009808  }
  0x60   : > { %517 = vmatpush.bf16.msra.mxu0 %v1891_v0  ;;  %551 = vmatpush.bf16.msra.mxu1 %v1893_v1  ;;  %v1892_v3 = vld [vmem:[#allocation12] sm:$0xff]  ;;  %v1889_v4 = vld [vmem:[%s411_s22] sm:$0xff]  ;;  %v2089_v7 = vld [vmem:[%s3176_s14] ss:$0 sm:$0xff]  ;;  %v585_v22 = vunpack.c.l.s4 %v2401_v21  ;;  %vm580_vm1 = vcmask 1047556   ;;  %vm1048_vm2 = vcmask 60416  }
  0x61   : > { %v2088_v8 = vld [vmem:[%s3177_s27] ss:$0 sm:$0xff]  ;;  %v2402_v36 = vmov 1934713408  }
  0x62   : > { %v2709_v27 = vunpack.c.0.s8 %v585_v22  ;;  %v609_v37 = vunpack.c.l.s4 %v2402_v36 }
  0x64   : > { %518 = vmatpush.bf16.msra.mxu0 %v1890_v2  ;;  %552 = vmatpush.bf16.msra.mxu1 %v1892_v3  ;;  %v2728_v55 = vunpack.c.0.s8 %v609_v37 }
  0x67   : > { %1824 = vmatmul.msk.bf16.vlgmr.msra.gmra.mxu0 %vm507_vm0, %v1889_v4  ;;  %1833 = vmatmul.msk.bf16.vlgmr.msra.gmra.mxu1 %vm507_vm0, %v1889_v4 }
  0xe4   : > { %v520_v5 = vpop.f32.mrf.mxu0  ;;  %v554_v6 = vpop.f32.mrf.mxu1 }
  0xe5   : > { %v2703_v9 = vadd.f32 %v2089_v7, %v554_v6  ;;  %v521_v12 = vadd.f32 %v2088_v8, %v520_v5 }
  0xe7   : > { %v582_v35 = vrot.slane %v521_v12, 4  ;;  %v822_v52 = vrot.slane %v2703_v9, 4 }
  0xec   : > { %v522_v10 = vpop.f32.mrf.mxu0  ;;  %v556_v11 = vpop.f32.mrf.mxu1 }
  0xed   : > { %v523_v13 = vadd.f32 %v2088_v8, %v522_v10  ;;  %v2705_v14 = vadd.f32 %v2089_v7, %v556_v11 }
  0xef   : > { %v2078_v15 = vpack.i.bf16 %v2705_v14, %v2703_v9  ;;  %v2068_v16 = vpack.i.bf16 %v523_v13, %v521_v12  ;;  %v638_v33 = vrot.slane %v523_v13, 4  ;;  %v878_v56 = vrot.slane %v2705_v14, 4 }
  0xf1   : > { %2079 = vrot.lane.b32.xlu2 %v2078_v15, %s2398_s6  ;;  %2069 = vrot.lane.b32.xlu1 %v2068_v16, %s2398_s6 }
  0xf2   : > { %2059 = vrot.lane.b32.xlu0 %v2068_v16, %s2399_s26 }
  0xf9   : > { %2084 = vrot.lane.b32.xlu2 %v2078_v15, %s2400_s17  ;;  %2074 = vrot.lane.b32.xlu1 %v2068_v16, %s2400_s17 }
  0xfa   : > { %2064 = vrot.lane.b32.xlu0 %v2078_v15, %s2399_s26 }
 0x14b   : > { %v2080_v17 = vpop.permute.xlu2 %2079 }
 0x14c   : > { %v2082_v20 = vunpack.i.h.bf16 %v2080_v17  ;;  %v2081_v24 = vunpack.i.l.bf16 %v2080_v17 }
 0x14e   : > { %v890_v26 = vrot.slane %v2082_v20, 4  ;;  %v834_v30 = vrot.slane %v2081_v24, 4 }
 0x153   : > { %v2085_v18 = vpop.permute.xlu2 %2084 }
 0x154   : > { %v2087_v19 = vunpack.i.h.bf16 %v2085_v18  ;;  %v2086_v23 = vunpack.i.l.bf16 %v2085_v18 }
 0x156   : > { %v888_v25 = vrot.slane %v2087_v19, 4  ;;  %v832_v28 = vrot.slane %v2086_v23, 4  ;;  %v891_v29 = vsel %vm580_vm1, %v2087_v19, %v890_v26  ;;  %v835_v38 = vsel %vm580_vm1, %v2086_v23, %v834_v30 }
 0x157   : > { %v2715_v39 = vperm.slane %v891_v29, %v2709_v27  ;;  %v2735_v58 = vperm.slane %v835_v38, %v2709_v27 }
 0x158   : > { %v889_v31 = vsel %vm580_vm1, %v888_v25, %v2082_v20  ;;  %v833_v42 = vsel %vm580_vm1, %v832_v28, %v2081_v24 }
 0x159   : > { %v2719_v43 = vperm.slane %v889_v31, %v2709_v27  ;;  %v2732_v57 = vperm.slane %v833_v42, %v2709_v27  ;;  %v912_v62 = vrot.slane %v2715_v39, 4 }
 0x15b   : > { %v900_v61 = vrot.slane %v2719_v43, 4 }
 0x163   : > { %v2070_v32 = vpop.permute.xlu1 %2069 }
 0x164   : > { %v2060_v34 = vpop.permute.xlu0 %2059  ;;  %v2072_v44 = vunpack.i.h.bf16 %v2070_v32  ;;  %v2071_v45 = vunpack.i.l.bf16 %v2070_v32 }
 0x165   : > { %v2062_v40 = vunpack.i.h.bf16 %v2060_v34  ;;  %v2061_v41 = vunpack.i.l.bf16 %v2060_v34 }
 0x166   : > { %v650_v63 = vrot.slane %v2072_v44, 4  ;;  %v594_v0 = vrot.slane %v2071_v45, 4 }
 0x167   : > { %v636_v46 = vrot.slane %v2062_v40, 4  ;;  %v639_v47 = vsel %vm580_vm1, %v2062_v40, %v638_v33  ;;  %v579_v48 = vrot.slane %v2061_v41, 4  ;;  %v583_v49 = vsel %vm580_vm1, %v2061_v41, %v582_v35 }
 0x168   : > { %v647_v50 = vperm.slane %v639_v47, %v2709_v27  ;;  %v591_v51 = vperm.slane %v583_v49, %v2709_v27 }
 0x169   : > { %v637_v53 = vsel %vm580_vm1, %v636_v46, %v523_v13  ;;  %v581_v54 = vsel %vm580_vm1, %v579_v48, %v521_v12 }
 0x16a   : > { %v643_v59 = vperm.slane %v637_v53, %v2709_v27  ;;  %v587_v60 = vperm.slane %v581_v54, %v2709_v27  ;;  %v674_v2 = vrot.slane %v647_v50, 4  ;;  %v618_v3 = vrot.slane %v591_v51, 4 }
 0x16b   : > { %v2075_v1 = vpop.permute.xlu1 %2074 }
 0x16c   : > { %v2077_v4 = vunpack.i.h.bf16 %v2075_v1  ;;  %v2076_v5 = vunpack.i.l.bf16 %v2075_v1  ;;  %v2741_v6 = vpop.permute.xlu0 %2064  ;;  %v662_v7 = vrot.slane %v643_v59, 4  ;;  %v606_v8 = vrot.slane %v587_v60, 4 }
 0x16d   : > { %v2067_v10 = vunpack.i.h.bf16 %v2741_v6  ;;  %v2066_v11 = vunpack.i.l.bf16 %v2741_v6 }
 0x16e   : > { %v648_v12 = vrot.slane %v2077_v4, 4  ;;  %v592_v13 = vrot.slane %v2076_v5, 4  ;;  %v595_v15 = vsel %vm580_vm1, %v2076_v5, %v594_v0  ;;  %v651_v16 = vsel %vm580_vm1, %v2077_v4, %v650_v63 }
 0x16f   : > { %v603_v17 = vperm.slane %v595_v15, %v2709_v27  ;;  %v659_v18 = vperm.slane %v651_v16, %v2709_v27  ;;  %v876_v19 = vrot.slane %v2067_v10, 4  ;;  %v879_v20 = vsel %vm580_vm1, %v2067_v10, %v878_v56 }
 0x170   : > { %v593_v21 = vsel %vm580_vm1, %v592_v13, %v2071_v45  ;;  %v649_v22 = vsel %vm580_vm1, %v648_v12, %v2072_v44  ;;  %v2753_v23 = vperm.slane %v879_v20, %v2709_v27  ;;  %v2757_v24 = vrot.slane %v2066_v11, 4 }
 0x171   : > { %v599_v25 = vperm.slane %v593_v21, %v2709_v27  ;;  %v616_v26 = vrot.slane %v603_v17, 4  ;;  %v619_v28 = vsel %vm580_vm1, %v603_v17, %v618_v3  ;;  %v655_v29 = vperm.slane %v649_v22, %v2709_v27 }
 0x172   : > { %v627_v30 = vperm.slane %v619_v28, %v2728_v55  ;;  %v672_v31 = vrot.slane %v659_v18, 4  ;;  %v675_v32 = vsel %vm580_vm1, %v659_v18, %v674_v2  ;;  %v877_v33 = vsel %vm580_vm1, %v876_v19, %v2705_v14 }
 0x173   : > { %v604_v34 = vrot.slane %v599_v25, 4  ;;  %v607_v35 = vsel %vm580_vm1, %v599_v25, %v606_v8  ;;  %v617_v36 = vsel %vm580_vm1, %v616_v26, %v591_v51  ;;  %v660_v37 = vrot.slane %v655_v29, 4 }
 0x174   : > { %v615_v38 = vperm.slane %v607_v35, %v2728_v55  ;;  %v623_v40 = vperm.slane %v617_v36, %v2728_v55  ;;  %v634_v41 = vrot.slane %v627_v30, 4  ;;  %v663_v42 = vsel %vm580_vm1, %v655_v29, %v662_v7 }
 0x175   : > { %v605_v44 = vsel %vm580_vm1, %v604_v34, %v587_v60  ;;  %v661_v45 = vsel %vm580_vm1, %v660_v37, %v643_v59  ;;  %v671_v46 = vperm.slane %v663_v42, %v2728_v55  ;;  %v673_v14 = vsel %vm580_vm1, %v672_v31, %v647_v50 }
 0x176   : > { %v611_v47 = vperm.slane %v605_v44, %v2728_v55  ;;  %v630_v48 = vrot.slane %v615_v38, 4  ;;  %v632_v49 = vrot.slane %v623_v40, 4  ;;  %v635_v51 = vsel %vm580_vm1, 0.0, %v634_v41 }
 0x177   : > { %v667_v53 = vperm.slane %v661_v45, %v2728_v55  ;;  %v679_v54 = vperm.slane %v673_v14, %v2728_v55  ;;  %v683_v56 = vperm.slane %v675_v32, %v2728_v55  ;;  %v686_v63 = vrot.slane %v671_v46, 4 }
 0x178   : > { %v628_v60 = vrot.slane %v611_v47, 4  ;;  %v631_v59 = vsel %vm580_vm1, 0.0, %v630_v48  ;;  %v633_v0 = vsel %vm580_vm1, 0.0, %v632_v49  ;;  %v692_v50 = vsel %vm580_vm1, %v630_v48, %v611_v47 }
 0x179   : > { %v684_v1 = vrot.slane %v667_v53, 4  ;;  %v687_v2 = vsel %vm580_vm1, 0.0, %v686_v63  ;;  %v688_v3 = vrot.slane %v679_v54, 4  ;;  %v690_v4 = vrot.slane %v683_v56, 4 }
 0x17a   : > { %v629_v5 = vsel %vm580_vm1, 0.0, %v628_v60  ;;  %v696_v7 = vperm.slane %v692_v50, %v2709_v27  ;;  %v697_v8 = vrot.slane %v631_v59, 4  ;;  %v703_v10 = vsel %vm580_vm1, %v634_v41, %v623_v40 }
 0x17b   : > { %v685_v12 = vsel %vm580_vm1, 0.0, %v684_v1  ;;  %v689_v13 = vsel %vm580_vm1, 0.0, %v688_v3  ;;  %v691_v15 = vsel %vm580_vm1, 0.0, %v690_v4  ;;  %v707_v16 = vperm.slane %v703_v10, %v2709_v27 }
 0x17c   : > { %v698_v17 = vsel %vm580_vm1, %v697_v8, %v629_v5  ;;  %v708_v18 = vrot.slane %v635_v51, 4  ;;  %v716_v19 = vrot.slane %v696_v7, 4  ;;  %v746_v20 = vsel %vm580_vm1, %v686_v63, %v667_v53 }
 0x17d   : > { %v702_v21 = vperm.slane %v698_v17, %v2709_v27  ;;  %v728_v22 = vrot.slane %v707_v16, 4  ;;  %v750_v25 = vperm.slane %v746_v20, %v2709_v27  ;;  %v751_v26 = vrot.slane %v687_v2, 4 }
 0x17e   : > { %v709_v28 = vsel %vm580_vm1, %v708_v18, %v633_v0  ;;  %v757_v29 = vsel %vm580_vm1, %v690_v4, %v679_v54  ;;  %v762_v30 = vrot.slane %v691_v15, 4  ;;  %v2798_v31 = vperm.slane %v877_v33, %v2709_v27 }
 0x17f   : > { %v713_v32 = vperm.slane %v709_v28, %v2709_v27  ;;  %v714_v34 = vrot.slane %v702_v21, 4  ;;  %v717_v35 = vsel %vm580_vm1, %v702_v21, %v716_v19  ;;  %v752_v36 = vsel %vm580_vm1, %v751_v26, %v685_v12 }
 0x180   : > { %v725_v37 = vperm.slane %v717_v35, %v2728_v55  ;;  %v756_v38 = vperm.slane %v752_v36, %v2709_v27  ;;  %v761_v40 = vperm.slane %v757_v29, %v2709_v27  ;;  %v763_v41 = vsel %vm580_vm1, %v762_v30, %v689_v13 }
 0x181   : > { %v715_v42 = vsel %vm580_vm1, %v714_v34, %v696_v7  ;;  %v726_v33 = vrot.slane %v713_v32, 4  ;;  %v729_v44 = vsel %vm580_vm1, %v713_v32, %v728_v22  ;;  %v767_v45 = vperm.slane %v763_v41, %v2709_v27 }
 0x182   : > { %v721_v46 = vperm.slane %v715_v42, %v2728_v55  ;;  %v737_v14 = vperm.slane %v729_v44, %v2728_v55  ;;  %v744_v47 = vrot.slane %v725_v37, 4  ;;  %v768_v48 = vrot.slane %v756_v38, 4 }
 0x183   : > { %v727_v49 = vsel %vm580_vm1, %v726_v33, %v707_v16  ;;  %v770_v51 = vrot.slane %v750_v25, 4  ;;  %v780_v53 = vrot.slane %v767_v45, 4  ;;  %v782_v54 = vrot.slane %v761_v40, 4 }
 0x184   : > { %v733_v56 = vperm.slane %v727_v49, %v2728_v55  ;;  %v740_v63 = vrot.slane %v721_v46, 4  ;;  %v742_v60 = vrot.slane %v737_v14, 4  ;;  %v745_v59 = vsel %vm580_vm1, %v737_v14, %v744_v47 }
 0x185   : > { %v769_v0 = vsel %vm580_vm1, %v768_v48, %v750_v25  ;;  %v771_v50 = vsel %vm580_vm1, %v756_v38, %v770_v51  ;;  %v781_v1 = vsel %vm580_vm1, %v780_v53, %v761_v40  ;;  %v783_v2 = vsel %vm580_vm1, %v767_v45, %v782_v54 }
 0x186   : > { %v738_v3 = vrot.slane %v733_v56, 4  ;;  %v741_v4 = vsel %vm580_vm1, %v733_v56, %v740_v63  ;;  %v743_v5 = vsel %vm580_vm1, %v742_v60, %v725_v37  ;;  %v775_v7 = vperm.slane %v769_v0, %v2728_v55 }
 0x187   : > { %v779_v8 = vperm.slane %v771_v50, %v2728_v55  ;;  %v787_v10 = vperm.slane %v781_v1, %v2728_v55  ;;  %v791_v12 = vperm.slane %v783_v2, %v2728_v55  ;;  %v1042_v13 = vpack.c.bf16 %v741_v4, %v741_v4 }
 0x188   : > { %v739_v15 = vsel %vm580_vm1, %v738_v3, %v721_v46  ;;  %v794_v16 = vrot.slane %v775_v7, 4  ;;  %v1044_v17 = vpack.c.bf16 %v743_v5, %v743_v5  ;;  %v1046_v18 = vpack.c.bf16 %v745_v59, %v745_v59 }
 0x189   : > { %v792_v19 = vrot.slane %v787_v10, 4  ;;  %v796_v20 = vrot.slane %v791_v12, 4  ;;  %v798_v21 = vrot.slane %v779_v8, 4  ;;  %v1040_v22 = vpack.c.bf16 %v739_v15, %v739_v15  ;;  %1051 = vst.msk [vmem:[#allocation2 + $0x8] sm:$0xf] %vm1048_vm2, %v1042_v13 }
 0x18a   : > { %v795_v25 = vsel %vm580_vm1, %v787_v10, %v794_v16  ;;  %1053 = vst.msk [vmem:[#allocation2 + $0x10] sm:$0xf] %vm1048_vm2, %v1044_v17  ;;  %v901_v26 = vsel %vm580_vm1, %v900_v61, %v2798_v31  ;;  %v902_v28 = vrot.slane %v2798_v31, 4  ;;  %v913_v29 = vsel %vm580_vm1, %v912_v62, %v2753_v23 }
 0x18b   : > { %v793_v30 = vsel %vm580_vm1, %v792_v19, %v775_v7  ;;  %v797_v32 = vsel %vm580_vm1, %v796_v20, %v779_v8  ;;  %v799_v34 = vsel %vm580_vm1, %v791_v12, %v798_v21  ;;  %v1043_v35 = vpack.c.bf16 %v795_v25, %v795_v25  ;;  %1049 = vst.msk [vmem:[#allocation2] sm:$0xf] %vm1048_vm2, %v1040_v22 }
 0x18c   : > { %v1041_v36 = vpack.c.bf16 %v793_v30, %v793_v30  ;;  %v1045_v37 = vpack.c.bf16 %v797_v32, %v797_v32  ;;  %v1047_v38 = vpack.c.bf16 %v799_v34, %v799_v34  ;;  %1055 = vst.msk [vmem:[#allocation2 + $0x18] sm:$0xf] %vm1048_vm2, %v1046_v18  ;;  %v903_v61 = vsel %vm580_vm1, %v2719_v43, %v902_v28 }
 0x18d   : > { %1052 = vst.msk [vmem:[#allocation2 + $0xc] sm:$0xf] %vm1048_vm2, %v1043_v35  ;;  %v907_v62 = vperm.slane %v901_v26, %v2728_v55  ;;  %v911_v31 = vperm.slane %v903_v61, %v2728_v55  ;;  %v914_v40 = vrot.slane %v2753_v23, 4  ;;  %v919_v41 = vperm.slane %v913_v29, %v2728_v55 }
 0x18e   : > { %v856_v42 = vrot.slane %v2735_v58, 4  ;;  %1050 = vst.msk [vmem:[#allocation2 + $0x4] sm:$0xf] %vm1048_vm2, %v1041_v36  ;;  %v821_v33 = vsel %vm580_vm1, %v2757_v24, %v2703_v9  ;;  %v823_v43 = vsel %vm580_vm1, %v2066_v11, %v822_v52  ;;  %v844_v14 = vrot.slane %v2732_v57, 4 }
 0x18f   : > { %1054 = vst.msk [vmem:[#allocation2 + $0x14] sm:$0xf] %vm1048_vm2, %v1045_v37  ;;  %v915_v23 = vsel %vm580_vm1, %v2715_v39, %v914_v40  ;;  %v924_v44 = vrot.slane %v907_v62, 4  ;;  %v926_v45 = vrot.slane %v911_v31, 4  ;;  %v928_v46 = vrot.slane %v919_v41, 4 }
 0x190   : > { %1056 = vst.msk [vmem:[#allocation2 + $0x1c] sm:$0xf] %vm1048_vm2, %v1047_v38  ;;  %v923_v24 = vperm.slane %v915_v23, %v2728_v55  ;;  %v827_v9 = vperm.slane %v821_v33, %v2709_v27  ;;  %v831_v6 = vperm.slane %v823_v43, %v2709_v27 }
 0x191   : > { %v925_v52 = vsel %vm580_vm1, 0.0, %v924_v44  ;;  %v927_v11 = vsel %vm580_vm1, 0.0, %v926_v45  ;;  %v929_v47 = vsel %vm580_vm1, 0.0, %v928_v46  ;;  %v986_v39 = vsel %vm580_vm1, %v926_v45, %v907_v62 }
 0x192   : > { %v930_v48 = vrot.slane %v923_v24, 4  ;;  %v990_v49 = vperm.slane %v986_v39, %v2709_v27  ;;  %v991_v51 = vrot.slane %v927_v11, 4  ;;  %v845_v53 = vsel %vm580_vm1, %v844_v14, %v827_v9 }
 0x193   : > { %v846_v54 = vrot.slane %v827_v9, 4  ;;  %v851_v56 = vperm.slane %v845_v53, %v2728_v55  ;;  %v857_v63 = vsel %vm580_vm1, %v856_v42, %v831_v6  ;;  %v858_v60 = vrot.slane %v831_v6, 4 }
 0x194   : > { %v931_v59 = vsel %vm580_vm1, 0.0, %v930_v48  ;;  %v992_v0 = vsel %vm580_vm1, %v991_v51, %v925_v52  ;;  %v997_v50 = vsel %vm580_vm1, %v930_v48, %v919_v41  ;;  %v1010_v1 = vrot.slane %v990_v49, 4 }
 0x195   : > { %v996_v2 = vperm.slane %v992_v0, %v2709_v27  ;;  %v1001_v3 = vperm.slane %v997_v50, %v2709_v27  ;;  %v1002_v4 = vrot.slane %v931_v59, 4  ;;  %v847_v5 = vsel %vm580_vm1, %v2732_v57, %v846_v54 }
 0x196   : > { %v855_v7 = vperm.slane %v847_v5, %v2728_v55  ;;  %v859_v8 = vsel %vm580_vm1, %v2735_v58, %v858_v60  ;;  %v863_v10 = vperm.slane %v857_v63, %v2728_v55  ;;  %v868_v12 = vrot.slane %v851_v56, 4 }
 0x197   : > { %v1003_v13 = vsel %vm580_vm1, %v1002_v4, %v929_v47  ;;  %v1008_v15 = vrot.slane %v996_v2, 4  ;;  %v1011_v16 = vsel %vm580_vm1, %v996_v2, %v1010_v1  ;;  %v1022_v17 = vrot.slane %v1001_v3, 4 }
 0x198   : > { %v1007_v18 = vperm.slane %v1003_v13, %v2709_v27  ;;  %v1019_v19 = vperm.slane %v1011_v16, %v2728_v55  ;;  %v867_v57 = vperm.slane %v859_v8, %v2728_v55  ;;  %v869_v21 = vsel %vm580_vm1, 0.0, %v868_v12 }
 0x199   : > { %v1009_v20 = vsel %vm580_vm1, %v1008_v15, %v990_v49  ;;  %v870_v58 = vrot.slane %v855_v7, 4  ;;  %v872_v32 = vrot.slane %v863_v10, 4 }
 0x19a   : > { %v1015_v22 = vperm.slane %v1009_v20, %v2728_v55  ;;  %v1020_v25 = vrot.slane %v1007_v18, 4  ;;  %v1023_v26 = vsel %vm580_vm1, %v1007_v18, %v1022_v17  ;;  %v1038_v28 = vrot.slane %v1019_v19, 4 }
 0x19b   : > { %v1031_v29 = vperm.slane %v1023_v26, %v2728_v55  ;;  %v871_v30 = vsel %vm580_vm1, 0.0, %v870_v58  ;;  %v874_v34 = vrot.slane %v867_v57, 4  ;;  %v932_v37 = vsel %vm580_vm1, %v870_v58, %v851_v56 }
 0x19c   : > { %v1021_v35 = vsel %vm580_vm1, %v1020_v25, %v1001_v3  ;;  %v1034_v36 = vrot.slane %v1015_v22, 4  ;;  %v937_v38 = vrot.slane %v871_v30, 4  ;;  %v936_v42 = vperm.slane %v932_v37, %v2709_v27 }
 0x19d   : > { %v1027_v61 = vperm.slane %v1021_v35, %v2728_v55  ;;  %v1036_v62 = vrot.slane %v1031_v29, 4  ;;  %v1039_v31 = vsel %vm580_vm1, %v1031_v29, %v1038_v28  ;;  %v875_v40 = vsel %vm580_vm1, 0.0, %v874_v34 }
 0x19e   : > { %v1064_v41 = vpack.c.bf16 %v1039_v31, %v1039_v31  ;;  %v938_v33 = vsel %vm580_vm1, %v937_v38, %v869_v21  ;;  %v943_v43 = vsel %vm580_vm1, %v874_v34, %v863_v10  ;;  %v948_v6 = vrot.slane %v875_v40, 4 }
 0x19f   : > { %v1032_v23 = vrot.slane %v1027_v61, 4  ;;  %v1035_v44 = vsel %vm580_vm1, %v1027_v61, %v1034_v36  ;;  %v1037_v45 = vsel %vm580_vm1, %v1036_v62, %v1019_v19  ;;  %v942_v46 = vperm.slane %v938_v33, %v2709_v27 }
 0x1a0   : > { %v1060_v14 = vpack.c.bf16 %v1035_v44, %v1035_v44  ;;  %v1062_v24 = vpack.c.bf16 %v1037_v45, %v1037_v45  ;;  %1072 = vst.msk [vmem:[#allocation3 + $0x1c] sm:$0xf] %vm1048_vm2, %v1064_v41  ;;  %v947_v9 = vperm.slane %v943_v43, %v2709_v27  ;;  %v873_v11 = vsel %vm580_vm1, 0.0, %v872_v32 }
 0x1a1   : > { %v1033_v52 = vsel %vm580_vm1, %v1032_v23, %v1015_v22  ;;  %v954_v47 = vrot.slane %v942_v46, 4  ;;  %v956_v39 = vrot.slane %v936_v42, 4  ;;  %v949_v49 = vsel %vm580_vm1, %v948_v6, %v873_v11 }
 0x1a2   : > { %v1058_v48 = vpack.c.bf16 %v1033_v52, %v1033_v52  ;;  %1068 = vst.msk [vmem:[#allocation3 + $0xc] sm:$0xf] %vm1048_vm2, %v1060_v14  ;;  %v968_v51 = vrot.slane %v947_v9, 4  ;;  %v953_v53 = vperm.slane %v949_v49, %v2709_v27 }
 0x1a3   : > { %1070 = vst.msk [vmem:[#allocation3 + $0x14] sm:$0xf] %vm1048_vm2, %v1062_v24  ;;  %v955_v54 = vsel %vm580_vm1, %v954_v47, %v936_v42  ;;  %v957_v56 = vsel %vm580_vm1, %v942_v46, %v956_v39 }
 0x1a4   : > { %1066 = vst.msk [vmem:[#allocation3 + $0x4] sm:$0xf] %vm1048_vm2, %v1058_v48  ;;  %v961_v63 = vperm.slane %v955_v54, %v2728_v55  ;;  %v965_v60 = vperm.slane %v957_v56, %v2728_v55  ;;  %v966_v59 = vrot.slane %v953_v53, 4  ;;  %v969_v0 = vsel %vm580_vm1, %v953_v53, %v968_v51 }
 0x1a5   : > { %v977_v50 = vperm.slane %v969_v0, %v2728_v55 }
 0x1a6   : > { %v980_v1 = vrot.slane %v961_v63, 4  ;;  %v984_v2 = vrot.slane %v965_v60, 4  ;;  %v967_v3 = vsel %vm580_vm1, %v966_v59, %v947_v9 }
 0x1a7   : > { %v973_v27 = vperm.slane %v967_v3, %v2728_v55  ;;  %v982_v4 = vrot.slane %v977_v50, 4 }
 0x1a8   : > { %v985_v5 = vsel %vm580_vm1, %v977_v50, %v984_v2 }
 0x1a9   : > { %v1063_v7 = vpack.c.bf16 %v985_v5, %v985_v5  ;;  %v978_v8 = vrot.slane %v973_v27, 4  ;;  %v981_v10 = vsel %vm580_vm1, %v973_v27, %v980_v1  ;;  %v983_v12 = vsel %vm580_vm1, %v982_v4, %v965_v60 }
 0x1aa   : > { %v1059_v13 = vpack.c.bf16 %v981_v10, %v981_v10  ;;  %v1061_v15 = vpack.c.bf16 %v983_v12, %v983_v12 }
 0x1ab   : > { %1071 = vst.msk [vmem:[#allocation3 + $0x18] sm:$0xf] %vm1048_vm2, %v1063_v7  ;;  %v979_v16 = vsel %vm580_vm1, %v978_v8, %v961_v63 }
 0x1ac   : > { %v1057_v17 = vpack.c.bf16 %v979_v16, %v979_v16  ;;  %1067 = vst.msk [vmem:[#allocation3 + $0x8] sm:$0xf] %vm1048_vm2, %v1059_v13 }
 0x1ad   : > { %1069 = vst.msk [vmem:[#allocation3 + $0x10] sm:$0xf] %vm1048_vm2, %v1061_v15 }
 0x1ae   : > { %1065 = vst.msk [vmem:[#allocation3] sm:$0xf] %vm1048_vm2, %v1057_v17 }
 0x1af PF: > { %v1895_v55 = vld [vmem:[#allocation9 + $0x8] sm:$0xff]  ;;  %v1894_v18 = vld [vmem:[#allocation9] sm:$0xff]  ;;  %vm1094_vm3 = vcmask 261120   ;;  %s3178_s8 = sld [smem:[#allocation30_spill]]  ;;  %s2403_s24 = smov 104   ;;  %v1898_v25 = vld [vmem:[#allocation2 + $0x10] sm:$0xff] }
 0x1b0   : > { %1104 = vmatpush.bf16.msra.mxu0 %v1895_v55  ;;  %v1073_v19 = vld [vmem:[%s2666_s9] sm:$0xf]  ;;  %s2404_s3 = smov 120   ;;  %s2405_s22 = smov 112   ;;  %vm1250_vm4 = vcmask 64512   ;;  %v1899_v28 = vld [vmem:[#allocation2 + $0x18] sm:$0xff] }
 0x1b1   : > { %v1896_v26 = vld [vmem:[#allocation2] sm:$0xff]  ;;  %v1897_v29 = vld [vmem:[#allocation2 + $0x8] sm:$0xff]  ;;  %v1303_v30 = vsel %vm1250_vm4, %v1898_v25, 0  ;;  %v1327_v34 = vsel %vm1250_vm4, %v1899_v28, 0  ;;  %v2406_v36 = vmov 1983009808  }
 0x1b2   : > { %v1255_v32 = vsel %vm1250_vm4, %v1896_v26, 0  ;;  %1312 = vmatpush.bf16.xpose.msra.mxu3 %v1303_v30  ;;  %v1279_v35 = vsel %vm1250_vm4, %v1897_v29, 0  ;;  %v1128_v37 = vunpack.c.l.s4 %v2406_v36  ;;  %vm1123_vm5 = vcmask 1047556   ;;  %s2409_s23 = smov 16   ;;  %s2410_s21 = smov 24  }
 0x1b3   : > { %1264 = vmatpush.bf16.xpose.msra.mxu1 %v1255_v32  ;;  %1288 = vmatpush.bf16.xpose.msra.mxu2 %v1279_v35  ;;  %v2407_v33 = vmov 1934713408   ;;  %vm1354_vm9 = vcmask 130048   ;;  %s1884_s20 = sshll.u32 %s2379_s16, 1  ;;  %s3181_s27 = sld [smem:[#allocation35_spill]]  ;;  %vm1623_vm10 = vcmask 195584  }
 0x1b4   : > { %1105 = vmatpush.bf16.msra.mxu0 %v1894_v18  ;;  %v2942_v40 = vunpack.c.0.s8 %v1128_v37  ;;  %v1152_v43 = vunpack.c.l.s4 %v2407_v33  ;;  %s1639_s28 = sadd.s32 %s2375_s15, %s1884_s20  ;;  %s1643_s17 = sshll.u32 %s2694_s5, 4  ;;  %vm1626_vm11 = vcmask 257024   ;;  %s1644_s17 = int_to_ptr.vmem [resolvable:$true] %s1643_s17 }
 0x1b5   : > { %v2090_v57 = vld [vmem:[%s3178_s8] ss:$0 sm:$0xff]  ;;  %s1885_s14 = sshll.u32 %s1639_s28, 2  ;;  %s1629_s15 = scalar_lea.sflag [#allocation6], %s2662_s12 }
 0x1b6   : > { %v2948_v14 = vunpack.c.0.s8 %v1152_v43 }
 0x1b7   : > { %1842 = vmatmul.msk.bf16.vlgmr.msra.gmra.mxu0 %vm1094_vm3, %v1073_v19 }
 0x1b8   : > { %1336 = vmatpush.bf16.xpose.msrb.mxu0 %v1327_v34 }
 0x1b9   : > { %s1641_s6 = scalar_lea.hbm %s3181_s27, %s1885_s14 }
 0x1ba   : > { %s1645_s30 = sshll.u32 %s1641_s6, 4  ;;  %s1646_s30 = int_to_ptr.hbm [resolvable:$true] %s1645_s30 }
 0x1bb   : > { %s2271_s16 = sshra.s32 %s1646_s30, 4  ;;  %s2272_s16 = int_to_ptr.hbm [resolvable:$true] %s2271_s16 }
 0x1bc   : > { %s2273_s0 = scalar_lea.hbm %s2272_s16, 4  ;;  %p2278_p2 = scmp.lt.s32.totalorder %s2272_s16, %s3181_s27 }
 0x1bd   : > { %p2274_p8 = scmp.ne.s32.totalorder %s2272_s16, %s2273_s0 }
 0x1bf   : > { %p2275_p10 = pnand %p2274_p8, %p2620_p11 }
 0x1c1   : > { %p2276_p12 = pneg %p2275_p10 }
 0x234   : > { %v1107_v20 = vpop.f32.mrf.mxu0 }
 0x235   : > { %v1108_v21 = vadd.f32 %v2090_v57, %v1107_v20 }
 0x237   : > { %v1111_v58 = vmul.f32 0.35355338, %v1108_v21 }
 0x239   : > { %1119 = vrot.lane.b32.xlu1 %v1111_v58, %s2403_s24  ;;  %1113 = vrot.lane.b32.xlu0 %v1111_v58, %s2404_s3  ;;  %v1125_v44 = vrot.slane %v1111_v58, 4  ;;  %s2277_s3 = scalar_lea.hbm %s3181_s27, 16 }
 0x23a   : > { %p2279_p7 = scmp.lt.s32.totalorder %s2277_s3, %s2273_s0 }
 0x23c   : > { %v1109_v22 = vpop.f32.mrf.mxu0  ;;  %p2280_p4 = por %p2279_p7, %p2278_p2 }
 0x23e   : > { %p2281_p3 = pnand %p2280_p4, %p2276_p12 }
 0x241   : > { %1116 = vrot.lane.b32.xlu0 %v1111_v58, %s2405_s22 }
 0x2ab   : > { %v1120_v38 = vpop.permute.xlu1 %1119  ;;  %v1114_v61 = vpop.permute.xlu0 %1113 }
 0x2ac   : > { %v1135_v62 = vrot.slane %v1120_v38, 4  ;;  %v1137_v31 = vrot.slane %v1114_v61, 4 }
 0x2ae   : > { %v1138_v41 = vsel %vm1123_vm5, %v1120_v38, %v1137_v31  ;;  %v1136_v42 = vsel %vm1123_vm5, %v1135_v62, %v1114_v61 }
 0x2af   : > { %v1146_v23 = vperm.slane %v1138_v41, %v2942_v40  ;;  %v1142_v45 = vperm.slane %v1136_v42, %v2942_v40 }
 0x2b1   : > { %v1159_v6 = vrot.slane %v1146_v23, 4  ;;  %v1147_v47 = vrot.slane %v1142_v45, 4 }
 0x2b3   : > { %v1117_v46 = vpop.permute.xlu0 %1116 }
 0x2b4   : > { %v1122_v24 = vrot.slane %v1117_v46, 4  ;;  %v1126_v9 = vsel %vm1123_vm5, %v1117_v46, %v1125_v44  ;;  %v1342_v44 = vld [vmem:[%s472_s29] sm:$0x1]  ;;  %s2411_s29 = smov 8  }
 0x2b5   : > { %v1134_v52 = vperm.slane %v1126_v9, %v2942_v40  ;;  %vm1343_vm6 = vnez %v1342_v44 }
 0x2b6   : > { %v1124_v11 = vsel %vm1123_vm5, %v1122_v24, %v1111_v58 }
 0x2b7   : > { %v1130_v39 = vperm.slane %v1124_v11, %v2942_v40  ;;  %v1160_v48 = vsel %vm1123_vm5, %v1159_v6, %v1134_v52  ;;  %v1161_v49 = vrot.slane %v1134_v52, 4 }
 0x2b8   : > { %v1166_v51 = vperm.slane %v1160_v48, %v2948_v14 }
 0x2b9   : > { %v1148_v53 = vsel %vm1123_vm5, %v1147_v47, %v1130_v39  ;;  %v1149_v54 = vrot.slane %v1130_v39, 4  ;;  %v1162_v56 = vsel %vm1123_vm5, %v1146_v23, %v1161_v49 }
 0x2ba   : > { %v1154_v63 = vperm.slane %v1148_v53, %v2948_v14  ;;  %v1170_v60 = vperm.slane %v1162_v56, %v2948_v14  ;;  %v1175_v50 = vrot.slane %v1166_v51, 4 }
 0x2bb   : > { %v1150_v59 = vsel %vm1123_vm5, %v1142_v45, %v1149_v54  ;;  %v2408_v45 = vmov 0  }
 0x2bc   : > { %v1158_v0 = vperm.slane %v1150_v59, %v2948_v14  ;;  %v1177_v1 = vrot.slane %v1170_v60, 4  ;;  %v1171_v2 = vrot.slane %v1154_v63, 4  ;;  %v1176_v10 = vsel %vm1123_vm5, 0.0, %v1175_v50 }
 0x2bd   : > { %v1344_v46 = vsel %vm1343_vm6, 16843009, %v2408_v45 }
 0x2be   : > { %v1173_v3 = vrot.slane %v1158_v0, 4  ;;  %v1178_v27 = vsel %vm1123_vm5, 0.0, %v1177_v1  ;;  %v1190_v4 = vsel %vm1123_vm5, %v1177_v1, %v1166_v51  ;;  %v1172_v55 = vsel %vm1123_vm5, 0.0, %v1171_v2 }
 0x2bf   : > { %v1194_v5 = vperm.slane %v1190_v4, %v2942_v40  ;;  %v1195_v7 = vrot.slane %v1178_v27, 4  ;;  %v1345_v24 = vunpack.c.0.s8 %v1344_v46 }
 0x2c0   : > { %v1174_v8 = vsel %vm1123_vm5, 0.0, %v1173_v3  ;;  %v1179_v12 = vsel %vm1123_vm5, %v1173_v3, %v1154_v63 }
 0x2c1   : > { %v1184_v13 = vrot.slane %v1174_v8, 4  ;;  %v1196_v15 = vsel %vm1123_vm5, %v1195_v7, %v1176_v10  ;;  %v1215_v16 = vrot.slane %v1194_v5, 4  ;;  %v1183_v17 = vperm.slane %v1179_v12, %v2942_v40 }
 0x2c2   : > { %v1200_v18 = vperm.slane %v1196_v15, %v2942_v40  ;;  %vm1346_vm7 = vcmp.ne.s32.totalorder %v1345_v24, 0 }
 0x2c3   : > { %v1185_v19 = vsel %vm1123_vm5, %v1184_v13, %v1172_v55  ;;  %v1203_v57 = vrot.slane %v1183_v17, 4  ;;  %v1347_v9 = vsel %vm1346_vm7, 1, %v2408_v45 }
 0x2c4   : > { %v1189_v20 = vperm.slane %v1185_v19, %v2942_v40  ;;  %v1216_v21 = vsel %vm1123_vm5, %v1200_v18, %v1215_v16  ;;  %v1213_v58 = vrot.slane %v1200_v18, 4  ;;  %v1348_v6 = vperm.slane %v1347_v9, 0 }
 0x2c5   : > { %v1224_v22 = vperm.slane %v1216_v21, %v2948_v14 }
 0x2c6   : > { %v1204_v25 = vsel %vm1123_vm5, %v1189_v20, %v1203_v57  ;;  %v1201_v26 = vrot.slane %v1189_v20, 4  ;;  %v1214_v28 = vsel %vm1123_vm5, %v1213_v58, %v1194_v5  ;;  %vm2995_vm8 = vcmp.eq.s32.totalorder %v1348_v6, 1 }
 0x2c7   : > { %v1212_v29 = vperm.slane %v1204_v25, %v2948_v14  ;;  %v1229_v30 = vrot.slane %v1224_v22, 4  ;;  %v1220_v32 = vperm.slane %v1214_v28, %v2948_v14  ;;  %v1900_v25 = vld [vmem:[#allocation3] sm:$0xff]  ;;  %v1901_v28 = vld [vmem:[#allocation3 + $0x8] sm:$0xff] }
 0x2c8   : > { %v1202_v34 = vsel %vm1123_vm5, %v1201_v26, %v1183_v17  ;;  %1427 = vmatpush.bf16.msrb.mxu1 %v1900_v25  ;;  %v1902_v26 = vld [vmem:[#allocation3 + $0x10] sm:$0xff]  ;;  %1449 = vmatpush.bf16.msrb.mxu2 %v1901_v28 }
 0x2c9   : > { %v1230_v35 = vsel %vm1123_vm5, %v1229_v30, %v1212_v29  ;;  %v1231_v36 = vrot.slane %v1212_v29, 4  ;;  %v1208_v37 = vperm.slane %v1202_v34, %v2948_v14  ;;  %v1225_v38 = vrot.slane %v1220_v32, 4  ;;  %1471 = vmatpush.bf16.msrb.mxu3 %v1902_v26  ;;  %v1903_v29 = vld [vmem:[#allocation3 + $0x18] sm:$0xff] }
 0x2ca   : > { %v1235_v61 = vpack.c.bf16 %v1230_v35, %v1230_v35  ;;  %1493 = vmatpush.bf16.msra.mxu0 %v1903_v29 }
 0x2cb   : > { %v1226_v62 = vsel %vm1123_vm5, %v1225_v38, %v1208_v37  ;;  %v1232_v31 = vsel %vm1123_vm5, %v1224_v22, %v1231_v36  ;;  %v1227_v41 = vrot.slane %v1208_v37, 4 }
 0x2cc   : > { %1857 = vmatmul.msk.bf16.vlgmr.msra.gmra.mxu3 %vm1250_vm4, %v1235_v61  ;;  %v1233_v42 = vpack.c.bf16 %v1226_v62, %v1226_v62  ;;  %v1236_v33 = vpack.c.bf16 %v1232_v31, %v1232_v31 }
 0x2cd   : > { %v1228_v43 = vsel %vm1123_vm5, %v1220_v32, %v1227_v41 }
 0x2ce   : > { %1847 = vmatmul.msk.bf16.vlgmr.msra.gmra.mxu1 %vm1250_vm4, %v1233_v42  ;;  %1862 = vmatmul.msk.bf16.vlgmr.msrb.gmra.mxu0 %vm1250_vm4, %v1236_v33  ;;  %v1234_v23 = vpack.c.bf16 %v1228_v43, %v1228_v43 }
 0x2d0   : > { %1852 = vmatmul.msk.bf16.vlgmr.msra.gmra.mxu2 %vm1250_vm4, %v1234_v23 }
 0x34b   : > { %v1266_v11 = vpop.f32.mrf.mxu1  ;;  %v1338_v47 = vpop.f32.mrf.mxu0 }
 0x34c   : > { %v1353_v39 = vsel %vm2995_vm8, -1e+09, %v1338_v47  ;;  %v1350_v50 = vsel %vm2995_vm8, -1e+09, %v1266_v11 }
 0x34d   : > { %v1364_v48 = vsel %vm1354_vm9, %v1353_v39, -inf  ;;  %v1355_v2 = vsel %vm1354_vm9, %v1350_v50, -inf }
 0x34e   : > { %1365 = vmax.xlane.f32.xlu0 %v1364_v48 }
 0x34f   : > { %v1314_v49 = vpop.f32.mrf.mxu3 }
 0x350   : > { %v1352_v51 = vsel %vm2995_vm8, -1e+09, %v1314_v49 }
 0x351   : > { %v1361_v53 = vsel %vm1354_vm9, %v1352_v51, -inf }
 0x352   : > { %1362 = vmax.xlane.f32.xlu1 %v1361_v53 }
 0x353   : > { %v1268_v54 = vpop.f32.mrf.mxu1  ;;  %v1290_v56 = vpop.f32.mrf.mxu2 }
 0x354   : > { %v1351_v63 = vsel %vm2995_vm8, -1e+09, %v1290_v56  ;;  %v1340_v60 = vpop.f32.mrf.mxu0 }
 0x355   : > { %v1358_v59 = vsel %vm1354_vm9, %v1351_v63, -inf }
 0x356   : > { %1359 = vmax.xlane.f32.xlu2 %v1358_v59 }
 0x357   : > { %v1316_v0 = vpop.f32.mrf.mxu3 }
 0x35b   : > { %v1292_v1 = vpop.f32.mrf.mxu2 }
 0x35e   : > { %1356 = vmax.xlane.f32.xlu2 %v1355_v2 }
 0x3c1   : > { %v1366_v17 = vpop.xlane.xlu0 %1365 }
 0x3c2   : > { %v1370_v18 = vsub.f32 %v1353_v39, %v1366_v17 }
 0x3c4   : > { %v1377_v57 = vmul.f32 1.442695, %v1370_v18 }
 0x3c5   : > { %v1363_v27 = vpop.xlane.xlu1 %1362 }
 0x3c6   : > { %v1369_v7 = vsub.f32 %v1352_v51, %v1363_v27 }
 0x3c8   : > { %v1375_v10 = vmul.f32 1.442695, %v1369_v7 }
 0x3c9   : > { %v1360_v3 = vpop.xlane.xlu2 %1359 }
 0x3ca   : > { %v1368_v13 = vsub.f32 %v1351_v63, %v1360_v3 }
 0x3cc   : > { %v1373_v16 = vmul.f32 1.442695, %v1368_v13 }
 0x3d1   : > { %v1357_v4 = vpop.xlane.xlu2 %1356 }
 0x3d2   : > { %v1367_v5 = vsub.f32 %v1350_v50, %v1357_v4 }
 0x3d4   : > { %v1371_v8 = vmul.f32 1.442695, %v1367_v5 }
 0x3d6   : > { %2091 = vpow2.f32 %v1371_v8 }
 0x3d7   : > { %2093 = vpow2.f32 %v1375_v10 }
 0x3d8   : > { %2095 = vpow2.f32 %v1373_v16 }
 0x3d9   : > { %2097 = vpow2.f32 %v1377_v57 }
 0x3dc   : > { %v2092_v12 = vpop.eup %2091 }
 0x3dd   : > { %v1379_v15 = vsel %vm1354_vm9, %v2092_v12, 0.0  ;;  %v2094_v55 = vpop.eup %2093 }
 0x3de   : > { %1380 = vadd.xlane.f32.xlu2 %v1379_v15  ;;  %v1385_v19 = vsel %vm1354_vm9, %v2094_v55, 0.0  ;;  %v2096_v20 = vpop.eup %2095 }
 0x3df   : > { %v1382_v21 = vsel %vm1354_vm9, %v2096_v20, 0.0  ;;  %v2098_v58 = vpop.eup %2097 }
 0x3e0   : > { %v1388_v22 = vsel %vm1354_vm9, %v2098_v58, 0.0 }
 0x3e6   : > { %1386 = vadd.xlane.f32.xlu2 %v1385_v19 }
 0x3ee   : > { %1383 = vadd.xlane.f32.xlu2 %v1382_v21 }
 0x3f6   : > { %1389 = vadd.xlane.f32.xlu2 %v1388_v22 }
 0x451   : > { %v1381_v30 = vpop.xlane.xlu2 %1380 }
 0x452   : > { %2099 = vrcp.f32 %v1381_v30 }
 0x458   : > { %v2100_v32 = vpop.eup %2099 }
 0x459   : > { %v1395_v34 = vmul.f32 %v2100_v32, %v2092_v12  ;;  %v1387_v35 = vpop.xlane.xlu2 %1386 }
 0x45a   : > { %2101 = vrcp.f32 %v1387_v35 }
 0x45b   : > { %v1399_v36 = vpack.c.bf16 %v1395_v34, %v1395_v34 }
 0x45d   : > { %1867 = vmatmul.msk.bf16.vlgmr.msrb.gmra.mxu1 %vm1354_vm9, %v1399_v36 }
 0x460   : > { %v2102_v37 = vpop.eup %2101 }
 0x461   : > { %v1397_v38 = vmul.f32 %v2102_v37, %v2094_v55  ;;  %v1384_v61 = vpop.xlane.xlu2 %1383 }
 0x462   : > { %2103 = vrcp.f32 %v1384_v61 }
 0x463   : > { %v1401_v62 = vpack.c.bf16 %v1397_v38, %v1397_v38 }
 0x465   : > { %1877 = vmatmul.msk.bf16.vlgmr.msrb.gmra.mxu3 %vm1354_vm9, %v1401_v62 }
 0x468   : > { %v2104_v31 = vpop.eup %2103 }
 0x469   : > { %v1396_v41 = vmul.f32 %v2104_v31, %v2096_v20  ;;  %v1390_v42 = vpop.xlane.xlu2 %1389 }
 0x46a   : > { %2105 = vrcp.f32 %v1390_v42 }
 0x46b   : > { %v1400_v33 = vpack.c.bf16 %v1396_v41, %v1396_v41 }
 0x46d   : > { %1872 = vmatmul.msk.bf16.vlgmr.msrb.gmra.mxu2 %vm1354_vm9, %v1400_v33 }
 0x470   : > { %v2106_v43 = vpop.eup %2105 }
 0x471   : > { %v1398_v23 = vmul.f32 %v2106_v43, %v2098_v58 }
 0x473   : > { %v1402_v44 = vpack.c.bf16 %v1398_v23, %v1398_v23 }
 0x475   : > { %1882 = vmatmul.msk.bf16.vlgmr.msra.gmra.mxu0 %vm1354_vm9, %v1402_v44 }
 0x4da   : > { %v1429_v45 = vpop.f32.mrf.mxu1 }
 0x4db   : > { %v1501_v9 = vrot.slane %v1429_v45, 4 }
 0x4e2   : > { %v1431_v46 = vpop.f32.mrf.mxu1 }
 0x4e8   : > { %v1473_v24 = vpop.f32.mrf.mxu3 }
 0x4e9   : > { %v1499_v6 = vrot.slane %v1473_v24, 4  ;;  %v1502_v52 = vsel %vm1123_vm5, %v1473_v24, %v1501_v9 }
 0x4ea   : > { %v1510_v47 = vperm.slane %v1502_v52, %v2942_v40 }
 0x4eb   : > { %v1500_v11 = vsel %vm1123_vm5, %v1499_v6, %v1429_v45 }
 0x4ec   : > { %v1506_v51 = vperm.slane %v1500_v11, %v2942_v40  ;;  %v1537_v63 = vrot.slane %v1510_v47, 4 }
 0x4ee   : > { %v1525_v0 = vrot.slane %v1506_v51, 4 }
 0x4f0   : > { %v1451_v39 = vpop.f32.mrf.mxu2  ;;  %v1475_v48 = vpop.f32.mrf.mxu3 }
 0x4f1   : > { %v1513_v49 = vrot.slane %v1451_v39, 4 }
 0x4f2   : > { %v1495_v53 = vpop.f32.mrf.mxu0 }
 0x4f3   : > { %v1511_v54 = vrot.slane %v1495_v53, 4  ;;  %v1514_v56 = vsel %vm1123_vm5, %v1495_v53, %v1513_v49 }
 0x4f4   : > { %v1522_v60 = vperm.slane %v1514_v56, %v2942_v40 }
 0x4f5   : > { %v1512_v59 = vsel %vm1123_vm5, %v1511_v54, %v1451_v39 }
 0x4f6   : > { %v1518_v50 = vperm.slane %v1512_v59, %v2942_v40  ;;  %v1535_v1 = vrot.slane %v1522_v60, 4  ;;  %v1538_v2 = vsel %vm1123_vm5, %v1522_v60, %v1537_v63 }
 0x4f7   : > { %v1546_v3 = vperm.slane %v1538_v2, %v2948_v14 }
 0x4f8   : > { %v1523_v27 = vrot.slane %v1518_v50, 4  ;;  %v1526_v4 = vsel %vm1123_vm5, %v1518_v50, %v1525_v0  ;;  %v1536_v5 = vsel %vm1123_vm5, %v1535_v1, %v1510_v47  ;;  %v1453_v7 = vpop.f32.mrf.mxu2 }
 0x4f9   : > { %v1534_v8 = vperm.slane %v1526_v4, %v2948_v14  ;;  %v1542_v10 = vperm.slane %v1536_v5, %v2948_v14  ;;  %v1553_v12 = vrot.slane %v1546_v3, 4 }
 0x4fa   : > { %v1524_v13 = vsel %vm1123_vm5, %v1523_v27, %v1506_v51  ;;  %v1497_v15 = vpop.f32.mrf.mxu0 }
 0x4fb   : > { %v1530_v16 = vperm.slane %v1524_v13, %v2948_v14  ;;  %v1549_v17 = vrot.slane %v1534_v8, 4  ;;  %v1551_v55 = vrot.slane %v1542_v10, 4  ;;  %v1554_v18 = vsel %vm1123_vm5, 0.0, %v1553_v12 }
 0x4fc   : > { %v1566_v19 = vsel %vm1123_vm5, %v1553_v12, %v1542_v10  ;;  %v1571_v57 = vrot.slane %v1554_v18, 4 }
 0x4fd   : > { %v1547_v20 = vrot.slane %v1530_v16, 4  ;;  %v1550_v21 = vsel %vm1123_vm5, 0.0, %v1549_v17  ;;  %v1552_v58 = vsel %vm1123_vm5, 0.0, %v1551_v55  ;;  %v1570_v22 = vperm.slane %v1566_v19, %v2942_v40 }
 0x4fe   : > { %v1560_v25 = vrot.slane %v1550_v21, 4  ;;  %v1555_v26 = vsel %vm1123_vm5, %v1549_v17, %v1530_v16  ;;  %v1572_v28 = vsel %vm1123_vm5, %v1571_v57, %v1552_v58 }
 0x4ff   : > { %v1548_v29 = vsel %vm1123_vm5, 0.0, %v1547_v20  ;;  %v1559_v30 = vperm.slane %v1555_v26, %v2942_v40  ;;  %v1576_v32 = vperm.slane %v1572_v28, %v2942_v40  ;;  %v1591_v34 = vrot.slane %v1570_v22, 4 }
 0x500   : > { %v1561_v35 = vsel %vm1123_vm5, %v1560_v25, %v1548_v29 }
 0x501   : > { %v1565_v36 = vperm.slane %v1561_v35, %v2942_v40  ;;  %v1579_v37 = vrot.slane %v1559_v30, 4  ;;  %v1592_v38 = vsel %vm1123_vm5, %v1576_v32, %v1591_v34  ;;  %v1589_v61 = vrot.slane %v1576_v32, 4 }
 0x502   : > { %v1600_v62 = vperm.slane %v1592_v38, %v2948_v14 }
 0x503   : > { %v1580_v31 = vsel %vm1123_vm5, %v1565_v36, %v1579_v37  ;;  %v1577_v41 = vrot.slane %v1565_v36, 4  ;;  %v1590_v42 = vsel %vm1123_vm5, %v1589_v61, %v1570_v22 }
 0x504   : > { %v1588_v33 = vperm.slane %v1580_v31, %v2948_v14  ;;  %v1605_v43 = vrot.slane %v1600_v62, 4  ;;  %v1596_v23 = vperm.slane %v1590_v42, %v2948_v14 }
 0x505   : > { %v1578_v44 = vsel %vm1123_vm5, %v1577_v41, %v1559_v30 }
 0x506   : > { %v1606_v40 = vsel %vm1123_vm5, %v1605_v43, %v1588_v33  ;;  %v1607_v45 = vrot.slane %v1588_v33, 4  ;;  %v1584_v46 = vperm.slane %v1578_v44, %v2948_v14  ;;  %v1601_v24 = vrot.slane %v1596_v23, 4 }
 0x507   : > { %1614 = vrot.lane.b32.xlu1 %v1606_v40, %s2409_s23 }
 0x508   : > { %v1608_v9 = vsel %vm1123_vm5, %v1600_v62, %v1607_v45  ;;  %v1603_v6 = vrot.slane %v1584_v46, 4  ;;  %v1602_v52 = vsel %vm1123_vm5, %v1601_v24, %v1584_v46 }
 0x509   : > { %1618 = vrot.lane.b32.xlu0 %v1608_v9, %s2410_s21 }
 0x50a   : > { %v1604_v11 = vsel %vm1123_vm5, %v1596_v23, %v1603_v6 }
 0x50b   : > { %1610 = vrot.lane.b32.xlu2 %v1604_v11, %s2411_s29 }
 0x565   : > { %v1611_v14 = vpop.permute.xlu2 %1610 }
 0x566   : > { %v1621_v47 = vsel %vm1250_vm4, %v1602_v52, %v1611_v14 }
 0x579   : > { %v1615_v39 = vpop.permute.xlu1 %1614 }
 0x57a   : > { %v1622_v48 = vsel %vm1354_vm9, %v1621_v47, %v1615_v39 }
 0x57b   : > { %v1619_v49 = vpop.permute.xlu0 %1618 }
 0x57c   : > { %v1624_v51 = vsel %vm1623_vm10, %v1622_v48, %v1619_v49 }
 0x57d   : > { %v1625_v53 = vpack.c.bf16 %v1624_v51, %v1624_v51 }
 0x57f   : > { %1627 = vst.msk [vmem:[%s2694_s5] sm:$0xf] %vm1626_vm11, %v1625_v53 }
 0x580   : > { %2284 = shalt.err (!%p2281_p3)
}
 0x581   : > { %1920 = dma.vmem_to_hbm [thread:$0]  (%p2620_p11), %s1644_s17, 64, %s1646_s30, %s1629_s15  }
 0x582 PF: > { %s3183_s12 = sld [smem:[#allocation19_spill]]  ;;  %p1950_p9 = scmp.ge.s32.totalorder %s2391_s19, 2 }
 0x584   : > { %p1940_p13 = pnand %p1950_p9, %p2627_p1 }
 0x586   : > { %p1941_p0 = pneg %p1940_p13 }
 0x588   : > { %s1657_s7 = sand.u32 1, %s3183_s12  }
 0x589   : > { %s1658_s23 = scalar_lea.sflag [#allocation6], %s1657_s7 }
 0x58a   : > { %2346 = dma.done.wait (%p1941_p0), %s1658_s23, 64  }
 0x58b   : > { %2348 = vsyncadd (%p1941_p0), %s1658_s23, 4294967232  ;;  %s29_s19 = sadd.s32 1, %s2391_s19   ;;  %s3185_s21 = sld [smem:[#allocation24_spill]] }
 0x58c   : > { %p26_p5 = scmp.ge.s32.totalorder %s29_s19, 6   ;;  %s3186_s29 = sld [smem:[#allocation20_spill]] }
 0x58d   : > { %s3187_s14 = sld [smem:[#allocation25_spill]]  ;;  %s3191_s30 = smov %s2355_s10 }
 0x58e   : > { %s3188_s15 = sld [smem:[#allocation21_spill]]  ;;  %s3192_s10 = smov %s2359_s11 }
 0x58f   : > { %s3189_s17 = sld [smem:[#allocation22_spill]]  ;;  %s3194_s12 = smov %s2367_s13 }
 0x590   : > { %s3190_s20 = sld [smem:[#allocation23_spill]]  ;;  %s3196_s16 = smov %s2387_s18 }
 0x591   : > { %s3193_s11 = smov %s3185_s21 }
 0x592   : > { %s3195_s13 = smov %s3186_s29  ;;  %28 = sbr.rel (!%p26_p5) target bundleno = 21 (0x15), region = 133 }
 0x596   : > { %s3197_s18 = smov %s3190_s20 }
 0x597   :  { %1664 = vsyncpa [#allocation5], 1 }
 0x598   :  { %1666 = vsyncpa [#allocation5 + $0x1], 1 }
 0x599   :  { %1667 = vsyncpa [#allocation8], 1 }
 0x59a   :  { %1669 = vsyncpa [#allocation8 + $0x1], 1 }
 0x59b   :  { %1670 = vsyncpa [#allocation11], 1 }
 0x59c   :  { %1671 = vsyncpa [#allocation6], 1 }
 0x59d   :  { %1673 = vsyncpa [#allocation6 + $0x1], 1 }

// kernel: tpu_custom_call.1
= control target key start
LH: loop header
LB: loop body
LE: loop exit
PB: predicated region body
PF: predicated region fallthrough
CT: control target
= control target key end

     0   :  { %s3116_s0 = inlined_call_operand.hbm [shape: bf16[2,16,32], index: 0, kind: input, shape index: {}]   ;;  %s3117_s1 = inlined_call_operand.hbm [shape: bf16[2,16,32], index: 1, kind: input, shape index: {}]   ;;  %s3118_s2 = inlined_call_operand.vmem [shape: s8[2,1,16], index: 2, kind: input, shape index: {}]   ;;  %s3119_s3 = inlined_call_operand.hbm [shape: bf16[32,32], index: 3, kind: input, shape index: {}]   ;;  %s3120_s4 = inlined_call_operand.vmem [shape: f32[1,32], index: 4, kind: input, shape index: {}]   ;;  %s3121_s5 = inlined_call_operand.hbm [shape: bf16[32,32], index: 5, kind: input, shape index: {}]   ;;  %s3122_s6 = inlined_call_operand.vmem [shape: f32[1,32], index: 6, kind: input, shape index: {}]   ;;  %s3123_s7 = inlined_call_operand.hbm [shape: bf16[32,32], index: 7, kind: input, shape index: {}]   ;;  %s3124_s8 = inlined_call_operand.vmem [shape: f32[1,32], index: 8, kind: input, shape index: {}]   ;;  %s3125_s9 = inlined_call_operand.hbm [shape: bf16[2,16,32], index: 9, kind: output, shape index: {}]  }
   0x1   :  { %3139 = sst [smem:[#allocation28_spill]] %s3116_s0 }
   0x2   :  { %3140 = sst [smem:[#allocation29_spill]] %s3119_s3 }
   0x3   :  { %3141 = sst [smem:[#allocation30_spill]] %s3120_s4 }
   0x4   :  { %3142 = sst [smem:[#allocation31_spill]] %s3121_s5 }
   0x5   :  { %3143 = sst [smem:[#allocation32_spill]] %s3122_s6 }
   0x6   :  { %3144 = sst [smem:[#allocation33_spill]] %s3123_s7 }
   0x7   :  { %3145 = sst [smem:[#allocation34_spill]] %s3124_s8 }
   0x8   :  { %3146 = sst [smem:[#allocation35_spill]] %s3125_s9 }
   0x9   :  { %14 = vsyncpa [#allocation5], 0 }
   0xa   :  { %16 = vsyncpa [#allocation5 + $0x1], 0 }
   0xb   :  { %17 = vsyncpa [#allocation8], 0 }
   0xc   :  { %19 = vsyncpa [#allocation8 + $0x1], 0 }
   0xd   :  { %20 = vsyncpa [#allocation11], 0 }
   0xe   :  { %21 = vsyncpa [#allocation6], 0 }
   0xf   :  { %23 = vsyncpa [#allocation6 + $0x1], 0  ;;  %s2462_s30 = smov 0   ;;  %s2464_s10 = smov 0  }
  0x10   :  { %s2466_s11 = smov 0   ;;  %s2468_s12 = smov 0  }
  0x11   :  { %s2470_s13 = smov 0   ;;  %s2472_s14 = smov 0  }
  0x12   :  { %s2474_s15 = smov 0   ;;  %s2476_s16 = smov 0  }
  0x13   :  { %s2478_s17 = smov 0   ;;  %s2480_s18 = smov 0  }
  0x14   :  { %s2482_s19 = smov 0  }
  0x15 LB: > { %3147 = sst [smem:[#allocation19_spill]] %s2363_s12  ;;  %s2518_s20 = sadd.s32 4294967295, %s2391_s19   ;;  %s2391_s19 = sphi %s2482_s19, %s29_s19   ;;  %s2387_s18 = sphi %s2480_s18, %s3197_s18   ;;  %s2383_s17 = sphi %s2478_s17, %s3189_s17   ;;  %s2379_s16 = sphi %s2476_s16, %s3196_s16   ;;  %s2375_s15 = sphi %s2474_s15, %s3188_s15   ;;  %s2371_s14 = sphi %s2472_s14, %s3187_s14   ;;  %s2367_s13 = sphi %s2470_s13, %s3195_s13   ;;  %s2363_s12 = sphi %s2468_s12, %s3194_s12   ;;  %s2359_s11 = sphi %s2466_s11, %s3193_s11   ;;  %s2355_s10 = sphi %s2464_s10, %s3192_s10   ;;  %s2351_s30 = sphi %s2462_s30, %s3191_s30  }
  0x16   : > { %3148 = sst [smem:[#allocation20_spill]] %s2371_s14  ;;  %p1793_p0 = scmp.ge.s32.totalorder %s2391_s19, 1 }
  0x17   : > { %3149 = sst [smem:[#allocation21_spill]] %s2383_s17  ;;  %p3131_p1 = scmp.eq.s32.totalorder %s2518_s20, 0 }
  0x18   : > { %p280_p2 = scmp.lt.s32.totalorder %s2391_s19, 5  ;;  %s3150_s3 = sld [smem:[#allocation29_spill]] }
  0x19   : > { %s2393_s25 = smov [#allocation9]   ;;  %s3153_s5 = sld [smem:[#allocation31_spill]] }
  0x1a   : > { %p2526_p3 = pnand %p1793_p0, %p280_p2  ;;  %s293_s26 = sshll.u32 %s2393_s25, 4  ;;  %s294_s26 = int_to_ptr.vmem [resolvable:$true] %s293_s26 }
  0x1b   : > { %s3127_s22 = smov 64   ;;  %s2396_s25 = smov [#allocation10]  }
  0x1c   : > { %p1922_p4 = pneg %p2526_p3  ;;  %s310_s28 = sshll.u32 %s2396_s25, 4  ;;  %s311_s28 = int_to_ptr.vmem [resolvable:$true] %s310_s28 }
  0x1d   : > { %s3154_s7 = sld [smem:[#allocation33_spill]]  ;;  %s1792_s9 = sadd.s32 4294967294, %s2391_s19  }
  0x1e   : > { %s291_s23 = sshll.u32 %s3150_s3, 4  ;;  %p2534_p5 = pnand %p1922_p4, %p3131_p1  ;;  %s292_s23 = int_to_ptr.hbm [resolvable:$true] %s291_s23 }
  0x1f   : > { %s308_s21 = sshll.u32 %s3153_s5, 4  ;;  %s3128_s3 = smov 4   ;;  %s309_s21 = int_to_ptr.hbm [resolvable:$true] %s308_s21 }
  0x20   : > { %1925 = dma.hbm_to_vmem [thread:$0]  (!%p2534_p5), %s292_s23, 256, %s294_s26, [#allocation8], %s3127_s22, %s3127_s22, %s3128_s3  }
  0x21   : > { %1928 = dma.hbm_to_vmem [thread:$0]  (!%p2534_p5), %s309_s21, 256, %s311_s28, [#allocation11], %s3127_s22, %s3127_s22, %s3128_s3  }
  0x22   : > { %s2397_s23 = smov [#allocation12]   ;;  %s38_s25 = sadd.s32 1, %s2383_s17 }
  0x23   : > { %s325_s5 = sshll.u32 %s3154_s7, 4  ;;  %s327_s26 = sshll.u32 %s2397_s23, 4  ;;  %s326_s5 = int_to_ptr.hbm [resolvable:$true] %s325_s5  ;;  %s328_s26 = int_to_ptr.vmem [resolvable:$true] %s327_s26 }
  0x24   : > { %1931 = dma.hbm_to_vmem [thread:$0]  (!%p2534_p5), %s326_s5, 256, %s328_s26, [#allocation11], %s3127_s22, %s3127_s22, %s3128_s3  }
  0x25   : > { %s41_s29 = sadd.s32 1, %s2387_s18  ;;  %p39_p6 = scmp.ge.s32.totalorder %s38_s25, 2 }
  0x26   : > { %s50_s21 = sadd.s32 1, %s2371_s14  ;;  %p57_p7 = scmp.ne.s32.totalorder %s2371_s14, %s2367_s13 }
  0x27   : > { %p58_p8 = scmp.eq.s32.totalorder %s2391_s19, 0  ;;  %s3199_s25 = smov (%p39_p6, %s38_s25), 0 }
  0x28   : > { %3155 = sst [smem:[#allocation22_spill]] %s3199_s25  ;;  %s3201_s29 = smov (!%p39_p6, %s41_s29), %s2387_s18 }
  0x29   : > { %s46_s5 = ssub.s32 %s2383_s17, %s3199_s25  ;;  %p2574_p9 = por %p58_p8, %p57_p7 }
  0x2a   : > { %p43_p10 = scmp.ge.s32.totalorder %s3201_s29, 2  ;;  %p3130_p11 = scmp.ne.s32.totalorder %s2367_s13, %s2363_s12 }
  0x2b   : > { %s76_s28 = sadd.s32 1, %s2359_s11  ;;  %p83_p12 = scmp.ne.s32.totalorder %s2359_s11, %s2355_s10 }
  0x2c   : > { %s3203_s29 = smov (%p43_p10, %s3201_s29), 0  ;;  %p2590_p13 = por %p3131_p1, %p3130_p11 }
  0x2d   : > { %3157 = sst [smem:[#allocation23_spill]] %s3203_s29  ;;  %p2594_p0 = por %p83_p12, %p58_p8 }
  0x2e   : > { %s45_s22 = ssub.s32 %s2387_s18, %s3203_s29  ;;  %p89_p2 = scmp.ne.s32.totalorder %s2355_s10, %s2351_s30 }
  0x2f   : > { %s47_s3 = sor.u32 %s46_s5, %s45_s22  ;;  %p74_p4 = scmp.eq.s32.totalorder %s45_s22, 0 }
  0x30   : > { %p48_p5 = scmp.eq.s32.totalorder %s47_s3, 0  ;;  %p2604_p6 = por %p89_p2, %p3131_p1 }
  0x31   : > { %s2609_s25 = scalar_select %p74_p4, %s2359_s11, %s76_s28  }
  0x32   : > { %s2612_s4 = scalar_select %p48_p5, %s2371_s14, %s50_s21  }
  0x33   : > { %3161 = sst [smem:[#allocation24_spill]] %s2609_s25  ;;  %p267_p8 = scmp.eq.s32.totalorder %s2518_s20, 3 }
  0x34   : > { %3162 = sst [smem:[#allocation25_spill]] %s2612_s4  ;;  %p273_p10 = scmp.eq.s32.totalorder %s1792_s9, 3 }
  0x35   : > { %p1946_p12 = scmp.lt.s32.totalorder %s2391_s19, 4  ;;  %s344_s30 = sand.u32 1, %s2371_s14  }
  0x36   : > { %p2620_p11 = por %p267_p8, %p57_p7  ;;  %p3165_p2 = scmp.ne.s32.totalorder %s2367_s13, %s2363_s12 }
  0x37   : > { %s1798_s21 = sshll.u32 %s344_s30, 2  ;;  %s1799_s5 = sshll.u32 %s2387_s18, 1 }
  0x38   : > { %s3163_s3 = scalar_select %p2620_p11, 1, 0 }
  0x39   : > { %p2627_p1 = por %p273_p10, %p3165_p2  ;;  %s352_s28 = sadd.s32 %s2383_s17, %s1799_s5 }
  0x3a   : > { %3164 = sst [smem:[#allocation26_spill]] %s3163_s3  ;;  %s348_s29 = scalar_lea.vmem [#allocation4], %s1798_s21 }
  0x3b   : > { %s3166_s22 = scalar_select %p2627_p1, 1, 0 }
  0x3c   : > { %s358_s9 = sshll.u32 %s348_s29, 4  ;;  %s1800_s4 = sshll.u32 %s352_s28, 2  ;;  %s359_s9 = int_to_ptr.vmem [resolvable:$true] %s358_s9 }
  0x3d   : > { %3167 = sst [smem:[#allocation27_spill]] %s3166_s22  ;;  %p1933_p7 = pnand %p1946_p12, %p2574_p9 }
  0x3e   : > { %s3168_s0 = sld [smem:[#allocation28_spill]]  ;;  %p2644_p4 = pnand %p1946_p12, %p2594_p0 }
  0x3f   : > { %s345_s21 = scalar_lea.sflag [#allocation5], %s344_s30  ;;  %s365_s29 = sand.u32 1, %s2391_s19  }
  0x40   : > { %s367_s5 = sand.u32 1, %s2359_s11   ;;  %s1888_s17 = sshll.u32 %s2387_s18, 3 }
  0x41   : > { %s1801_s28 = sshll.u32 %s367_s5, 3  ;;  %s374_s25 = scalar_lea.hbm %s3117_s1, %s1888_s17 }
  0x42   : > { %s375_s27 = sshll.u32 %s374_s25, 4  ;;  %s3170_s3 = smov 4   ;;  %s376_s27 = int_to_ptr.hbm [resolvable:$true] %s375_s27 }
  0x43   : > { %s3171_s8 = smov 64  }
  0x44   : > { %s354_s6 = scalar_lea.hbm %s3168_s0, %s1800_s4  ;;  %s366_s0 = scalar_lea.sflag [#allocation8], %s365_s29 }
  0x45   : > { %s356_s12 = sshll.u32 %s354_s6, 4  ;;  %s369_s6 = scalar_lea.vmem [#allocation7], %s1801_s28  ;;  %s357_s12 = int_to_ptr.hbm [resolvable:$true] %s356_s12 }
  0x46   : > { %1935 = dma.hbm_to_vmem [thread:$0]  (!%p1933_p7), %s357_s12, 64, %s359_s9, %s345_s21  }
  0x47   : > { %s377_s26 = sshll.u32 %s369_s6, 4  ;;  %395 = sbr.rel (%p2526_p3) target bundleno = 1410 (0x582), region = 56  ;;  %s378_s26 = int_to_ptr.vmem [resolvable:$true] %s377_s26 }
  0x48   : > { %1938 = dma.hbm_to_vmem [thread:$0]  (!%p2644_p4), %s376_s27, 128, %s378_s26, %s366_s0, %s3171_s8, %s3171_s8, %s3170_s3  }
  0x49   : > { %s2662_s12 = sand.u32 (!%p2526_p3), 1, %s2367_s13  }
  0x4a   : > { %s1805_s17 = sshll.u32 (!%p2526_p3), %s2662_s12, 2  ;;  %s398_s30 = scalar_lea.sflag (!%p2526_p3), [#allocation5], %s2662_s12 }
  0x4b   : > { %s2666_s9 = scalar_lea.vmem (!%p2526_p3), [#allocation4], %s1805_s17 }
  0x4c   : > { %2330 = dma.done.wait (%p2590_p13), %s398_s30, 64  }
  0x4d   : > { %2332 = vsyncadd (%p2590_p13), %s398_s30, 4294967232  ;;  %s407_s0 = sand.u32 1, %s2518_s20   ;;  %s409_s8 = sand.u32 1, %s2355_s10  }
  0x4e   : > { %s1806_s24 = sshll.u32 %s409_s8, 3  ;;  %s408_s3 = scalar_lea.sflag [#allocation8], %s407_s0 }
  0x4f   : > { %s411_s22 = scalar_lea.vmem [#allocation7], %s1806_s24 }
  0x50   : > { %2334 = dma.done.wait (%p2604_p6), %s408_s3, 128  }
  0x51   : > { %2336 = vsyncadd (%p2604_p6), %s408_s3, 4294967168  ;;  %p3172_p3 = scmp.eq.s32.totalorder %s2518_s20, 0 }
  0x53   : > { %2338 = dma.done.wait (%p3172_p3), [#allocation8], 256   ;;  %p3173_p9 = pmov %p3172_p3 }
  0x54   : > { %p3174_p13 = pmov %p3172_p3 }
  0x55   : > { %2340 = vsyncadd (%p3173_p9), [#allocation8], 4294967040 }
  0x56   : > { %2342 = dma.done.wait (%p3174_p13), [#allocation11], 512   ;;  %p3175_p0 = pmov %p3172_p3 }
  0x57   : > { %p470_p5 = scmp.lt.s32.totalorder %s2379_s16, 1  ;;  %s2694_s5 = scalar_lea.vmem [#allocation13], %s1805_s17 }
  0x58   : > { %2344 = vsyncadd (%p3175_p0), [#allocation11], 4294966784  ;;  %p1811_p6 = scmp.ne.s32.totalorder %s2375_s15, 0 }
  0x59   : > { %s2688_s23 = scalar_select %p470_p5, %s2379_s16, 1 }
  0x5a   : > { %479 = sbr.rel (%p1811_p6) target bundleno = 431 (0x1af), region = 80  ;;  %s3176_s14 = sld [smem:[#allocation34_spill]] (!%p1811_p6) }
  0x5b   : > { %s472_s29 = scalar_lea.vmem %s3118_s2, %s2688_s23  ;;  %s3177_s27 = sld [smem:[#allocation32_spill]] (!%p1811_p6) }
  0x5c   : > { %s2398_s6 = smov (!%p1811_p6), 120   ;;  %s2399_s26 = smov (!%p1811_p6), 112  }
  0x5d   : > { %s2400_s17 = smov (!%p1811_p6), 104  }
  0x5f   : > { %v1891_v0 = vld [vmem:[#allocation10 + $0x8] sm:$0xff]  ;;  %v1893_v1 = vld [vmem:[#allocation12 + $0x8] sm:$0xff]  ;;  %v1890_v2 = vld [vmem:[#allocation10] sm:$0xff]  ;;  %vm507_vm0 = vcmask 261120   ;;  %v2401_v21 = vmov 1983009808  }
  0x60   : > { %517 = vmatpush.bf16.msra.mxu0 %v1891_v0  ;;  %551 = vmatpush.bf16.msra.mxu1 %v1893_v1  ;;  %v1892_v3 = vld [vmem:[#allocation12] sm:$0xff]  ;;  %v1889_v4 = vld [vmem:[%s411_s22] sm:$0xff]  ;;  %v2089_v7 = vld [vmem:[%s3176_s14] ss:$0 sm:$0xff]  ;;  %v585_v22 = vunpack.c.l.s4 %v2401_v21  ;;  %vm580_vm1 = vcmask 1047556   ;;  %vm1048_vm2 = vcmask 60416  }
  0x61   : > { %v2088_v8 = vld [vmem:[%s3177_s27] ss:$0 sm:$0xff]  ;;  %v2402_v36 = vmov 1934713408  }
  0x62   : > { %v2709_v27 = vunpack.c.0.s8 %v585_v22  ;;  %v609_v37 = vunpack.c.l.s4 %v2402_v36 }
  0x64   : > { %518 = vmatpush.bf16.msra.mxu0 %v1890_v2  ;;  %552 = vmatpush.bf16.msra.mxu1 %v1892_v3  ;;  %v2728_v55 = vunpack.c.0.s8 %v609_v37 }
  0x67   : > { %1824 = vmatmul.msk.bf16.vlgmr.msra.gmra.mxu0 %vm507_vm0, %v1889_v4  ;;  %1833 = vmatmul.msk.bf16.vlgmr.msra.gmra.mxu1 %vm507_vm0, %v1889_v4 }
  0xe4   : > { %v520_v5 = vpop.f32.mrf.mxu0  ;;  %v554_v6 = vpop.f32.mrf.mxu1 }
  0xe5   : > { %v2703_v9 = vadd.f32 %v2089_v7, %v554_v6  ;;  %v521_v12 = vadd.f32 %v2088_v8, %v520_v5 }
  0xe7   : > { %v582_v35 = vrot.slane %v521_v12, 4  ;;  %v822_v52 = vrot.slane %v2703_v9, 4 }
  0xec   : > { %v522_v10 = vpop.f32.mrf.mxu0  ;;  %v556_v11 = vpop.f32.mrf.mxu1 }
  0xed   : > { %v523_v13 = vadd.f32 %v2088_v8, %v522_v10  ;;  %v2705_v14 = vadd.f32 %v2089_v7, %v556_v11 }
  0xef   : > { %v2078_v15 = vpack.i.bf16 %v2705_v14, %v2703_v9  ;;  %v2068_v16 = vpack.i.bf16 %v523_v13, %v521_v12  ;;  %v638_v33 = vrot.slane %v523_v13, 4  ;;  %v878_v56 = vrot.slane %v2705_v14, 4 }
  0xf1   : > { %2079 = vrot.lane.b32.xlu2 %v2078_v15, %s2398_s6  ;;  %2069 = vrot.lane.b32.xlu1 %v2068_v16, %s2398_s6 }
  0xf2   : > { %2059 = vrot.lane.b32.xlu0 %v2068_v16, %s2399_s26 }
  0xf9   : > { %2084 = vrot.lane.b32.xlu2 %v2078_v15, %s2400_s17  ;;  %2074 = vrot.lane.b32.xlu1 %v2068_v16, %s2400_s17 }
  0xfa   : > { %2064 = vrot.lane.b32.xlu0 %v2078_v15, %s2399_s26 }
 0x14b   : > { %v2080_v17 = vpop.permute.xlu2 %2079 }
 0x14c   : > { %v2082_v20 = vunpack.i.h.bf16 %v2080_v17  ;;  %v2081_v24 = vunpack.i.l.bf16 %v2080_v17 }
 0x14e   : > { %v890_v26 = vrot.slane %v2082_v20, 4  ;;  %v834_v30 = vrot.slane %v2081_v24, 4 }
 0x153   : > { %v2085_v18 = vpop.permute.xlu2 %2084 }
 0x154   : > { %v2087_v19 = vunpack.i.h.bf16 %v2085_v18  ;;  %v2086_v23 = vunpack.i.l.bf16 %v2085_v18 }
 0x156   : > { %v888_v25 = vrot.slane %v2087_v19, 4  ;;  %v832_v28 = vrot.slane %v2086_v23, 4  ;;  %v891_v29 = vsel %vm580_vm1, %v2087_v19, %v890_v26  ;;  %v835_v38 = vsel %vm580_vm1, %v2086_v23, %v834_v30 }
 0x157   : > { %v2715_v39 = vperm.slane %v891_v29, %v2709_v27  ;;  %v2735_v58 = vperm.slane %v835_v38, %v2709_v27 }
 0x158   : > { %v889_v31 = vsel %vm580_vm1, %v888_v25, %v2082_v20  ;;  %v833_v42 = vsel %vm580_vm1, %v832_v28, %v2081_v24 }
 0x159   : > { %v2719_v43 = vperm.slane %v889_v31, %v2709_v27  ;;  %v2732_v57 = vperm.slane %v833_v42, %v2709_v27  ;;  %v912_v62 = vrot.slane %v2715_v39, 4 }
 0x15b   : > { %v900_v61 = vrot.slane %v2719_v43, 4 }
 0x163   : > { %v2070_v32 = vpop.permute.xlu1 %2069 }
 0x164   : > { %v2060_v34 = vpop.permute.xlu0 %2059  ;;  %v2072_v44 = vunpack.i.h.bf16 %v2070_v32  ;;  %v2071_v45 = vunpack.i.l.bf16 %v2070_v32 }
 0x165   : > { %v2062_v40 = vunpack.i.h.bf16 %v2060_v34  ;;  %v2061_v41 = vunpack.i.l.bf16 %v2060_v34 }
 0x166   : > { %v650_v63 = vrot.slane %v2072_v44, 4  ;;  %v594_v0 = vrot.slane %v2071_v45, 4 }
 0x167   : > { %v636_v46 = vrot.slane %v2062_v40, 4  ;;  %v639_v47 = vsel %vm580_vm1, %v2062_v40, %v638_v33  ;;  %v579_v48 = vrot.slane %v2061_v41, 4  ;;  %v583_v49 = vsel %vm580_vm1, %v2061_v41, %v582_v35 }
 0x168   : > { %v647_v50 = vperm.slane %v639_v47, %v2709_v27  ;;  %v591_v51 = vperm.slane %v583_v49, %v2709_v27 }
 0x169   : > { %v637_v53 = vsel %vm580_vm1, %v636_v46, %v523_v13  ;;  %v581_v54 = vsel %vm580_vm1, %v579_v48, %v521_v12 }
 0x16a   : > { %v643_v59 = vperm.slane %v637_v53, %v2709_v27  ;;  %v587_v60 = vperm.slane %v581_v54, %v2709_v27  ;;  %v674_v2 = vrot.slane %v647_v50, 4  ;;  %v618_v3 = vrot.slane %v591_v51, 4 }
 0x16b   : > { %v2075_v1 = vpop.permute.xlu1 %2074 }
 0x16c   : > { %v2077_v4 = vunpack.i.h.bf16 %v2075_v1  ;;  %v2076_v5 = vunpack.i.l.bf16 %v2075_v1  ;;  %v2741_v6 = vpop.permute.xlu0 %2064  ;;  %v662_v7 = vrot.slane %v643_v59, 4  ;;  %v606_v8 = vrot.slane %v587_v60, 4 }
 0x16d   : > { %v2067_v10 = vunpack.i.h.bf16 %v2741_v6  ;;  %v2066_v11 = vunpack.i.l.bf16 %v2741_v6 }
 0x16e   : > { %v648_v12 = vrot.slane %v2077_v4, 4  ;;  %v592_v13 = vrot.slane %v2076_v5, 4  ;;  %v595_v15 = vsel %vm580_vm1, %v2076_v5, %v594_v0  ;;  %v651_v16 = vsel %vm580_vm1, %v2077_v4, %v650_v63 }
 0x16f   : > { %v603_v17 = vperm.slane %v595_v15, %v2709_v27  ;;  %v659_v18 = vperm.slane %v651_v16, %v2709_v27  ;;  %v876_v19 = vrot.slane %v2067_v10, 4  ;;  %v879_v20 = vsel %vm580_vm1, %v2067_v10, %v878_v56 }
 0x170   : > { %v593_v21 = vsel %vm580_vm1, %v592_v13, %v2071_v45  ;;  %v649_v22 = vsel %vm580_vm1, %v648_v12, %v2072_v44  ;;  %v2753_v23 = vperm.slane %v879_v20, %v2709_v27  ;;  %v2757_v24 = vrot.slane %v2066_v11, 4 }
 0x171   : > { %v599_v25 = vperm.slane %v593_v21, %v2709_v27  ;;  %v616_v26 = vrot.slane %v603_v17, 4  ;;  %v619_v28 = vsel %vm580_vm1, %v603_v17, %v618_v3  ;;  %v655_v29 = vperm.slane %v649_v22, %v2709_v27 }
 0x172   : > { %v627_v30 = vperm.slane %v619_v28, %v2728_v55  ;;  %v672_v31 = vrot.slane %v659_v18, 4  ;;  %v675_v32 = vsel %vm580_vm1, %v659_v18, %v674_v2  ;;  %v877_v33 = vsel %vm580_vm1, %v876_v19, %v2705_v14 }
 0x173   : > { %v604_v34 = vrot.slane %v599_v25, 4  ;;  %v607_v35 = vsel %vm580_vm1, %v599_v25, %v606_v8  ;;  %v617_v36 = vsel %vm580_vm1, %v616_v26, %v591_v51  ;;  %v660_v37 = vrot.slane %v655_v29, 4 }
 0x174   : > { %v615_v38 = vperm.slane %v607_v35, %v2728_v55  ;;  %v623_v40 = vperm.slane %v617_v36, %v2728_v55  ;;  %v634_v41 = vrot.slane %v627_v30, 4  ;;  %v663_v42 = vsel %vm580_vm1, %v655_v29, %v662_v7 }
 0x175   : > { %v605_v44 = vsel %vm580_vm1, %v604_v34, %v587_v60  ;;  %v661_v45 = vsel %vm580_vm1, %v660_v37, %v643_v59  ;;  %v671_v46 = vperm.slane %v663_v42, %v2728_v55  ;;  %v673_v14 = vsel %vm580_vm1, %v672_v31, %v647_v50 }
 0x176   : > { %v611_v47 = vperm.slane %v605_v44, %v2728_v55  ;;  %v630_v48 = vrot.slane %v615_v38, 4  ;;  %v632_v49 = vrot.slane %v623_v40, 4  ;;  %v635_v51 = vsel %vm580_vm1, 0.0, %v634_v41 }
 0x177   : > { %v667_v53 = vperm.slane %v661_v45, %v2728_v55  ;;  %v679_v54 = vperm.slane %v673_v14, %v2728_v55  ;;  %v683_v56 = vperm.slane %v675_v32, %v2728_v55  ;;  %v686_v63 = vrot.slane %v671_v46, 4 }
 0x178   : > { %v628_v60 = vrot.slane %v611_v47, 4  ;;  %v631_v59 = vsel %vm580_vm1, 0.0, %v630_v48  ;;  %v633_v0 = vsel %vm580_vm1, 0.0, %v632_v49  ;;  %v692_v50 = vsel %vm580_vm1, %v630_v48, %v611_v47 }
 0x179   : > { %v684_v1 = vrot.slane %v667_v53, 4  ;;  %v687_v2 = vsel %vm580_vm1, 0.0, %v686_v63  ;;  %v688_v3 = vrot.slane %v679_v54, 4  ;;  %v690_v4 = vrot.slane %v683_v56, 4 }
 0x17a   : > { %v629_v5 = vsel %vm580_vm1, 0.0, %v628_v60  ;;  %v696_v7 = vperm.slane %v692_v50, %v2709_v27  ;;  %v697_v8 = vrot.slane %v631_v59, 4  ;;  %v703_v10 = vsel %vm580_vm1, %v634_v41, %v623_v40 }
 0x17b   : > { %v685_v12 = vsel %vm580_vm1, 0.0, %v684_v1  ;;  %v689_v13 = vsel %vm580_vm1, 0.0, %v688_v3  ;;  %v691_v15 = vsel %vm580_vm1, 0.0, %v690_v4  ;;  %v707_v16 = vperm.slane %v703_v10, %v2709_v27 }
 0x17c   : > { %v698_v17 = vsel %vm580_vm1, %v697_v8, %v629_v5  ;;  %v708_v18 = vrot.slane %v635_v51, 4  ;;  %v716_v19 = vrot.slane %v696_v7, 4  ;;  %v746_v20 = vsel %vm580_vm1, %v686_v63, %v667_v53 }
 0x17d   : > { %v702_v21 = vperm.slane %v698_v17, %v2709_v27  ;;  %v728_v22 = vrot.slane %v707_v16, 4  ;;  %v750_v25 = vperm.slane %v746_v20, %v2709_v27  ;;  %v751_v26 = vrot.slane %v687_v2, 4 }
 0x17e   : > { %v709_v28 = vsel %vm580_vm1, %v708_v18, %v633_v0  ;;  %v757_v29 = vsel %vm580_vm1, %v690_v4, %v679_v54  ;;  %v762_v30 = vrot.slane %v691_v15, 4  ;;  %v2798_v31 = vperm.slane %v877_v33, %v2709_v27 }
 0x17f   : > { %v713_v32 = vperm.slane %v709_v28, %v2709_v27  ;;  %v714_v34 = vrot.slane %v702_v21, 4  ;;  %v717_v35 = vsel %vm580_vm1, %v702_v21, %v716_v19  ;;  %v752_v36 = vsel %vm580_vm1, %v751_v26, %v685_v12 }
 0x180   : > { %v725_v37 = vperm.slane %v717_v35, %v2728_v55  ;;  %v756_v38 = vperm.slane %v752_v36, %v2709_v27  ;;  %v761_v40 = vperm.slane %v757_v29, %v2709_v27  ;;  %v763_v41 = vsel %vm580_vm1, %v762_v30, %v689_v13 }
 0x181   : > { %v715_v42 = vsel %vm580_vm1, %v714_v34, %v696_v7  ;;  %v726_v33 = vrot.slane %v713_v32, 4  ;;  %v729_v44 = vsel %vm580_vm1, %v713_v32, %v728_v22  ;;  %v767_v45 = vperm.slane %v763_v41, %v2709_v27 }
 0x182   : > { %v721_v46 = vperm.slane %v715_v42, %v2728_v55  ;;  %v737_v14 = vperm.slane %v729_v44, %v2728_v55  ;;  %v744_v47 = vrot.slane %v725_v37, 4  ;;  %v768_v48 = vrot.slane %v756_v38, 4 }
 0x183   : > { %v727_v49 = vsel %vm580_vm1, %v726_v33, %v707_v16  ;;  %v770_v51 = vrot.slane %v750_v25, 4  ;;  %v780_v53 = vrot.slane %v767_v45, 4  ;;  %v782_v54 = vrot.slane %v761_v40, 4 }
 0x184   : > { %v733_v56 = vperm.slane %v727_v49, %v2728_v55  ;;  %v740_v63 = vrot.slane %v721_v46, 4  ;;  %v742_v60 = vrot.slane %v737_v14, 4  ;;  %v745_v59 = vsel %vm580_vm1, %v737_v14, %v744_v47 }
 0x185   : > { %v769_v0 = vsel %vm580_vm1, %v768_v48, %v750_v25  ;;  %v771_v50 = vsel %vm580_vm1, %v756_v38, %v770_v51  ;;  %v781_v1 = vsel %vm580_vm1, %v780_v53, %v761_v40  ;;  %v783_v2 = vsel %vm580_vm1, %v767_v45, %v782_v54 }
 0x186   : > { %v738_v3 = vrot.slane %v733_v56, 4  ;;  %v741_v4 = vsel %vm580_vm1, %v733_v56, %v740_v63  ;;  %v743_v5 = vsel %vm580_vm1, %v742_v60, %v725_v37  ;;  %v775_v7 = vperm.slane %v769_v0, %v2728_v55 }
 0x187   : > { %v779_v8 = vperm.slane %v771_v50, %v2728_v55  ;;  %v787_v10 = vperm.slane %v781_v1, %v2728_v55  ;;  %v791_v12 = vperm.slane %v783_v2, %v2728_v55  ;;  %v1042_v13 = vpack.c.bf16 %v741_v4, %v741_v4 }
 0x188   : > { %v739_v15 = vsel %vm580_vm1, %v738_v3, %v721_v46  ;;  %v794_v16 = vrot.slane %v775_v7, 4  ;;  %v1044_v17 = vpack.c.bf16 %v743_v5, %v743_v5  ;;  %v1046_v18 = vpack.c.bf16 %v745_v59, %v745_v59 }
 0x189   : > { %v792_v19 = vrot.slane %v787_v10, 4  ;;  %v796_v20 = vrot.slane %v791_v12, 4  ;;  %v798_v21 = vrot.slane %v779_v8, 4  ;;  %v1040_v22 = vpack.c.bf16 %v739_v15, %v739_v15  ;;  %1051 = vst.msk [vmem:[#allocation2 + $0x8] sm:$0xf] %vm1048_vm2, %v1042_v13 }
 0x18a   : > { %v795_v25 = vsel %vm580_vm1, %v787_v10, %v794_v16  ;;  %1053 = vst.msk [vmem:[#allocation2 + $0x10] sm:$0xf] %vm1048_vm2, %v1044_v17  ;;  %v901_v26 = vsel %vm580_vm1, %v900_v61, %v2798_v31  ;;  %v902_v28 = vrot.slane %v2798_v31, 4  ;;  %v913_v29 = vsel %vm580_vm1, %v912_v62, %v2753_v23 }
 0x18b   : > { %v793_v30 = vsel %vm580_vm1, %v792_v19, %v775_v7  ;;  %v797_v32 = vsel %vm580_vm1, %v796_v20, %v779_v8  ;;  %v799_v34 = vsel %vm580_vm1, %v791_v12, %v798_v21  ;;  %v1043_v35 = vpack.c.bf16 %v795_v25, %v795_v25  ;;  %1049 = vst.msk [vmem:[#allocation2] sm:$0xf] %vm1048_vm2, %v1040_v22 }
 0x18c   : > { %v1041_v36 = vpack.c.bf16 %v793_v30, %v793_v30  ;;  %v1045_v37 = vpack.c.bf16 %v797_v32, %v797_v32  ;;  %v1047_v38 = vpack.c.bf16 %v799_v34, %v799_v34  ;;  %1055 = vst.msk [vmem:[#allocation2 + $0x18] sm:$0xf] %vm1048_vm2, %v1046_v18  ;;  %v903_v61 = vsel %vm580_vm1, %v2719_v43, %v902_v28 }
 0x18d   : > { %1052 = vst.msk [vmem:[#allocation2 + $0xc] sm:$0xf] %vm1048_vm2, %v1043_v35  ;;  %v907_v62 = vperm.slane %v901_v26, %v2728_v55  ;;  %v911_v31 = vperm.slane %v903_v61, %v2728_v55  ;;  %v914_v40 = vrot.slane %v2753_v23, 4  ;;  %v919_v41 = vperm.slane %v913_v29, %v2728_v55 }
 0x18e   : > { %v856_v42 = vrot.slane %v2735_v58, 4  ;;  %1050 = vst.msk [vmem:[#allocation2 + $0x4] sm:$0xf] %vm1048_vm2, %v1041_v36  ;;  %v821_v33 = vsel %vm580_vm1, %v2757_v24, %v2703_v9  ;;  %v823_v43 = vsel %vm580_vm1, %v2066_v11, %v822_v52  ;;  %v844_v14 = vrot.slane %v2732_v57, 4 }
 0x18f   : > { %1054 = vst.msk [vmem:[#allocation2 + $0x14] sm:$0xf] %vm1048_vm2, %v1045_v37  ;;  %v915_v23 = vsel %vm580_vm1, %v2715_v39, %v914_v40  ;;  %v924_v44 = vrot.slane %v907_v62, 4  ;;  %v926_v45 = vrot.slane %v911_v31, 4  ;;  %v928_v46 = vrot.slane %v919_v41, 4 }
 0x190   : > { %1056 = vst.msk [vmem:[#allocation2 + $0x1c] sm:$0xf] %vm1048_vm2, %v1047_v38  ;;  %v923_v24 = vperm.slane %v915_v23, %v2728_v55  ;;  %v827_v9 = vperm.slane %v821_v33, %v2709_v27  ;;  %v831_v6 = vperm.slane %v823_v43, %v2709_v27 }
 0x191   : > { %v925_v52 = vsel %vm580_vm1, 0.0, %v924_v44  ;;  %v927_v11 = vsel %vm580_vm1, 0.0, %v926_v45  ;;  %v929_v47 = vsel %vm580_vm1, 0.0, %v928_v46  ;;  %v986_v39 = vsel %vm580_vm1, %v926_v45, %v907_v62 }
 0x192   : > { %v930_v48 = vrot.slane %v923_v24, 4  ;;  %v990_v49 = vperm.slane %v986_v39, %v2709_v27  ;;  %v991_v51 = vrot.slane %v927_v11, 4  ;;  %v845_v53 = vsel %vm580_vm1, %v844_v14, %v827_v9 }
 0x193   : > { %v846_v54 = vrot.slane %v827_v9, 4  ;;  %v851_v56 = vperm.slane %v845_v53, %v2728_v55  ;;  %v857_v63 = vsel %vm580_vm1, %v856_v42, %v831_v6  ;;  %v858_v60 = vrot.slane %v831_v6, 4 }
 0x194   : > { %v931_v59 = vsel %vm580_vm1, 0.0, %v930_v48  ;;  %v992_v0 = vsel %vm580_vm1, %v991_v51, %v925_v52  ;;  %v997_v50 = vsel %vm580_vm1, %v930_v48, %v919_v41  ;;  %v1010_v1 = vrot.slane %v990_v49, 4 }
 0x195   : > { %v996_v2 = vperm.slane %v992_v0, %v2709_v27  ;;  %v1001_v3 = vperm.slane %v997_v50, %v2709_v27  ;;  %v1002_v4 = vrot.slane %v931_v59, 4  ;;  %v847_v5 = vsel %vm580_vm1, %v2732_v57, %v846_v54 }
 0x196   : > { %v855_v7 = vperm.slane %v847_v5, %v2728_v55  ;;  %v859_v8 = vsel %vm580_vm1, %v2735_v58, %v858_v60  ;;  %v863_v10 = vperm.slane %v857_v63, %v2728_v55  ;;  %v868_v12 = vrot.slane %v851_v56, 4 }
 0x197   : > { %v1003_v13 = vsel %vm580_vm1, %v1002_v4, %v929_v47  ;;  %v1008_v15 = vrot.slane %v996_v2, 4  ;;  %v1011_v16 = vsel %vm580_vm1, %v996_v2, %v1010_v1  ;;  %v1022_v17 = vrot.slane %v1001_v3, 4 }
 0x198   : > { %v1007_v18 = vperm.slane %v1003_v13, %v2709_v27  ;;  %v1019_v19 = vperm.slane %v1011_v16, %v2728_v55  ;;  %v867_v57 = vperm.slane %v859_v8, %v2728_v55  ;;  %v869_v21 = vsel %vm580_vm1, 0.0, %v868_v12 }
 0x199   : > { %v1009_v20 = vsel %vm580_vm1, %v1008_v15, %v990_v49  ;;  %v870_v58 = vrot.slane %v855_v7, 4  ;;  %v872_v32 = vrot.slane %v863_v10, 4 }
 0x19a   : > { %v1015_v22 = vperm.slane %v1009_v20, %v2728_v55  ;;  %v1020_v25 = vrot.slane %v1007_v18, 4  ;;  %v1023_v26 = vsel %vm580_vm1, %v1007_v18, %v1022_v17  ;;  %v1038_v28 = vrot.slane %v1019_v19, 4 }
 0x19b   : > { %v1031_v29 = vperm.slane %v1023_v26, %v2728_v55  ;;  %v871_v30 = vsel %vm580_vm1, 0.0, %v870_v58  ;;  %v874_v34 = vrot.slane %v867_v57, 4  ;;  %v932_v37 = vsel %vm580_vm1, %v870_v58, %v851_v56 }
 0x19c   : > { %v1021_v35 = vsel %vm580_vm1, %v1020_v25, %v1001_v3  ;;  %v1034_v36 = vrot.slane %v1015_v22, 4  ;;  %v937_v38 = vrot.slane %v871_v30, 4  ;;  %v936_v42 = vperm.slane %v932_v37, %v2709_v27 }
 0x19d   : > { %v1027_v61 = vperm.slane %v1021_v35, %v2728_v55  ;;  %v1036_v62 = vrot.slane %v1031_v29, 4  ;;  %v1039_v31 = vsel %vm580_vm1, %v1031_v29, %v1038_v28  ;;  %v875_v40 = vsel %vm580_vm1, 0.0, %v874_v34 }
 0x19e   : > { %v1064_v41 = vpack.c.bf16 %v1039_v31, %v1039_v31  ;;  %v938_v33 = vsel %vm580_vm1, %v937_v38, %v869_v21  ;;  %v943_v43 = vsel %vm580_vm1, %v874_v34, %v863_v10  ;;  %v948_v6 = vrot.slane %v875_v40, 4 }
 0x19f   : > { %v1032_v23 = vrot.slane %v1027_v61, 4  ;;  %v1035_v44 = vsel %vm580_vm1, %v1027_v61, %v1034_v36  ;;  %v1037_v45 = vsel %vm580_vm1, %v1036_v62, %v1019_v19  ;;  %v942_v46 = vperm.slane %v938_v33, %v2709_v27 }
 0x1a0   : > { %v1060_v14 = vpack.c.bf16 %v1035_v44, %v1035_v44  ;;  %v1062_v24 = vpack.c.bf16 %v1037_v45, %v1037_v45  ;;  %1072 = vst.msk [vmem:[#allocation3 + $0x1c] sm:$0xf] %vm1048_vm2, %v1064_v41  ;;  %v947_v9 = vperm.slane %v943_v43, %v2709_v27  ;;  %v873_v11 = vsel %vm580_vm1, 0.0, %v872_v32 }
 0x1a1   : > { %v1033_v52 = vsel %vm580_vm1, %v1032_v23, %v1015_v22  ;;  %v954_v47 = vrot.slane %v942_v46, 4  ;;  %v956_v39 = vrot.slane %v936_v42, 4  ;;  %v949_v49 = vsel %vm580_vm1, %v948_v6, %v873_v11 }
 0x1a2   : > { %v1058_v48 = vpack.c.bf16 %v1033_v52, %v1033_v52  ;;  %1068 = vst.msk [vmem:[#allocation3 + $0xc] sm:$0xf] %vm1048_vm2, %v1060_v14  ;;  %v968_v51 = vrot.slane %v947_v9, 4  ;;  %v953_v53 = vperm.slane %v949_v49, %v2709_v27 }
 0x1a3   : > { %1070 = vst.msk [vmem:[#allocation3 + $0x14] sm:$0xf] %vm1048_vm2, %v1062_v24  ;;  %v955_v54 = vsel %vm580_vm1, %v954_v47, %v936_v42  ;;  %v957_v56 = vsel %vm580_vm1, %v942_v46, %v956_v39 }
 0x1a4   : > { %1066 = vst.msk [vmem:[#allocation3 + $0x4] sm:$0xf] %vm1048_vm2, %v1058_v48  ;;  %v961_v63 = vperm.slane %v955_v54, %v2728_v55  ;;  %v965_v60 = vperm.slane %v957_v56, %v2728_v55  ;;  %v966_v59 = vrot.slane %v953_v53, 4  ;;  %v969_v0 = vsel %vm580_vm1, %v953_v53, %v968_v51 }
 0x1a5   : > { %v977_v50 = vperm.slane %v969_v0, %v2728_v55 }
 0x1a6   : > { %v980_v1 = vrot.slane %v961_v63, 4  ;;  %v984_v2 = vrot.slane %v965_v60, 4  ;;  %v967_v3 = vsel %vm580_vm1, %v966_v59, %v947_v9 }
 0x1a7   : > { %v973_v27 = vperm.slane %v967_v3, %v2728_v55  ;;  %v982_v4 = vrot.slane %v977_v50, 4 }
 0x1a8   : > { %v985_v5 = vsel %vm580_vm1, %v977_v50, %v984_v2 }
 0x1a9   : > { %v1063_v7 = vpack.c.bf16 %v985_v5, %v985_v5  ;;  %v978_v8 = vrot.slane %v973_v27, 4  ;;  %v981_v10 = vsel %vm580_vm1, %v973_v27, %v980_v1  ;;  %v983_v12 = vsel %vm580_vm1, %v982_v4, %v965_v60 }
 0x1aa   : > { %v1059_v13 = vpack.c.bf16 %v981_v10, %v981_v10  ;;  %v1061_v15 = vpack.c.bf16 %v983_v12, %v983_v12 }
 0x1ab   : > { %1071 = vst.msk [vmem:[#allocation3 + $0x18] sm:$0xf] %vm1048_vm2, %v1063_v7  ;;  %v979_v16 = vsel %vm580_vm1, %v978_v8, %v961_v63 }
 0x1ac   : > { %v1057_v17 = vpack.c.bf16 %v979_v16, %v979_v16  ;;  %1067 = vst.msk [vmem:[#allocation3 + $0x8] sm:$0xf] %vm1048_vm2, %v1059_v13 }
 0x1ad   : > { %1069 = vst.msk [vmem:[#allocation3 + $0x10] sm:$0xf] %vm1048_vm2, %v1061_v15 }
 0x1ae   : > { %1065 = vst.msk [vmem:[#allocation3] sm:$0xf] %vm1048_vm2, %v1057_v17 }
 0x1af PF: > { %v1895_v55 = vld [vmem:[#allocation9 + $0x8] sm:$0xff]  ;;  %v1894_v18 = vld [vmem:[#allocation9] sm:$0xff]  ;;  %vm1094_vm3 = vcmask 261120   ;;  %s3178_s8 = sld [smem:[#allocation30_spill]]  ;;  %s2403_s24 = smov 104   ;;  %v1898_v25 = vld [vmem:[#allocation2 + $0x10] sm:$0xff] }
 0x1b0   : > { %1104 = vmatpush.bf16.msra.mxu0 %v1895_v55  ;;  %v1073_v19 = vld [vmem:[%s2666_s9] sm:$0xf]  ;;  %s2404_s3 = smov 120   ;;  %s2405_s22 = smov 112   ;;  %vm1250_vm4 = vcmask 64512   ;;  %v1899_v28 = vld [vmem:[#allocation2 + $0x18] sm:$0xff] }
 0x1b1   : > { %v1896_v26 = vld [vmem:[#allocation2] sm:$0xff]  ;;  %v1897_v29 = vld [vmem:[#allocation2 + $0x8] sm:$0xff]  ;;  %v1303_v30 = vsel %vm1250_vm4, %v1898_v25, 0  ;;  %v1327_v34 = vsel %vm1250_vm4, %v1899_v28, 0  ;;  %v2406_v36 = vmov 1983009808  }
 0x1b2   : > { %v1255_v32 = vsel %vm1250_vm4, %v1896_v26, 0  ;;  %1312 = vmatpush.bf16.xpose.msra.mxu3 %v1303_v30  ;;  %v1279_v35 = vsel %vm1250_vm4, %v1897_v29, 0  ;;  %v1128_v37 = vunpack.c.l.s4 %v2406_v36  ;;  %vm1123_vm5 = vcmask 1047556   ;;  %s2409_s23 = smov 16   ;;  %s2410_s21 = smov 24  }
 0x1b3   : > { %1264 = vmatpush.bf16.xpose.msra.mxu1 %v1255_v32  ;;  %1288 = vmatpush.bf16.xpose.msra.mxu2 %v1279_v35  ;;  %v2407_v33 = vmov 1934713408   ;;  %vm1354_vm9 = vcmask 130048   ;;  %s1884_s20 = sshll.u32 %s2379_s16, 1  ;;  %s3181_s27 = sld [smem:[#allocation35_spill]]  ;;  %vm1623_vm10 = vcmask 195584  }
 0x1b4   : > { %1105 = vmatpush.bf16.msra.mxu0 %v1894_v18  ;;  %v2942_v40 = vunpack.c.0.s8 %v1128_v37  ;;  %v1152_v43 = vunpack.c.l.s4 %v2407_v33  ;;  %s1639_s28 = sadd.s32 %s2375_s15, %s1884_s20  ;;  %s1643_s17 = sshll.u32 %s2694_s5, 4  ;;  %vm1626_vm11 = vcmask 257024   ;;  %s1644_s17 = int_to_ptr.vmem [resolvable:$true] %s1643_s17 }
 0x1b5   : > { %v2090_v57 = vld [vmem:[%s3178_s8] ss:$0 sm:$0xff]  ;;  %s1885_s14 = sshll.u32 %s1639_s28, 2  ;;  %s1629_s15 = scalar_lea.sflag [#allocation6], %s2662_s12 }
 0x1b6   : > { %v2948_v14 = vunpack.c.0.s8 %v1152_v43 }
 0x1b7   : > { %1842 = vmatmul.msk.bf16.vlgmr.msra.gmra.mxu0 %vm1094_vm3, %v1073_v19 }
 0x1b8   : > { %1336 = vmatpush.bf16.xpose.msrb.mxu0 %v1327_v34 }
 0x1b9   : > { %s1641_s6 = scalar_lea.hbm %s3181_s27, %s1885_s14 }
 0x1ba   : > { %s1645_s30 = sshll.u32 %s1641_s6, 4  ;;  %s1646_s30 = int_to_ptr.hbm [resolvable:$true] %s1645_s30 }
 0x1bb   : > { %s2271_s16 = sshra.s32 %s1646_s30, 4  ;;  %s2272_s16 = int_to_ptr.hbm [resolvable:$true] %s2271_s16 }
 0x1bc   : > { %s2273_s0 = scalar_lea.hbm %s2272_s16, 4  ;;  %p2278_p2 = scmp.lt.s32.totalorder %s2272_s16, %s3181_s27 }
 0x1bd   : > { %p2274_p8 = scmp.ne.s32.totalorder %s2272_s16, %s2273_s0 }
 0x1bf   : > { %p2275_p10 = pnand %p2274_p8, %p2620_p11 }
 0x1c1   : > { %p2276_p12 = pneg %p2275_p10 }
 0x234   : > { %v1107_v20 = vpop.f32.mrf.mxu0 }
 0x235   : > { %v1108_v21 = vadd.f32 %v2090_v57, %v1107_v20 }
 0x237   : > { %v1111_v58 = vmul.f32 0.35355338, %v1108_v21 }
 0x239   : > { %1119 = vrot.lane.b32.xlu1 %v1111_v58, %s2403_s24  ;;  %1113 = vrot.lane.b32.xlu0 %v1111_v58, %s2404_s3  ;;  %v1125_v44 = vrot.slane %v1111_v58, 4  ;;  %s2277_s3 = scalar_lea.hbm %s3181_s27, 16 }
 0x23a   : > { %p2279_p7 = scmp.lt.s32.totalorder %s2277_s3, %s2273_s0 }
 0x23c   : > { %v1109_v22 = vpop.f32.mrf.mxu0  ;;  %p2280_p4 = por %p2279_p7, %p2278_p2 }
 0x23e   : > { %p2281_p3 = pnand %p2280_p4, %p2276_p12 }
 0x241   : > { %1116 = vrot.lane.b32.xlu0 %v1111_v58, %s2405_s22 }
 0x2ab   : > { %v1120_v38 = vpop.permute.xlu1 %1119  ;;  %v1114_v61 = vpop.permute.xlu0 %1113 }
 0x2ac   : > { %v1135_v62 = vrot.slane %v1120_v38, 4  ;;  %v1137_v31 = vrot.slane %v1114_v61, 4 }
 0x2ae   : > { %v1138_v41 = vsel %vm1123_vm5, %v1120_v38, %v1137_v31  ;;  %v1136_v42 = vsel %vm1123_vm5, %v1135_v62, %v1114_v61 }
 0x2af   : > { %v1146_v23 = vperm.slane %v1138_v41, %v2942_v40  ;;  %v1142_v45 = vperm.slane %v1136_v42, %v2942_v40 }
 0x2b1   : > { %v1159_v6 = vrot.slane %v1146_v23, 4  ;;  %v1147_v47 = vrot.slane %v1142_v45, 4 }
 0x2b3   : > { %v1117_v46 = vpop.permute.xlu0 %1116 }
 0x2b4   : > { %v1122_v24 = vrot.slane %v1117_v46, 4  ;;  %v1126_v9 = vsel %vm1123_vm5, %v1117_v46, %v1125_v44  ;;  %v1342_v44 = vld [vmem:[%s472_s29] sm:$0x1]  ;;  %s2411_s29 = smov 8  }
 0x2b5   : > { %v1134_v52 = vperm.slane %v1126_v9, %v2942_v40  ;;  %vm1343_vm6 = vnez %v1342_v44 }
 0x2b6   : > { %v1124_v11 = vsel %vm1123_vm5, %v1122_v24, %v1111_v58 }
 0x2b7   : > { %v1130_v39 = vperm.slane %v1124_v11, %v2942_v40  ;;  %v1160_v48 = vsel %vm1123_vm5, %v1159_v6, %v1134_v52  ;;  %v1161_v49 = vrot.slane %v1134_v52, 4 }
 0x2b8   : > { %v1166_v51 = vperm.slane %v1160_v48, %v2948_v14 }
 0x2b9   : > { %v1148_v53 = vsel %vm1123_vm5, %v1147_v47, %v1130_v39  ;;  %v1149_v54 = vrot.slane %v1130_v39, 4  ;;  %v1162_v56 = vsel %vm1123_vm5, %v1146_v23, %v1161_v49 }
 0x2ba   : > { %v1154_v63 = vperm.slane %v1148_v53, %v2948_v14  ;;  %v1170_v60 = vperm.slane %v1162_v56, %v2948_v14  ;;  %v1175_v50 = vrot.slane %v1166_v51, 4 }
 0x2bb   : > { %v1150_v59 = vsel %vm1123_vm5, %v1142_v45, %v1149_v54  ;;  %v2408_v45 = vmov 0  }
 0x2bc   : > { %v1158_v0 = vperm.slane %v1150_v59, %v2948_v14  ;;  %v1177_v1 = vrot.slane %v1170_v60, 4  ;;  %v1171_v2 = vrot.slane %v1154_v63, 4  ;;  %v1176_v10 = vsel %vm1123_vm5, 0.0, %v1175_v50 }
 0x2bd   : > { %v1344_v46 = vsel %vm1343_vm6, 16843009, %v2408_v45 }
 0x2be   : > { %v1173_v3 = vrot.slane %v1158_v0, 4  ;;  %v1178_v27 = vsel %vm1123_vm5, 0.0, %v1177_v1  ;;  %v1190_v4 = vsel %vm1123_vm5, %v1177_v1, %v1166_v51  ;;  %v1172_v55 = vsel %vm1123_vm5, 0.0, %v1171_v2 }
 0x2bf   : > { %v1194_v5 = vperm.slane %v1190_v4, %v2942_v40  ;;  %v1195_v7 = vrot.slane %v1178_v27, 4  ;;  %v1345_v24 = vunpack.c.0.s8 %v1344_v46 }
 0x2c0   : > { %v1174_v8 = vsel %vm1123_vm5, 0.0, %v1173_v3  ;;  %v1179_v12 = vsel %vm1123_vm5, %v1173_v3, %v1154_v63 }
 0x2c1   : > { %v1184_v13 = vrot.slane %v1174_v8, 4  ;;  %v1196_v15 = vsel %vm1123_vm5, %v1195_v7, %v1176_v10  ;;  %v1215_v16 = vrot.slane %v1194_v5, 4  ;;  %v1183_v17 = vperm.slane %v1179_v12, %v2942_v40 }
 0x2c2   : > { %v1200_v18 = vperm.slane %v1196_v15, %v2942_v40  ;;  %vm1346_vm7 = vcmp.ne.s32.totalorder %v1345_v24, 0 }
 0x2c3   : > { %v1185_v19 = vsel %vm1123_vm5, %v1184_v13, %v1172_v55  ;;  %v1203_v57 = vrot.slane %v1183_v17, 4  ;;  %v1347_v9 = vsel %vm1346_vm7, 1, %v2408_v45 }
 0x2c4   : > { %v1189_v20 = vperm.slane %v1185_v19, %v2942_v40  ;;  %v1216_v21 = vsel %vm1123_vm5, %v1200_v18, %v1215_v16  ;;  %v1213_v58 = vrot.slane %v1200_v18, 4  ;;  %v1348_v6 = vperm.slane %v1347_v9, 0 }
 0x2c5   : > { %v1224_v22 = vperm.slane %v1216_v21, %v2948_v14 }
 0x2c6   : > { %v1204_v25 = vsel %vm1123_vm5, %v1189_v20, %v1203_v57  ;;  %v1201_v26 = vrot.slane %v1189_v20, 4  ;;  %v1214_v28 = vsel %vm1123_vm5, %v1213_v58, %v1194_v5  ;;  %vm2995_vm8 = vcmp.eq.s32.totalorder %v1348_v6, 1 }
 0x2c7   : > { %v1212_v29 = vperm.slane %v1204_v25, %v2948_v14  ;;  %v1229_v30 = vrot.slane %v1224_v22, 4  ;;  %v1220_v32 = vperm.slane %v1214_v28, %v2948_v14  ;;  %v1900_v25 = vld [vmem:[#allocation3] sm:$0xff]  ;;  %v1901_v28 = vld [vmem:[#allocation3 + $0x8] sm:$0xff] }
 0x2c8   : > { %v1202_v34 = vsel %vm1123_vm5, %v1201_v26, %v1183_v17  ;;  %1427 = vmatpush.bf16.msrb.mxu1 %v1900_v25  ;;  %v1902_v26 = vld [vmem:[#allocation3 + $0x10] sm:$0xff]  ;;  %1449 = vmatpush.bf16.msrb.mxu2 %v1901_v28 }
 0x2c9   : > { %v1230_v35 = vsel %vm1123_vm5, %v1229_v30, %v1212_v29  ;;  %v1231_v36 = vrot.slane %v1212_v29, 4  ;;  %v1208_v37 = vperm.slane %v1202_v34, %v2948_v14  ;;  %v1225_v38 = vrot.slane %v1220_v32, 4  ;;  %1471 = vmatpush.bf16.msrb.mxu3 %v1902_v26  ;;  %v1903_v29 = vld [vmem:[#allocation3 + $0x18] sm:$0xff] }
 0x2ca   : > { %v1235_v61 = vpack.c.bf16 %v1230_v35, %v1230_v35  ;;  %1493 = vmatpush.bf16.msra.mxu0 %v1903_v29 }
 0x2cb   : > { %v1226_v62 = vsel %vm1123_vm5, %v1225_v38, %v1208_v37  ;;  %v1232_v31 = vsel %vm1123_vm5, %v1224_v22, %v1231_v36  ;;  %v1227_v41 = vrot.slane %v1208_v37, 4 }
 0x2cc   : > { %1857 = vmatmul.msk.bf16.vlgmr.msra.gmra.mxu3 %vm1250_vm4, %v1235_v61  ;;  %v1233_v42 = vpack.c.bf16 %v1226_v62, %v1226_v62  ;;  %v1236_v33 = vpack.c.bf16 %v1232_v31, %v1232_v31 }
 0x2cd   : > { %v1228_v43 = vsel %vm1123_vm5, %v1220_v32, %v1227_v41 }
 0x2ce   : > { %1847 = vmatmul.msk.bf16.vlgmr.msra.gmra.mxu1 %vm1250_vm4, %v1233_v42  ;;  %1862 = vmatmul.msk.bf16.vlgmr.msrb.gmra.mxu0 %vm1250_vm4, %v1236_v33  ;;  %v1234_v23 = vpack.c.bf16 %v1228_v43, %v1228_v43 }
 0x2d0   : > { %1852 = vmatmul.msk.bf16.vlgmr.msra.gmra.mxu2 %vm1250_vm4, %v1234_v23 }
 0x34b   : > { %v1266_v11 = vpop.f32.mrf.mxu1  ;;  %v1338_v47 = vpop.f32.mrf.mxu0 }
 0x34c   : > { %v1353_v39 = vsel %vm2995_vm8, -1e+09, %v1338_v47  ;;  %v1350_v50 = vsel %vm2995_vm8, -1e+09, %v1266_v11 }
 0x34d   : > { %v1364_v48 = vsel %vm1354_vm9, %v1353_v39, -inf  ;;  %v1355_v2 = vsel %vm1354_vm9, %v1350_v50, -inf }
 0x34e   : > { %1365 = vmax.xlane.f32.xlu0 %v1364_v48 }
 0x34f   : > { %v1314_v49 = vpop.f32.mrf.mxu3 }
 0x350   : > { %v1352_v51 = vsel %vm2995_vm8, -1e+09, %v1314_v49 }
 0x351   : > { %v1361_v53 = vsel %vm1354_vm9, %v1352_v51, -inf }
 0x352   : > { %1362 = vmax.xlane.f32.xlu1 %v1361_v53 }
 0x353   : > { %v1268_v54 = vpop.f32.mrf.mxu1  ;;  %v1290_v56 = vpop.f32.mrf.mxu2 }
 0x354   : > { %v1351_v63 = vsel %vm2995_vm8, -1e+09, %v1290_v56  ;;  %v1340_v60 = vpop.f32.mrf.mxu0 }
 0x355   : > { %v1358_v59 = vsel %vm1354_vm9, %v1351_v63, -inf }
 0x356   : > { %1359 = vmax.xlane.f32.xlu2 %v1358_v59 }
 0x357   : > { %v1316_v0 = vpop.f32.mrf.mxu3 }
 0x35b   : > { %v1292_v1 = vpop.f32.mrf.mxu2 }
 0x35e   : > { %1356 = vmax.xlane.f32.xlu2 %v1355_v2 }
 0x3c1   : > { %v1366_v17 = vpop.xlane.xlu0 %1365 }
 0x3c2   : > { %v1370_v18 = vsub.f32 %v1353_v39, %v1366_v17 }
 0x3c4   : > { %v1377_v57 = vmul.f32 1.442695, %v1370_v18 }
 0x3c5   : > { %v1363_v27 = vpop.xlane.xlu1 %1362 }
 0x3c6   : > { %v1369_v7 = vsub.f32 %v1352_v51, %v1363_v27 }
 0x3c8   : > { %v1375_v10 = vmul.f32 1.442695, %v1369_v7 }
 0x3c9   : > { %v1360_v3 = vpop.xlane.xlu2 %1359 }
 0x3ca   : > { %v1368_v13 = vsub.f32 %v1351_v63, %v1360_v3 }
 0x3cc   : > { %v1373_v16 = vmul.f32 1.442695, %v1368_v13 }
 0x3d1   : > { %v1357_v4 = vpop.xlane.xlu2 %1356 }
 0x3d2   : > { %v1367_v5 = vsub.f32 %v1350_v50, %v1357_v4 }
 0x3d4   : > { %v1371_v8 = vmul.f32 1.442695, %v1367_v5 }
 0x3d6   : > { %2091 = vpow2.f32 %v1371_v8 }
 0x3d7   : > { %2093 = vpow2.f32 %v1375_v10 }
 0x3d8   : > { %2095 = vpow2.f32 %v1373_v16 }
 0x3d9   : > { %2097 = vpow2.f32 %v1377_v57 }
 0x3dc   : > { %v2092_v12 = vpop.eup %2091 }
 0x3dd   : > { %v1379_v15 = vsel %vm1354_vm9, %v2092_v12, 0.0  ;;  %v2094_v55 = vpop.eup %2093 }
 0x3de   : > { %1380 = vadd.xlane.f32.xlu2 %v1379_v15  ;;  %v1385_v19 = vsel %vm1354_vm9, %v2094_v55, 0.0  ;;  %v2096_v20 = vpop.eup %2095 }
 0x3df   : > { %v1382_v21 = vsel %vm1354_vm9, %v2096_v20, 0.0  ;;  %v2098_v58 = vpop.eup %2097 }
 0x3e0   : > { %v1388_v22 = vsel %vm1354_vm9, %v2098_v58, 0.0 }
 0x3e6   : > { %1386 = vadd.xlane.f32.xlu2 %v1385_v19 }
 0x3ee   : > { %1383 = vadd.xlane.f32.xlu2 %v1382_v21 }
 0x3f6   : > { %1389 = vadd.xlane.f32.xlu2 %v1388_v22 }
 0x451   : > { %v1381_v30 = vpop.xlane.xlu2 %1380 }
 0x452   : > { %2099 = vrcp.f32 %v1381_v30 }
 0x458   : > { %v2100_v32 = vpop.eup %2099 }
 0x459   : > { %v1395_v34 = vmul.f32 %v2100_v32, %v2092_v12  ;;  %v1387_v35 = vpop.xlane.xlu2 %1386 }
 0x45a   : > { %2101 = vrcp.f32 %v1387_v35 }
 0x45b   : > { %v1399_v36 = vpack.c.bf16 %v1395_v34, %v1395_v34 }
 0x45d   : > { %1867 = vmatmul.msk.bf16.vlgmr.msrb.gmra.mxu1 %vm1354_vm9, %v1399_v36 }
 0x460   : > { %v2102_v37 = vpop.eup %2101 }
 0x461   : > { %v1397_v38 = vmul.f32 %v2102_v37, %v2094_v55  ;;  %v1384_v61 = vpop.xlane.xlu2 %1383 }
 0x462   : > { %2103 = vrcp.f32 %v1384_v61 }
 0x463   : > { %v1401_v62 = vpack.c.bf16 %v1397_v38, %v1397_v38 }
 0x465   : > { %1877 = vmatmul.msk.bf16.vlgmr.msrb.gmra.mxu3 %vm1354_vm9, %v1401_v62 }
 0x468   : > { %v2104_v31 = vpop.eup %2103 }
 0x469   : > { %v1396_v41 = vmul.f32 %v2104_v31, %v2096_v20  ;;  %v1390_v42 = vpop.xlane.xlu2 %1389 }
 0x46a   : > { %2105 = vrcp.f32 %v1390_v42 }
 0x46b   : > { %v1400_v33 = vpack.c.bf16 %v1396_v41, %v1396_v41 }
 0x46d   : > { %1872 = vmatmul.msk.bf16.vlgmr.msrb.gmra.mxu2 %vm1354_vm9, %v1400_v33 }
 0x470   : > { %v2106_v43 = vpop.eup %2105 }
 0x471   : > { %v1398_v23 = vmul.f32 %v2106_v43, %v2098_v58 }
 0x473   : > { %v1402_v44 = vpack.c.bf16 %v1398_v23, %v1398_v23 }
 0x475   : > { %1882 = vmatmul.msk.bf16.vlgmr.msra.gmra.mxu0 %vm1354_vm9, %v1402_v44 }
 0x4da   : > { %v1429_v45 = vpop.f32.mrf.mxu1 }
 0x4db   : > { %v1501_v9 = vrot.slane %v1429_v45, 4 }
 0x4e2   : > { %v1431_v46 = vpop.f32.mrf.mxu1 }
 0x4e8   : > { %v1473_v24 = vpop.f32.mrf.mxu3 }
 0x4e9   : > { %v1499_v6 = vrot.slane %v1473_v24, 4  ;;  %v1502_v52 = vsel %vm1123_vm5, %v1473_v24, %v1501_v9 }
 0x4ea   : > { %v1510_v47 = vperm.slane %v1502_v52, %v2942_v40 }
 0x4eb   : > { %v1500_v11 = vsel %vm1123_vm5, %v1499_v6, %v1429_v45 }
 0x4ec   : > { %v1506_v51 = vperm.slane %v1500_v11, %v2942_v40  ;;  %v1537_v63 = vrot.slane %v1510_v47, 4 }
 0x4ee   : > { %v1525_v0 = vrot.slane %v1506_v51, 4 }
 0x4f0   : > { %v1451_v39 = vpop.f32.mrf.mxu2  ;;  %v1475_v48 = vpop.f32.mrf.mxu3 }
 0x4f1   : > { %v1513_v49 = vrot.slane %v1451_v39, 4 }
 0x4f2   : > { %v1495_v53 = vpop.f32.mrf.mxu0 }
 0x4f3   : > { %v1511_v54 = vrot.slane %v1495_v53, 4  ;;  %v1514_v56 = vsel %vm1123_vm5, %v1495_v53, %v1513_v49 }
 0x4f4   : > { %v1522_v60 = vperm.slane %v1514_v56, %v2942_v40 }
 0x4f5   : > { %v1512_v59 = vsel %vm1123_vm5, %v1511_v54, %v1451_v39 }
 0x4f6   : > { %v1518_v50 = vperm.slane %v1512_v59, %v2942_v40  ;;  %v1535_v1 = vrot.slane %v1522_v60, 4  ;;  %v1538_v2 = vsel %vm1123_vm5, %v1522_v60, %v1537_v63 }
 0x4f7   : > { %v1546_v3 = vperm.slane %v1538_v2, %v2948_v14 }
 0x4f8   : > { %v1523_v27 = vrot.slane %v1518_v50, 4  ;;  %v1526_v4 = vsel %vm1123_vm5, %v1518_v50, %v1525_v0  ;;  %v1536_v5 = vsel %vm1123_vm5, %v1535_v1, %v1510_v47  ;;  %v1453_v7 = vpop.f32.mrf.mxu2 }
 0x4f9   : > { %v1534_v8 = vperm.slane %v1526_v4, %v2948_v14  ;;  %v1542_v10 = vperm.slane %v1536_v5, %v2948_v14  ;;  %v1553_v12 = vrot.slane %v1546_v3, 4 }
 0x4fa   : > { %v1524_v13 = vsel %vm1123_vm5, %v1523_v27, %v1506_v51  ;;  %v1497_v15 = vpop.f32.mrf.mxu0 }
 0x4fb   : > { %v1530_v16 = vperm.slane %v1524_v13, %v2948_v14  ;;  %v1549_v17 = vrot.slane %v1534_v8, 4  ;;  %v1551_v55 = vrot.slane %v1542_v10, 4  ;;  %v1554_v18 = vsel %vm1123_vm5, 0.0, %v1553_v12 }
 0x4fc   : > { %v1566_v19 = vsel %vm1123_vm5, %v1553_v12, %v1542_v10  ;;  %v1571_v57 = vrot.slane %v1554_v18, 4 }
 0x4fd   : > { %v1547_v20 = vrot.slane %v1530_v16, 4  ;;  %v1550_v21 = vsel %vm1123_vm5, 0.0, %v1549_v17  ;;  %v1552_v58 = vsel %vm1123_vm5, 0.0, %v1551_v55  ;;  %v1570_v22 = vperm.slane %v1566_v19, %v2942_v40 }
 0x4fe   : > { %v1560_v25 = vrot.slane %v1550_v21, 4  ;;  %v1555_v26 = vsel %vm1123_vm5, %v1549_v17, %v1530_v16  ;;  %v1572_v28 = vsel %vm1123_vm5, %v1571_v57, %v1552_v58 }
 0x4ff   : > { %v1548_v29 = vsel %vm1123_vm5, 0.0, %v1547_v20  ;;  %v1559_v30 = vperm.slane %v1555_v26, %v2942_v40  ;;  %v1576_v32 = vperm.slane %v1572_v28, %v2942_v40  ;;  %v1591_v34 = vrot.slane %v1570_v22, 4 }
 0x500   : > { %v1561_v35 = vsel %vm1123_vm5, %v1560_v25, %v1548_v29 }
 0x501   : > { %v1565_v36 = vperm.slane %v1561_v35, %v2942_v40  ;;  %v1579_v37 = vrot.slane %v1559_v30, 4  ;;  %v1592_v38 = vsel %vm1123_vm5, %v1576_v32, %v1591_v34  ;;  %v1589_v61 = vrot.slane %v1576_v32, 4 }
 0x502   : > { %v1600_v62 = vperm.slane %v1592_v38, %v2948_v14 }
 0x503   : > { %v1580_v31 = vsel %vm1123_vm5, %v1565_v36, %v1579_v37  ;;  %v1577_v41 = vrot.slane %v1565_v36, 4  ;;  %v1590_v42 = vsel %vm1123_vm5, %v1589_v61, %v1570_v22 }
 0x504   : > { %v1588_v33 = vperm.slane %v1580_v31, %v2948_v14  ;;  %v1605_v43 = vrot.slane %v1600_v62, 4  ;;  %v1596_v23 = vperm.slane %v1590_v42, %v2948_v14 }
 0x505   : > { %v1578_v44 = vsel %vm1123_vm5, %v1577_v41, %v1559_v30 }
 0x506   : > { %v1606_v40 = vsel %vm1123_vm5, %v1605_v43, %v1588_v33  ;;  %v1607_v45 = vrot.slane %v1588_v33, 4  ;;  %v1584_v46 = vperm.slane %v1578_v44, %v2948_v14  ;;  %v1601_v24 = vrot.slane %v1596_v23, 4 }
 0x507   : > { %1614 = vrot.lane.b32.xlu1 %v1606_v40, %s2409_s23 }
 0x508   : > { %v1608_v9 = vsel %vm1123_vm5, %v1600_v62, %v1607_v45  ;;  %v1603_v6 = vrot.slane %v1584_v46, 4  ;;  %v1602_v52 = vsel %vm1123_vm5, %v1601_v24, %v1584_v46 }
 0x509   : > { %1618 = vrot.lane.b32.xlu0 %v1608_v9, %s2410_s21 }
 0x50a   : > { %v1604_v11 = vsel %vm1123_vm5, %v1596_v23, %v1603_v6 }
 0x50b   : > { %1610 = vrot.lane.b32.xlu2 %v1604_v11, %s2411_s29 }
 0x565   : > { %v1611_v14 = vpop.permute.xlu2 %1610 }
 0x566   : > { %v1621_v47 = vsel %vm1250_vm4, %v1602_v52, %v1611_v14 }
 0x579   : > { %v1615_v39 = vpop.permute.xlu1 %1614 }
 0x57a   : > { %v1622_v48 = vsel %vm1354_vm9, %v1621_v47, %v1615_v39 }
 0x57b   : > { %v1619_v49 = vpop.permute.xlu0 %1618 }
 0x57c   : > { %v1624_v51 = vsel %vm1623_vm10, %v1622_v48, %v1619_v49 }
 0x57d   : > { %v1625_v53 = vpack.c.bf16 %v1624_v51, %v1624_v51 }
 0x57f   : > { %1627 = vst.msk [vmem:[%s2694_s5] sm:$0xf] %vm1626_vm11, %v1625_v53 }
 0x580   : > { %2284 = shalt.err (!%p2281_p3)
}
 0x581   : > { %1920 = dma.vmem_to_hbm [thread:$0]  (%p2620_p11), %s1644_s17, 64, %s1646_s30, %s1629_s15  }
 0x582 PF: > { %s3183_s12 = sld [smem:[#allocation19_spill]]  ;;  %p1950_p9 = scmp.ge.s32.totalorder %s2391_s19, 2 }
 0x584   : > { %p1940_p13 = pnand %p1950_p9, %p2627_p1 }
 0x586   : > { %p1941_p0 = pneg %p1940_p13 }
 0x588   : > { %s1657_s7 = sand.u32 1, %s3183_s12  }
 0x589   : > { %s1658_s23 = scalar_lea.sflag [#allocation6], %s1657_s7 }
 0x58a   : > { %2346 = dma.done.wait (%p1941_p0), %s1658_s23, 64  }
 0x58b   : > { %2348 = vsyncadd (%p1941_p0), %s1658_s23, 4294967232  ;;  %s29_s19 = sadd.s32 1, %s2391_s19   ;;  %s3185_s21 = sld [smem:[#allocation24_spill]] }
 0x58c   : > { %p26_p5 = scmp.ge.s32.totalorder %s29_s19, 6   ;;  %s3186_s29 = sld [smem:[#allocation20_spill]] }
 0x58d   : > { %s3187_s14 = sld [smem:[#allocation25_spill]]  ;;  %s3191_s30 = smov %s2355_s10 }
 0x58e   : > { %s3188_s15 = sld [smem:[#allocation21_spill]]  ;;  %s3192_s10 = smov %s2359_s11 }
 0x58f   : > { %s3189_s17 = sld [smem:[#allocation22_spill]]  ;;  %s3194_s12 = smov %s2367_s13 }
 0x590   : > { %s3190_s20 = sld [smem:[#allocation23_spill]]  ;;  %s3196_s16 = smov %s2387_s18 }
 0x591   : > { %s3193_s11 = smov %s3185_s21 }
 0x592   : > { %s3195_s13 = smov %s3186_s29  ;;  %28 = sbr.rel (!%p26_p5) target bundleno = 21 (0x15), region = 133 }
 0x596   : > { %s3197_s18 = smov %s3190_s20 }
 0x597   :  { %1664 = vsyncpa [#allocation5], 1 }
 0x598   :  { %1666 = vsyncpa [#allocation5 + $0x1], 1 }
 0x599   :  { %1667 = vsyncpa [#allocation8], 1 }
 0x59a   :  { %1669 = vsyncpa [#allocation8 + $0x1], 1 }
 0x59b   :  { %1670 = vsyncpa [#allocation11], 1 }
 0x59c   :  { %1671 = vsyncpa [#allocation6], 1 }
 0x59d   :  { %1673 = vsyncpa [#allocation6 + $0x1], 1 }

</bundles_post_ra>
